<compile_context>
chip_gen: v6e
topology: v6e:2x2x1
jax: 0.10.0
libtpu: 0.0.40
codegen_flags: <defaults>
</compile_context>

<pallas_src>
import functools

import jax
import jax.numpy as jnp
from jax import lax
from jax.experimental import pallas as pl
from jax.experimental.pallas import tpu as pltpu

# Full f32 matmul precision for the host-side folding and the pure-JAX reference so
# the kernel (which also requests HIGHEST precision) can be compared tightly.
jax.config.update("jax_default_matmul_precision", "highest")

_HIGH = jax.lax.Precision.HIGHEST


# ---------------------------------------------------------------------------
# Pallas kernel
# ---------------------------------------------------------------------------
def _smart_expert_kernel(
    cap_ref,    # (2B, E0)   caption token-0 rows then token-1 rows
    ps_ref,     # (B, 2*E1)  [pair feats (E1) | similarity (1) | zero pad]
    wqkv_ref,   # (E0, 3E0)  fused [Wq^T | Wk^T | Wv^T]
    wproj_ref,  # (E0, E1//2) projection weight (transposed, pre-scaled by 0.5)
    wdkv_ref,   # (D, KVP)   W_dkv restricted to the kv-lora columns
    wvo_ref,    # (KVP, D)   (kv_ln_gamma * W_ukv[:, V cols]) @ W_o^T
    wc1_ref,    # (D, E1)    classifier layer-1 weight (transposed)
    wc2_ref,    # (E1, CPAD) classifier layer-2 weight (transposed, lane-padded)
    bias_ref,   # (1, BTOT)  all bias rows packed at 128-lane-aligned offsets
    out_ref,    # (1, CPAD)  lane-dense padded bag logits
    *, B, E0, E1, D, KVP, CPAD,
    OFF_QKV, OFF_PROJ, OFF_VO, OFF_C1, OFF_C2,
):
    f32 = jnp.float32
    cap = cap_ref[...]                                              # (2B, E0)
    pair = ps_ref[:, :E1]                                           # (B, E1)
    sim = ps_ref[:, E1:E1 + 1]                                      # (B, 1)

    # ---- SelfAttention over the 2 caption tokens ----
    b_qkv = bias_ref[:, OFF_QKV:OFF_QKV + 3 * E0]                   # (1, 3E0)
    qkv = jnp.dot(cap, wqkv_ref[...],
                  preferred_element_type=f32, precision=_HIGH) + b_qkv
    q, k, v = qkv[:, :E0], qkv[:, E0:2 * E0], qkv[:, 2 * E0:3 * E0]
    q0, q1 = q[:B], q[B:]
    k0, k1 = k[:B], k[B:]
    v0, v1 = v[:B], v[B:]

    # 2x2 attention on the VPU (no scaling by sqrt(d) — matches torch SelfAttention).
    s00 = jnp.sum(q0 * k0, axis=-1, keepdims=True)
    s01 = jnp.sum(q0 * k1, axis=-1, keepdims=True)
    s10 = jnp.sum(q1 * k0, axis=-1, keepdims=True)
    s11 = jnp.sum(q1 * k1, axis=-1, keepdims=True)
    m0 = jnp.maximum(s00, s01)
    e00, e01 = jnp.exp(s00 - m0), jnp.exp(s01 - m0)
    att0 = (e00 * v0 + e01 * v1) / (e00 + e01)
    m1 = jnp.maximum(s10, s11)
    e10, e11 = jnp.exp(s10 - m1), jnp.exp(s11 - m1)
    att1 = (e10 * v0 + e11 * v1) / (e10 + e11)

    # mean over 2 tokens (0.5 folded into wproj host-side), scale by similarity
    a = (att0 + att1) * sim                                          # (B, E0)

    # ---- projection (no concat: W_dkv is split into pair / proj row blocks) ----
    b_proj = bias_ref[:, OFF_PROJ:OFF_PROJ + E1 // 2]
    p = jnp.dot(a, wproj_ref[...],
                preferred_element_type=f32, precision=_HIGH) + b_proj   # (B, E1//2)

    # ---- MLA with S=1 ----
    # With one query/key position and a causal mask the softmax weight is exactly 1,
    # so the attention output is V; V's columns of W_ukv were gathered and folded
    # with W_o^T (and the kv-LayerNorm affine) into wvo_ref / its bias row.
    ckv = (jnp.dot(pair, wdkv_ref[:E1, :],
                   preferred_element_type=f32, precision=_HIGH)
           + jnp.dot(p, wdkv_ref[E1:, :],
                     preferred_element_type=f32, precision=_HIGH))      # (B, KVP)
    mu = jnp.mean(ckv, axis=-1, keepdims=True)
    var = jnp.mean((ckv - mu) ** 2, axis=-1, keepdims=True)
    chat = (ckv - mu) * lax.rsqrt(var + 1e-5)                           # LN, affine folded
    b_vo = bias_ref[:, OFF_VO:OFF_VO + D]
    mla = jnp.dot(chat, wvo_ref[...],
                  preferred_element_type=f32, precision=_HIGH) + b_vo   # (B, D)

    # ---- classifier + bag sum (sum commuted in front of the final linear) ----
    b_c1 = bias_ref[:, OFF_C1:OFF_C1 + E1]
    h = jnp.maximum(
        jnp.dot(mla, wc1_ref[...],
                preferred_element_type=f32, precision=_HIGH) + b_c1, 0.0)  # (B, E1)
    hsum = jnp.sum(h, axis=0, keepdims=True)                               # (1, E1)
    b_c2 = bias_ref[:, OFF_C2:OFF_C2 + CPAD]                               # already * B
    out_ref[...] = jnp.dot(hsum, wc2_ref[...],
                           preferred_element_type=f32, precision=_HIGH) + b_c2


# ---------------------------------------------------------------------------
# Wrapper: host-side weight folding + pallas_call
# ---------------------------------------------------------------------------
def smart_expert_forward(similarity, caption_feats, pair_feats, label,
                         pair_attention_label, params):
    del label, pair_attention_label   # unused by the torch forward
    f32 = jnp.float32
    B, _, E0 = caption_feats.shape
    E1 = pair_feats.shape[-1]
    D = E1 + E1 // 2
    H = 16
    dh = D // H
    nope = dh // 2
    kvp = 2 * D // 3
    ncls = params["c2_w"].shape[0]
    CPAD = 128   # lane-dense padded logits width

    # ---- activations (pack pair feats + similarity into one lane-aligned buffer) ----
    cap = jnp.concatenate(
        [caption_feats[:, 0, :], caption_feats[:, 1, :]], axis=0).astype(f32)  # (2B, E0)
    ps = (jnp.zeros((B, 2 * E1), f32)
          .at[:, :E1].set(pair_feats.astype(f32))
          .at[:, E1].set(similarity.reshape(B).astype(f32)))                   # (B, 2E1)

    # ---- fused / folded weights ----
    w_qkv = jnp.concatenate(
        [params["sa_wq"].T, params["sa_bk"][None, :] * 0 + params["sa_wk"].T,
         params["sa_wv"].T], axis=1)                                           # (E0, 3E0)
    w_qkv = jnp.concatenate(
        [params["sa_wq"].T, params["sa_wk"].T, params["sa_wv"].T], axis=1)     # (E0, 3E0)
    b_qkv = jnp.concatenate([params["sa_bq"], params["sa_bk"], params["sa_bv"]])
    w_proj = 0.5 * params["proj_w"].T       # token-mean 0.5 folded into the weight

    # MLA folding: only the kv-lora columns of W_dkv matter; gather the V columns of
    # W_ukv per head and pre-multiply with W_o^T + kv-LN affine.
    w_dkv = params["W_dkv"][:, :kvp]                                           # (D, KVP)
    v_cols = (jnp.arange(H)[:, None] * (dh + nope) + nope
              + jnp.arange(dh)[None, :]).reshape(-1)
    w_uv = params["W_ukv"][:, v_cols]                                          # (KVP, D)
    w_vo = (params["kv_ln_g"][:, None] * w_uv) @ params["W_o"].T               # (KVP, D)
    b_vo = params["kv_ln_b"] @ w_uv @ params["W_o"].T                          # (D,)

    w_c1 = params["c1_w"].T                                                    # (D, E1)
    w_c2 = jnp.zeros((E1, CPAD), f32).at[:, :ncls].set(params["c2_w"].T)       # lane-padded
    # bag sum is commuted in front of this layer, so its bias is scaled by B.
    b_c2 = jnp.zeros((CPAD,), f32).at[:ncls].set(params["c2_b"]) * B

    # pack all bias rows into one lane-aligned vector (one DMA instead of five)
    widths = (3 * E0, E1 // 2, D, E1, CPAD)
    offs, btot = [], 0
    for w in widths:
        offs.append(btot)
        btot += ((w + 127) // 128) * 128
    b_all = jnp.zeros((1, btot), f32)
    for off, vec in zip(offs, (b_qkv, params["proj_b"], b_vo, params["c1_b"], b_c2)):
        b_all = b_all.at[0, off:off + vec.shape[0]].set(vec.astype(f32))

    kernel = functools.partial(
        _smart_expert_kernel,
        B=B, E0=E0, E1=E1, D=D, KVP=kvp, CPAD=CPAD,
        OFF_QKV=offs[0], OFF_PROJ=offs[1], OFF_VO=offs[2],
        OFF_C1=offs[3], OFF_C2=offs[4],
    )
    vmem = pl.BlockSpec(memory_space=pltpu.MemorySpace.VMEM)
    out = pl.pallas_call(
        kernel,
        out_shape=jax.ShapeDtypeStruct((1, CPAD), f32),
        in_specs=[vmem] * 9,
        out_specs=vmem,
    )(cap, ps,
      w_qkv.astype(f32), w_proj.astype(f32), w_dkv.astype(f32),
      w_vo.astype(f32), w_c1.astype(f32), w_c2, b_all)
    return out[0, :ncls]


# ---------------------------------------------------------------------------
# Faithful pure-JAX reference (mirrors the torch module, including the full
# Q / RoPE / softmax path of the MLA) — used to validate the kernel.
# ---------------------------------------------------------------------------
def _layernorm(x, g, b, eps=1e-5):
    mu = jnp.mean(x, axis=-1, keepdims=True)
    var = jnp.mean((x - mu) ** 2, axis=-1, keepdims=True)
    return (x - mu) / jnp.sqrt(var + eps) * g + b


def _reference_mla(x, prm):
    B, S, D = x.shape
    H = 16
    dh = D // H
    kvp = 2 * D // 3
    nope = dh // 2
    rope = dh - nope          # even for the chosen dims (even-rope branch)

    def rot_half(t):
        t1, t2 = jnp.split(t, 2, axis=-1)
        return jnp.concatenate([-t2, t1], axis=-1)

    cq = _layernorm(x @ prm["W_dq"], prm["q_ln_g"], prm["q_ln_b"])
    Q = (cq @ prm["W_uq"]).reshape(B, S, H, dh).transpose(0, 2, 1, 3)
    Q_nope, Q_rope = Q[..., :nope], Q[..., nope:]
    cos, sin = prm["cos_cached"], prm["sin_cached"]
    cos_q = jnp.concatenate([cos[:, :, 0:S, :rope // 2]] * 2, axis=-1)
    sin_q = jnp.concatenate([sin[:, :, 0:S, :rope // 2]] * 2, axis=-1)
    Q_rope = Q_rope * cos_q + rot_half(Q_rope) * sin_q

    ckv = x @ prm["W_dkv"]
    kv_lora, K_rope = ckv[..., :kvp], ckv[..., kvp:]
    kv_lora = _layernorm(kv_lora, prm["kv_ln_g"], prm["kv_ln_b"])
    KV = (kv_lora @ prm["W_ukv"]).reshape(B, S, H, dh + nope).transpose(0, 2, 1, 3)
    K, V = KV[..., :nope], KV[..., nope:]
    S_full = KV.shape[2]
    K_rope = K_rope.reshape(B, S, 1, rope).transpose(0, 2, 1, 3)
    cos_k = jnp.concatenate([cos[:, :, :S_full, :rope // 2]] * 2, axis=-1)
    sin_k = jnp.concatenate([sin[:, :, :S_full, :rope // 2]] * 2, axis=-1)
    K_rope = K_rope * cos_k + rot_half(K_rope) * sin_k
    K_rope = jnp.broadcast_to(K_rope, (B, H, S_full, rope))

    q_heads = jnp.concatenate([Q_nope, Q_rope], axis=-1)
    k_heads = jnp.concatenate([K, K_rope], axis=-1)
    mask = jnp.tril(jnp.ones((S, S_full)), k=0)[None, None]
    scores = jnp.einsum("bhqd,bhkd->bhqk", q_heads, k_heads) / dh ** 0.5
    scores = jnp.where(mask == 0, -jnp.inf, scores)
    w = jax.nn.softmax(scores, axis=-1)
    out = jnp.einsum("bhqk,bhkd->bhqd", w, V)
    out = out.transpose(0, 2, 1, 3).reshape(B, S, D) @ prm["W_o"].T
    return out, ckv


def _reference_forward(similarity, caption_feats, pair_feats, prm):
    c = caption_feats[:, 0:2, :]
    q = c @ prm["sa_wq"].T + prm["sa_bq"]
    k = c @ prm["sa_wk"].T + prm["sa_bk"]
    v = c @ prm["sa_wv"].T + prm["sa_bv"]
    aw = jax.nn.softmax(jnp.einsum("bie,bje->bij", q, k), axis=-1)
    att = jnp.einsum("bij,bje->bie", aw, v)
    x = att.mean(axis=1)
    x = x * similarity
    x = x @ prm["proj_w"].T + prm["proj_b"]
    x = jnp.concatenate([pair_feats, x], axis=-1)
    x, _ = _reference_mla(x[:, None, :], prm)
    x = x.mean(axis=1)
    h = jax.nn.relu(x @ prm["c1_w"].T + prm["c1_b"])
    logits = h @ prm["c2_w"].T + prm["c2_b"]
    return jnp.sum(logits, axis=0)


# ---------------------------------------------------------------------------
if __name__ == "__main__":
    # Shapes implied by the module: embed_dim = [[E0, E1]], MLA dim D = 1.5*E1 must be
    # divisible by num_heads=16 with an even rope dim -> E1 = 128.
    B, T, E0, E1, NCLS = 4, 3, 32, 128, 8
    D = E1 + E1 // 2          # 192
    H = 16
    dh = D // H               # 12
    nope, rope = dh // 2, dh - dh // 2
    kvp = 2 * D // 3          # 128
    qproj = D // 2            # 96

    f32 = jnp.float32
    key = jax.random.PRNGKey(0)
    ks = jax.random.split(key, 20)

    similarity = jax.random.uniform(ks[0], (B, 1), dtype=f32)
    caption_feats = jax.random.normal(ks[1], (B, T, E0), dtype=f32)
    pair_feats = jax.random.normal(ks[2], (B, E1), dtype=f32)
    label = jnp.zeros((B,), jnp.int32)                 # unused by forward
    pair_attention_label = jnp.zeros((B,), jnp.int32)  # unused by forward

    freqs = 1.0 / (10000.0 ** (jnp.arange(0, dh, 2, dtype=f32) / dh))
    emb = jnp.outer(jnp.arange(8, dtype=f32), freqs)

    params = {
        "sa_wq": 0.1 * jax.random.normal(ks[3], (E0, E0), f32),
        "sa_bq": 0.1 * jax.random.normal(ks[4], (E0,), f32),
        "sa_wk": 0.1 * jax.random.normal(ks[5], (E0, E0), f32),
        "sa_bk": 0.1 * jax.random.normal(ks[6], (E0,), f32),
        "sa_wv": 0.1 * jax.random.normal(ks[7], (E0, E0), f32),
        "sa_bv": 0.1 * jax.random.normal(ks[8], (E0,), f32),
        "proj_w": 0.1 * jax.random.normal(ks[9], (E1 // 2, E0), f32),
        "proj_b": 0.1 * jax.random.normal(ks[10], (E1 // 2,), f32),
        "W_dq": 0.01 * jax.random.normal(ks[11], (D, qproj), f32),
        "W_uq": 0.01 * jax.random.normal(ks[12], (qproj, D), f32),
        "q_ln_g": jnp.ones((qproj,), f32),
        "q_ln_b": jnp.zeros((qproj,), f32),
        "W_dkv": 0.01 * jax.random.normal(ks[13], (D, kvp + rope), f32),
        "W_ukv": 0.01 * jax.random.normal(ks[14], (kvp, D + H * nope), f32),
        "kv_ln_g": jnp.ones((kvp,), f32),
        "kv_ln_b": jnp.zeros((kvp,), f32),
        "W_o": 0.01 * jax.random.normal(ks[15], (D, D), f32),
        "cos_cached": jnp.cos(emb)[None, None, :, :],
        "sin_cached": jnp.sin(emb)[None, None, :, :],
        "c1_w": 0.1 * jax.random.normal(ks[16], (E1, D), f32),
        "c1_b": 0.1 * jax.random.normal(ks[17], (E1,), f32),
        "c2_w": 0.1 * jax.random.normal(ks[18], (NCLS, E1), f32),
        "c2_b": 0.1 * jax.random.normal(ks[19], (NCLS,), f32),
    }

    bag_logits = smart_expert_forward(
        similarity, caption_feats, pair_feats, label, pair_attention_label, params)
    jax.block_until_ready(bag_logits)

    ref_logits = _reference_forward(similarity, caption_feats, pair_feats, params)
    assert bag_logits.shape == (NCLS,)
    assert jnp.allclose(bag_logits, ref_logits, atol=2e-3, rtol=2e-3), (
        bag_logits, ref_logits)

    print("KERNEL_OK")
</pallas_src>

<mosaic_0001>
module attributes {stable_mosaic.version = 11 : i64} {
  func.func @_smart_expert_kernel(%arg0: memref<8x32xf32, #tpu.memory_space<vmem>>, %arg1: memref<4x256xf32, #tpu.memory_space<vmem>>, %arg2: memref<32x96xf32, #tpu.memory_space<vmem>>, %arg3: memref<32x64xf32, #tpu.memory_space<vmem>>, %arg4: memref<192x128xf32, #tpu.memory_space<vmem>>, %arg5: memref<128x192xf32, #tpu.memory_space<vmem>>, %arg6: memref<192x128xf32, #tpu.memory_space<vmem>>, %arg7: memref<128x128xf32, #tpu.memory_space<vmem>>, %arg8: memref<1x768xf32, #tpu.memory_space<vmem>>, %arg9: memref<1x128xf32, #tpu.memory_space<vmem>>) attributes {dimension_semantics = [], scalar_prefetch = 0 : i64, scratch_operands = 0 : i64, tpu.core_type = #tpu.core_type<tc>} {
    %c0 = arith.constant 0 : index
    %c0_0 = arith.constant 0 : index
    %0 = vector.load %arg0[%c0, %c0_0] : memref<8x32xf32, #tpu.memory_space<vmem>>, vector<8x32xf32>
    %c0_1 = arith.constant 0 : index
    %c0_2 = arith.constant 0 : index
    %1 = vector.load %arg1[%c0_1, %c0_2] : memref<4x256xf32, #tpu.memory_space<vmem>>, vector<4x128xf32>
    %c0_3 = arith.constant 0 : index
    %c128 = arith.constant 128 : index
    %2 = vector.load %arg1[%c0_3, %c128] : memref<4x256xf32, #tpu.memory_space<vmem>>, vector<4x1xf32>
    %c0_4 = arith.constant 0 : index
    %c0_5 = arith.constant 0 : index
    %3 = vector.load %arg8[%c0_4, %c0_5] : memref<1x768xf32, #tpu.memory_space<vmem>>, vector<1x96xf32>
    %c0_6 = arith.constant 0 : index
    %c0_7 = arith.constant 0 : index
    %4 = vector.load %arg2[%c0_6, %c0_7] : memref<32x96xf32, #tpu.memory_space<vmem>>, vector<32x96xf32>
    %cst = arith.constant dense<0.000000e+00> : vector<8x96xf32>
    %5 = tpu.matmul %0, %4, %cst {dimension_numbers = #tpu.dot_dimension_numbers<[1], [0], [0], [1], [0, 0, 1, 1], [], []>, precision = #tpu.contract_precision<fp32>} : vector<8x32xf32>, vector<32x96xf32>, vector<8x96xf32> -> vector<8x96xf32>
    %6 = vector.broadcast %3 : vector<1x96xf32> to vector<8x96xf32>
    %7 = arith.addf %5, %6 : vector<8x96xf32>
    %8 = vector.extract_strided_slice %7 {offsets = [0, 0], sizes = [8, 32], strides = [1, 1]} : vector<8x96xf32> to vector<8x32xf32>
    %9 = vector.extract_strided_slice %7 {offsets = [0, 32], sizes = [8, 32], strides = [1, 1]} : vector<8x96xf32> to vector<8x32xf32>
    %10 = vector.extract_strided_slice %7 {offsets = [0, 64], sizes = [8, 32], strides = [1, 1]} : vector<8x96xf32> to vector<8x32xf32>
    %11 = vector.extract_strided_slice %8 {offsets = [0, 0], sizes = [4, 32], strides = [1, 1]} : vector<8x32xf32> to vector<4x32xf32>
    %12 = vector.extract_strided_slice %8 {offsets = [4, 0], sizes = [4, 32], strides = [1, 1]} : vector<8x32xf32> to vector<4x32xf32>
    %13 = vector.extract_strided_slice %9 {offsets = [0, 0], sizes = [4, 32], strides = [1, 1]} : vector<8x32xf32> to vector<4x32xf32>
    %14 = vector.extract_strided_slice %9 {offsets = [4, 0], sizes = [4, 32], strides = [1, 1]} : vector<8x32xf32> to vector<4x32xf32>
    %15 = vector.extract_strided_slice %10 {offsets = [0, 0], sizes = [4, 32], strides = [1, 1]} : vector<8x32xf32> to vector<4x32xf32>
    %16 = vector.extract_strided_slice %10 {offsets = [4, 0], sizes = [4, 32], strides = [1, 1]} : vector<8x32xf32> to vector<4x32xf32>
    %17 = arith.mulf %11, %13 : vector<4x32xf32>
    %cst_8 = arith.constant dense<0.000000e+00> : vector<4xf32>
    %18 = vector.multi_reduction <add>, %17, %cst_8 [1] : vector<4x32xf32> to vector<4xf32>
    %19 = vector.shape_cast %18 : vector<4xf32> to vector<4x1xf32>
    %20 = arith.mulf %11, %14 : vector<4x32xf32>
    %cst_9 = arith.constant dense<0.000000e+00> : vector<4xf32>
    %21 = vector.multi_reduction <add>, %20, %cst_9 [1] : vector<4x32xf32> to vector<4xf32>
    %22 = vector.shape_cast %21 : vector<4xf32> to vector<4x1xf32>
    %23 = arith.mulf %12, %13 : vector<4x32xf32>
    %cst_10 = arith.constant dense<0.000000e+00> : vector<4xf32>
    %24 = vector.multi_reduction <add>, %23, %cst_10 [1] : vector<4x32xf32> to vector<4xf32>
    %25 = vector.shape_cast %24 : vector<4xf32> to vector<4x1xf32>
    %26 = arith.mulf %12, %14 : vector<4x32xf32>
    %cst_11 = arith.constant dense<0.000000e+00> : vector<4xf32>
    %27 = vector.multi_reduction <add>, %26, %cst_11 [1] : vector<4x32xf32> to vector<4xf32>
    %28 = vector.shape_cast %27 : vector<4xf32> to vector<4x1xf32>
    %29 = arith.maximumf %19, %22 : vector<4x1xf32>
    %30 = arith.subf %19, %29 : vector<4x1xf32>
    %31 = math.exp %30 : vector<4x1xf32>
    %32 = arith.subf %22, %29 : vector<4x1xf32>
    %33 = math.exp %32 : vector<4x1xf32>
    %34 = vector.broadcast %31 : vector<4x1xf32> to vector<4x32xf32>
    %35 = arith.mulf %34, %15 : vector<4x32xf32>
    %36 = vector.broadcast %33 : vector<4x1xf32> to vector<4x32xf32>
    %37 = arith.mulf %36, %16 : vector<4x32xf32>
    %38 = arith.addf %35, %37 : vector<4x32xf32>
    %39 = arith.addf %31, %33 : vector<4x1xf32>
    %40 = vector.broadcast %39 : vector<4x1xf32> to vector<4x32xf32>
    %41 = arith.divf %38, %40 : vector<4x32xf32>
    %42 = arith.maximumf %25, %28 : vector<4x1xf32>
    %43 = arith.subf %25, %42 : vector<4x1xf32>
    %44 = math.exp %43 : vector<4x1xf32>
    %45 = arith.subf %28, %42 : vector<4x1xf32>
    %46 = math.exp %45 : vector<4x1xf32>
    %47 = vector.broadcast %44 : vector<4x1xf32> to vector<4x32xf32>
    %48 = arith.mulf %47, %15 : vector<4x32xf32>
    %49 = vector.broadcast %46 : vector<4x1xf32> to vector<4x32xf32>
    %50 = arith.mulf %49, %16 : vector<4x32xf32>
    %51 = arith.addf %48, %50 : vector<4x32xf32>
    %52 = arith.addf %44, %46 : vector<4x1xf32>
    %53 = vector.broadcast %52 : vector<4x1xf32> to vector<4x32xf32>
    %54 = arith.divf %51, %53 : vector<4x32xf32>
    %55 = arith.addf %41, %54 : vector<4x32xf32>
    %56 = vector.broadcast %2 : vector<4x1xf32> to vector<4x32xf32>
    %57 = arith.mulf %55, %56 : vector<4x32xf32>
    %c0_12 = arith.constant 0 : index
    %c128_13 = arith.constant 128 : index
    %58 = vector.load %arg8[%c0_12, %c128_13] : memref<1x768xf32, #tpu.memory_space<vmem>>, vector<1x64xf32>
    %c0_14 = arith.constant 0 : index
    %c0_15 = arith.constant 0 : index
    %59 = vector.load %arg3[%c0_14, %c0_15] : memref<32x64xf32, #tpu.memory_space<vmem>>, vector<32x64xf32>
    %cst_16 = arith.constant dense<0.000000e+00> : vector<4x64xf32>
    %60 = tpu.matmul %57, %59, %cst_16 {dimension_numbers = #tpu.dot_dimension_numbers<[1], [0], [0], [1], [0, 0, 1, 1], [], []>, precision = #tpu.contract_precision<fp32>} : vector<4x32xf32>, vector<32x64xf32>, vector<4x64xf32> -> vector<4x64xf32>
    %61 = vector.broadcast %58 : vector<1x64xf32> to vector<4x64xf32>
    %62 = arith.addf %60, %61 : vector<4x64xf32>
    %c0_17 = arith.constant 0 : index
    %c0_18 = arith.constant 0 : index
    %63 = vector.load %arg4[%c0_17, %c0_18] : memref<192x128xf32, #tpu.memory_space<vmem>>, vector<128x128xf32>
    %cst_19 = arith.constant dense<0.000000e+00> : vector<4x128xf32>
    %64 = tpu.matmul %1, %63, %cst_19 {dimension_numbers = #tpu.dot_dimension_numbers<[1], [0], [0], [1], [0, 0, 1, 1], [], []>, precision = #tpu.contract_precision<fp32>} : vector<4x128xf32>, vector<128x128xf32>, vector<4x128xf32> -> vector<4x128xf32>
    %c128_20 = arith.constant 128 : index
    %c0_21 = arith.constant 0 : index
    %65 = vector.load %arg4[%c128_20, %c0_21] : memref<192x128xf32, #tpu.memory_space<vmem>>, vector<64x128xf32>
    %cst_22 = arith.constant dense<0.000000e+00> : vector<4x128xf32>
    %66 = tpu.matmul %62, %65, %cst_22 {dimension_numbers = #tpu.dot_dimension_numbers<[1], [0], [0], [1], [0, 0, 1, 1], [], []>, precision = #tpu.contract_precision<fp32>} : vector<4x64xf32>, vector<64x128xf32>, vector<4x128xf32> -> vector<4x128xf32>
    %67 = arith.addf %64, %66 : vector<4x128xf32>
    %cst_23 = arith.constant dense<0.000000e+00> : vector<4xf32>
    %68 = vector.multi_reduction <add>, %67, %cst_23 [1] : vector<4x128xf32> to vector<4xf32>
    %69 = vector.shape_cast %68 : vector<4xf32> to vector<4x1xf32>
    %cst_24 = arith.constant 1.280000e+02 : f32
    %70 = vector.broadcast %cst_24 : f32 to vector<4x1xf32>
    %71 = arith.divf %69, %70 : vector<4x1xf32>
    %72 = vector.broadcast %71 : vector<4x1xf32> to vector<4x128xf32>
    %73 = arith.subf %67, %72 : vector<4x128xf32>
    %74 = arith.mulf %73, %73 : vector<4x128xf32>
    %cst_25 = arith.constant dense<0.000000e+00> : vector<4xf32>
    %75 = vector.multi_reduction <add>, %74, %cst_25 [1] : vector<4x128xf32> to vector<4xf32>
    %76 = vector.shape_cast %75 : vector<4xf32> to vector<4x1xf32>
    %cst_26 = arith.constant 1.280000e+02 : f32
    %77 = vector.broadcast %cst_26 : f32 to vector<4x1xf32>
    %78 = arith.divf %76, %77 : vector<4x1xf32>
    %79 = vector.broadcast %71 : vector<4x1xf32> to vector<4x128xf32>
    %80 = arith.subf %67, %79 : vector<4x128xf32>
    %cst_27 = arith.constant 9.99999974E-6 : f32
    %81 = vector.broadcast %cst_27 : f32 to vector<4x1xf32>
    %82 = arith.addf %78, %81 : vector<4x1xf32>
    %83 = math.rsqrt %82 : vector<4x1xf32>
    %84 = vector.broadcast %83 : vector<4x1xf32> to vector<4x128xf32>
    %85 = arith.mulf %80, %84 : vector<4x128xf32>
    %c0_28 = arith.constant 0 : index
    %c256 = arith.constant 256 : index
    %86 = vector.load %arg8[%c0_28, %c256] : memref<1x768xf32, #tpu.memory_space<vmem>>, vector<1x192xf32>
    %c0_29 = arith.constant 0 : index
    %c0_30 = arith.constant 0 : index
    %87 = vector.load %arg5[%c0_29, %c0_30] : memref<128x192xf32, #tpu.memory_space<vmem>>, vector<128x192xf32>
    %cst_31 = arith.constant dense<0.000000e+00> : vector<4x192xf32>
    %88 = tpu.matmul %85, %87, %cst_31 {dimension_numbers = #tpu.dot_dimension_numbers<[1], [0], [0], [1], [0, 0, 1, 1], [], []>, precision = #tpu.contract_precision<fp32>} : vector<4x128xf32>, vector<128x192xf32>, vector<4x192xf32> -> vector<4x192xf32>
    %89 = vector.broadcast %86 : vector<1x192xf32> to vector<4x192xf32>
    %90 = arith.addf %88, %89 : vector<4x192xf32>
    %c0_32 = arith.constant 0 : index
    %c512 = arith.constant 512 : index
    %91 = vector.load %arg8[%c0_32, %c512] : memref<1x768xf32, #tpu.memory_space<vmem>>, vector<1x128xf32>
    %c0_33 = arith.constant 0 : index
    %c0_34 = arith.constant 0 : index
    %92 = vector.load %arg6[%c0_33, %c0_34] : memref<192x128xf32, #tpu.memory_space<vmem>>, vector<192x128xf32>
    %cst_35 = arith.constant dense<0.000000e+00> : vector<4x128xf32>
    %93 = tpu.matmul %90, %92, %cst_35 {dimension_numbers = #tpu.dot_dimension_numbers<[1], [0], [0], [1], [0, 0, 1, 1], [], []>, precision = #tpu.contract_precision<fp32>} : vector<4x192xf32>, vector<192x128xf32>, vector<4x128xf32> -> vector<4x128xf32>
    %94 = vector.broadcast %91 : vector<1x128xf32> to vector<4x128xf32>
    %95 = arith.addf %93, %94 : vector<4x128xf32>
    %cst_36 = arith.constant 0.000000e+00 : f32
    %96 = vector.broadcast %cst_36 : f32 to vector<4x128xf32>
    %97 = arith.maximumf %95, %96 : vector<4x128xf32>
    %cst_37 = arith.constant dense<0.000000e+00> : vector<128xf32>
    %98 = vector.multi_reduction <add>, %97, %cst_37 [0] : vector<4x128xf32> to vector<128xf32>
    %99 = vector.shape_cast %98 : vector<128xf32> to vector<1x128xf32>
    %c0_38 = arith.constant 0 : index
    %c640 = arith.constant 640 : index
    %100 = vector.load %arg8[%c0_38, %c640] : memref<1x768xf32, #tpu.memory_space<vmem>>, vector<1x128xf32>
    %c0_39 = arith.constant 0 : index
    %c0_40 = arith.constant 0 : index
    %101 = vector.load %arg7[%c0_39, %c0_40] : memref<128x128xf32, #tpu.memory_space<vmem>>, vector<128x128xf32>
    %cst_41 = arith.constant dense<0.000000e+00> : vector<1x128xf32>
    %102 = tpu.matmul %99, %101, %cst_41 {dimension_numbers = #tpu.dot_dimension_numbers<[1], [0], [0], [1], [0, 0, 1, 1], [], []>, precision = #tpu.contract_precision<fp32>} : vector<1x128xf32>, vector<128x128xf32>, vector<1x128xf32> -> vector<1x128xf32>
    %103 = arith.addf %102, %100 : vector<1x128xf32>
    %c0_42 = arith.constant 0 : index
    %c0_43 = arith.constant 0 : index
    %104 = vector.load %arg9[%c0_42, %c0_43] : memref<1x128xf32, #tpu.memory_space<vmem>>, vector<1x128xf32>
    tpu.vector_store %arg9[%c0_42, %c0_43], %103 {strides = array<i32>} : memref<1x128xf32, #tpu.memory_space<vmem>>, vector<1x128xf32>,
    return
  }
}

</mosaic_0001>

<bundles_post_ra>
// kernel: tpu_custom_call.1
= control target key start
LH: loop header
LB: loop body
LE: loop exit
PB: predicated region body
PF: predicated region fallthrough
CT: control target
= control target key end

     0   :  { %14 = vsyncpa [#allocation3], 0  ;;  %s8319_s0 = inlined_call_operand.hbm [shape: f32[8,32], index: 0, kind: input, shape index: {}]   ;;  %s8320_s1 = inlined_call_operand.hbm [shape: f32[4,256], index: 1, kind: input, shape index: {}]   ;;  %s8321_s2 = inlined_call_operand.vmem [shape: f32[32,96], index: 2, kind: input, shape index: {}]   ;;  %s8322_s3 = inlined_call_operand.vmem [shape: f32[32,64], index: 3, kind: input, shape index: {}]   ;;  %s8323_s4 = inlined_call_operand.vmem [shape: f32[192,128], index: 4, kind: input, shape index: {}]   ;;  %s8324_s5 = inlined_call_operand.vmem [shape: f32[128,192], index: 5, kind: input, shape index: {}]   ;;  %s8325_s6 = inlined_call_operand.vmem [shape: f32[192,128], index: 6, kind: input, shape index: {}]   ;;  %s8326_s7 = inlined_call_operand.hbm [shape: f32[128,128], index: 7, kind: input, shape index: {}]   ;;  %s8327_s8 = inlined_call_operand.vmem [shape: f32[1,768], index: 8, kind: input, shape index: {}]   ;;  %s8328_s9 = inlined_call_operand.hbm [shape: f32[1,128], index: 9, kind: output, shape index: {}]  }
   0x1   :  { %15 = vsyncpa [#allocation6], 0 }
   0x2   :  { %16 = vsyncpa [#allocation4], 0  ;;  %s5850_s30 = smov [#allocation5]   ;;  %s5851_s11 = smov [#allocation2]  }
   0x3   :  { %s33_s10 = sshll.u32 %s5850_s30, 4  ;;  %s23_s12 = sshll.u32 %s5851_s11, 4  ;;  %s34_s10 = int_to_ptr.vmem [resolvable:$true] %s33_s10  ;;  %s24_s12 = int_to_ptr.vmem [resolvable:$true] %s23_s12 }
   0x4   :  { %s5772_s13 = scalar_lea.vmem %s34_s10, 128  ;;  %p5777_p1 = scmp.lt.s32.totalorder %s34_s10, %s34_s10 }
   0x5   :  { %p5773_p0 = scmp.ne.s32.totalorder %s34_s10, %s5772_s13  ;;  %p5778_p2 = scmp.lt.s32.totalorder %s5772_s13, %s5772_s13 }
   0x7   :  { %p5779_p3 = por %p5778_p2, %p5777_p1 }
   0x9   :  { %p5780_p4 = pnand %p5779_p3, %p5773_p0 }
   0xb   :  { %5783 = shalt.err (!%p5780_p4)
}
   0xc   :  { %36 = dma.hbm_to_vmem [thread:$0]  %s8320_s1, 128, %s34_s10, [#allocation6]  }
   0xd   :  { %s5792_s16 = scalar_lea.vmem %s24_s12, 128  ;;  %p5797_p6 = scmp.lt.s32.totalorder %s24_s12, %s24_s12 }
   0xe   :  { %p5793_p5 = scmp.ne.s32.totalorder %s24_s12, %s5792_s16  ;;  %p5798_p7 = scmp.lt.s32.totalorder %s5792_s16, %s5792_s16 }
  0x10   :  { %p5799_p8 = por %p5798_p7, %p5797_p6 }
  0x12   :  { %p5800_p9 = pnand %p5799_p8, %p5793_p5 }
  0x14   :  { %5803 = shalt.err (!%p5800_p9)
}
  0x15   :  { %26 = dma.hbm_to_vmem [thread:$0]  %s8319_s0, 128, %s24_s12, [#allocation3]  }
  0x16   :  { %s5852_s19 = smov [#allocation7]  }
  0x17   :  { %s52_s20 = sshll.u32 %s5852_s19, 4  ;;  %s53_s20 = int_to_ptr.vmem [resolvable:$true] %s52_s20 }
  0x18   :  { %s5812_s21 = scalar_lea.vmem %s53_s20, 2048  ;;  %p5817_p11 = scmp.lt.s32.totalorder %s53_s20, %s53_s20 }
  0x19   :  { %p5813_p10 = scmp.ne.s32.totalorder %s53_s20, %s5812_s21  ;;  %p5818_p12 = scmp.lt.s32.totalorder %s5812_s21, %s5812_s21 }
  0x1b   :  { %p5819_p13 = por %p5818_p12, %p5817_p11 }
  0x1d   :  { %p5820_p0 = pnand %p5819_p13, %p5813_p10 }
  0x1f   :  { %5823 = shalt.err (!%p5820_p0)
}
  0x20   :  { %s5853_s1 = smov 128   ;;  %s5854_s22 = smov 8  }
  0x21   :  { %58 = dma.hbm_to_vmem [thread:$0]  %s8326_s7, 2048, %s53_s20, [#allocation6], %s5853_s1, %s5853_s1, %s5854_s22  }
  0x22   :  { %5844 = dma.done.wait [#allocation3], 128  }
  0x23   :  { %5845 = vsyncadd [#allocation3], 4294967168 }
  0x24   :  { %5846 = dma.done.wait [#allocation6], 2176  }
  0x25   :  { %5847 = vsyncadd [#allocation6], 4294965120  ;;  %v8348_v0 = vmov 0.0   ;;  %vm5856_vm0 = vmmov 0   ;;  %vm84_vm1 = vcmask 261120   ;;  %v77_v1 = vld [vmem:[%s8321_s2 + $0x18] sm:$0xff] }
  0x26   :  { %5070 = vmatprep.subr.mxu0 %v8348_v0  ;;  %5081 = vmatprep.subr.mxu1 %v8348_v0  ;;  %v76_v2 = vld [vmem:[%s8321_s2 + $0x10] sm:$0xff]  ;;  %v75_v3 = vld [vmem:[%s8321_s2 + $0x8] sm:$0xff]  ;;  %v5936_v4 = vand.u32 4294901760, %v77_v1  ;;  %v74_v7 = vld [vmem:[%s8321_s2] sm:$0xff]  ;;  %s5857_s11 = smov 96   ;;  %vm578_vm2 = vcmask 257024  }
  0x27   :  { %5078 = vmatprep.mubr.msk.f32.mxu0 %vm5856_vm0, %v8348_v0  ;;  %5089 = vmatprep.mubr.msk.f32.mxu1 %vm5856_vm0, %v8348_v0  ;;  %v5938_v5 = vand.u32 4294901760, %v76_v2  ;;  %v5940_v6 = vand.u32 4294901760, %v75_v3  ;;  %v70_v8 = vld [vmem:[#allocation2] sm:$0xff]  ;;  %v5945_v9 = vand.u32 4294901760, %v74_v7  ;;  %vm590_vm3 = vcmask 261124   ;;  %s5858_s12 = smov 64  }
  0x28   :  { %v86_v10 = vsel %vm84_vm1, %v70_v8, 0  ;;  %5071 = vmatpush3.msra.mxu0 %v5936_v4  ;;  %v193_v11 = vsub.f32 %v77_v1, %v5936_v4  ;;  %v4749_v35 = vld [vmem:[%s8327_s8] ss:$0 sm:$0xff]  ;;  %v5859_v60 = vmov 0   ;;  %vm1178_vm4 = vcmask 523264   ;;  %s5861_s23 = smov [#allocation8]  }
  0x29   :  { %v5950_v12 = vand.u32 4294901760, %v86_v10  ;;  %v200_v13 = vsub.f32 %v76_v2, %v5938_v5  ;;  %v207_v14 = vsub.f32 %v75_v3, %v5940_v6  ;;  %5072 = vmatprep.subr.mxu0 %v8348_v0  ;;  %v214_v15 = vsub.f32 %v74_v7, %v5945_v9  ;;  %5748 = vset.pattern.permute.xlu1 %v5859_v60  ;;  %s4739_s24 = sshll.u32 %s5861_s23, 4  ;;  %s4740_s24 = int_to_ptr.vmem [resolvable:$true] %s4739_s24 }
  0x2a   :  { %5073 = vmatpush3.msra.mxu0 %v5938_v5  ;;  %v194_v16 = vand.u32 4294901760, %v193_v11  ;;  %5749 = vset.pattern.permute.xlu0 %v5859_v60  ;;  %vm2360_vm5 = vcmask 1043456   ;;  %s5824_s0 = scalar_lea.vmem %s4740_s24, 16  ;;  %p5829_p2 = scmp.lt.s32.totalorder %s4740_s24, %s4740_s24 }
  0x2b   :  { %v158_v17 = vsub.f32 %v86_v10, %v5950_v12  ;;  %v201_v18 = vand.u32 4294901760, %v200_v13  ;;  %v208_v19 = vand.u32 4294901760, %v207_v14  ;;  %5074 = vmatprep.subr.mxu0 %v8348_v0  ;;  %v215_v20 = vand.u32 4294901760, %v214_v15  ;;  %p5825_p1 = scmp.ne.s32.totalorder %s4740_s24, %s5824_s0 }
  0x2c   :  { %5075 = vmatpush3.msra.mxu0 %v5940_v6  ;;  %v195_v21 = vsub.f32 %v193_v11, %v194_v16 }
  0x2d   :  { %v159_v22 = vand.u32 4294901760, %v158_v17  ;;  %v202_v23 = vsub.f32 %v200_v13, %v201_v18  ;;  %v209_v24 = vsub.f32 %v207_v14, %v208_v19  ;;  %5076 = vmatprep.subr.mxu0 %v8348_v0  ;;  %v216_v28 = vsub.f32 %v214_v15, %v215_v20 }
  0x2e   :  { %5077 = vmatpush3.msra.mxu0 %v5945_v9  ;;  %v196_v25 = vand.u32 4294901760, %v195_v21 }
  0x2f   :  { %v160_v26 = vsub.f32 %v158_v17, %v159_v22  ;;  %v203_v27 = vand.u32 4294901760, %v202_v23  ;;  %5092 = vmatprep.subr.mxu0 %v8348_v0  ;;  %v210_v30 = vand.u32 4294901760, %v209_v24  ;;  %v217_v31 = vand.u32 4294901760, %v216_v28  ;;  %v657_v23 = vld [vmem:[%s8322_s3 + $0x18] sm:$0xff]  ;;  %v656_v24 = vld [vmem:[%s8322_s3 + $0x10] sm:$0xff] }
  0x30   :  { %5082 = vmatpush3.msra.mxu1 %v196_v25  ;;  %v655_v25 = vld [vmem:[%s8322_s3 + $0x8] sm:$0xff] }
  0x31   :  { %v161_v29 = vand.u32 4294901760, %v160_v26  ;;  %5083 = vmatprep.subr.mxu1 %v8348_v0  ;;  %v6028_v26 = vand.u32 4294901760, %v657_v23  ;;  %v6032_v28 = vand.u32 4294901760, %v655_v25 }
  0x32   :  { %5084 = vmatpush3.msra.mxu1 %v203_v27  ;;  %v6030_v27 = vand.u32 4294901760, %v656_v24 }
  0x33   :  { %5079 = vmatmul.mubr.f32.vlgmr.msra.gmra.mxu0 %v161_v29  ;;  %5085 = vmatprep.subr.mxu1 %v8348_v0 }
  0x34   :  { %5093 = vmatpush3.msra.mxu0 %v193_v11  ;;  %5086 = vmatpush3.msra.mxu1 %v210_v30  ;;  %v72_v11 = vld [vmem:[#allocation5 + $0x4] sm:$0xf] }
  0x35   :  { %5094 = vmatprep.subr.mxu0 %v8348_v0  ;;  %5087 = vmatprep.subr.mxu1 %v8348_v0 }
  0x36   :  { %5095 = vmatpush3.msra.mxu0 %v200_v13  ;;  %5088 = vmatpush3.msra.mxu1 %v217_v31  ;;  %v6035_v31 = vsub.f32 %v657_v23, %v6028_v26 }
  0x37   :  { %5096 = vmatprep.subr.mxu0 %v8348_v0  ;;  %5090 = vmatmul.mubr.f32.vlgmr.msra.gmra.mxu1 %v5950_v12 }
  0x38   :  { %5097 = vmatpush3.msra.mxu0 %v207_v14  ;;  %5103 = vmatprep.subr.mxu1 %v8348_v0 }
  0x39   :  { %5098 = vmatprep.subr.mxu0 %v8348_v0  ;;  %5104 = vmatpush3.msra.mxu1 %v5936_v4 }
  0x3a   :  { %5099 = vmatpush3.msra.mxu0 %v214_v15  ;;  %5100 = vmatprep.mubr.msk.f32.mxu0 %vm5856_vm0, %v8348_v0 }
  0x3b   :  { %5105 = vmatprep.subr.mxu1 %v8348_v0  ;;  %5114 = vmatprep.subr.mxu0 %v8348_v0 }
  0x3c   :  { %5101 = vmatmul.mubr.f32.vlgmr.msra.gmra.mxu0 %v158_v17  ;;  %5106 = vmatpush3.msra.mxu1 %v5938_v5 }
  0x3d   :  { %5115 = vmatpush3.msra.mxu0 %v194_v16  ;;  %5107 = vmatprep.subr.mxu1 %v8348_v0 }
  0x3e   :  { %5116 = vmatprep.subr.mxu0 %v8348_v0  ;;  %5108 = vmatpush3.msra.mxu1 %v5940_v6 }
  0x3f   :  { %5117 = vmatpush3.msra.mxu0 %v201_v18  ;;  %5109 = vmatprep.subr.mxu1 %v8348_v0 }
  0x40   :  { %5118 = vmatprep.subr.mxu0 %v8348_v0  ;;  %5110 = vmatpush3.msra.mxu1 %v5945_v9 }
  0x41   :  { %5111 = vmatprep.mubr.msk.f32.mxu1 %vm5856_vm0, %v8348_v0  ;;  %5119 = vmatpush3.msra.mxu0 %v208_v19 }
  0x42   :  { %5112 = vmatmul.mubr.f32.vlgmr.msra.gmra.mxu1 %v159_v22  ;;  %5120 = vmatprep.subr.mxu0 %v8348_v0 }
  0x43   :  { %5125 = vmatprep.subr.mxu1 %v8348_v0  ;;  %5121 = vmatpush3.msra.mxu0 %v215_v20 }
  0x44   :  { %5122 = vmatprep.mubr.msk.f32.mxu0 %vm5856_vm0, %v8348_v0  ;;  %5126 = vmatpush3.msra.mxu1 %v5936_v4 }
  0x45   :  { %5123 = vmatmul.mubr.f32.vlgmr.msra.gmra.mxu0 %v5950_v12  ;;  %5127 = vmatprep.subr.mxu1 %v8348_v0 }
  0x46   :  { %5133 = vmatprep.mubr.msk.f32.mxu1 %vm5856_vm0, %v8348_v0  ;;  %5128 = vmatpush3.msra.mxu1 %v5938_v5 }
  0x47   :  { %5136 = vmatprep.subr.mxu0 %v8348_v0  ;;  %5129 = vmatprep.subr.mxu1 %v8348_v0 }
  0x48   :  { %5144 = vmatprep.mubr.msk.f32.mxu0 %vm5856_vm0, %v8348_v0  ;;  %5130 = vmatpush3.msra.mxu1 %v5940_v6 }
  0x49   :  { %5131 = vmatprep.subr.mxu1 %v8348_v0  ;;  %5137 = vmatpush3.msra.mxu0 %v6028_v26 }
  0x4a   :  { %5132 = vmatpush3.msra.mxu1 %v5945_v9  ;;  %5138 = vmatprep.subr.mxu0 %v8348_v0 }
  0x4b   :  { %5134 = vmatmul.mubr.f32.vlgmr.msra.gmra.mxu1 %v5950_v12  ;;  %5147 = vmatprep.subr.mxu1 %v8348_v0 }
  0x4c   :  { %5155 = vmatprep.mubr.msk.f32.mxu1 %vm5856_vm0, %v8348_v0  ;;  %5139 = vmatpush3.msra.mxu0 %v6030_v27 }
  0x4d   :  { %5140 = vmatprep.subr.mxu0 %v8348_v0 }
  0x4e   :  { %5141 = vmatpush3.msra.mxu0 %v6032_v28 }
  0x4f   :  { %5142 = vmatprep.subr.mxu0 %v8348_v0 }
  0xf3   :  { %v163_v32 = vpop.f32.mrf.mxu0 }
  0xf4   :  { %v164_v38 = vadd.f32 %v4749_v35, %v163_v32  ;;  %v6038_v32 = vsub.f32 %v656_v24, %v6030_v27 }
  0xf5   :  { %v5080_v33 = vpop.f32.mrf.mxu0 }
  0xf6   :  { %v6041_v33 = vsub.f32 %v655_v25, %v6032_v28 }
  0xf7   :  { %v254_v34 = vpop.f32.mrf.mxu1 }
  0xf8   :  { %v255_v40 = vadd.f32 %v254_v34, %v164_v38  ;;  %v789_v38 = vand.u32 4294901760, %v6041_v33 }
  0xf9   :  { %v5091_v36 = vpop.f32.mrf.mxu1 }
  0xfa   :  { %v775_v36 = vand.u32 4294901760, %v6035_v31 }
  0xfc   :  { %v334_v37 = vpop.f32.mrf.mxu0 }
  0xfd   :  { %v335_v43 = vadd.f32 %v334_v37, %v255_v40  ;;  %v782_v37 = vand.u32 4294901760, %v6038_v32  ;;  %v776_v40 = vsub.f32 %v6035_v31, %v775_v36 }
  0xfe   :  { %v5102_v39 = vpop.f32.mrf.mxu0 }
 0x102   :  { %v411_v41 = vpop.f32.mrf.mxu1 }
 0x103   :  { %v412_v45 = vadd.f32 %v411_v41, %v335_v43  ;;  %v783_v41 = vsub.f32 %v6038_v32, %v782_v37  ;;  %v777_v43 = vand.u32 4294901760, %v776_v40 }
 0x104   :  { %v5113_v42 = vpop.f32.mrf.mxu1 }
 0x105   :  { %v494_v44 = vpop.f32.mrf.mxu0  ;;  %v790_v42 = vsub.f32 %v6041_v33, %v789_v38  ;;  %5148 = vmatpush3.msra.mxu1 %v777_v43 }
 0x106   :  { %v495_v47 = vadd.f32 %v494_v44, %v412_v45  ;;  %v784_v44 = vand.u32 4294901760, %v783_v41  ;;  %5149 = vmatprep.subr.mxu1 %v8348_v0 }
 0x107   :  { %v5124_v46 = vpop.f32.mrf.mxu0  ;;  %v791_v45 = vand.u32 4294901760, %v790_v42 }
 0x108   :  { %5150 = vmatpush3.msra.mxu1 %v784_v44  ;;  %v1170_v44 = vld [vmem:[%s8323_s4 + $0x80] sm:$0xff] }
 0x109   :  { %5151 = vmatprep.subr.mxu1 %v8348_v0 }
 0x10a   :  { %5152 = vmatpush3.msra.mxu1 %v791_v45 }
 0x10b   :  { %v569_v48 = vpop.f32.mrf.mxu1  ;;  %5153 = vmatprep.subr.mxu1 %v8348_v0 }
 0x10c   :  { %v6009_v49 = vadd.f32 %v569_v48, %v495_v47 }
 0x10d   :  { %v5135_v50 = vpop.f32.mrf.mxu1 }
 0x10e   :  { %574 = vrot.lane.b32.xlu0 %v6009_v49, %s5857_s11  ;;  %v582_v51 = vrot.slane %v6009_v49, 4 }
 0x112   :  { %583 = vrot.lane.b32.xlu0 %v582_v51, %s5857_s11 }
 0x180   :  { %v575_v52 = vpop.permute.xlu0 %574 }
 0x181   :  { %v577_v53 = vmul.f32 %v575_v52, %v6009_v49 }
 0x183   :  { %v579_v54 = vsel %vm578_vm2, %v577_v53, 0.0  ;;  %v594_v58 = vsel %vm590_vm3, %v577_v53, 0.0  ;;  %v654_v53 = vld [vmem:[%s8322_s3] sm:$0xff] }
 0x184   :  { %580 = vadd.xlane.f32.xlu0 %v579_v54  ;;  %v584_v55 = vpop.permute.xlu0 %583  ;;  %v703_v54 = vand.u32 4294901760, %v654_v53 }
 0x185   :  { %v586_v56 = vmul.f32 %v584_v55, %v6009_v49 }
 0x186   :  { %v6069_v55 = vsub.f32 %v654_v53, %v703_v54  ;;  %5143 = vmatpush3.msra.mxu0 %v703_v54 }
 0x187   :  { %v591_v57 = vsel %vm590_vm3, %v586_v56, 0.0  ;;  %v587_v59 = vsel %vm578_vm2, %v586_v56, 0.0  ;;  %5158 = vmatprep.subr.mxu0 %v8348_v0 }
 0x188   :  { %592 = vadd.xlane.f32.xlu1 %v591_v57  ;;  %v796_v56 = vand.u32 4294901760, %v6069_v55  ;;  %v5860_v57 = vmov 839922192  }
 0x18c   :  { %595 = vadd.xlane.f32.xlu1 %v594_v58  ;;  %v646_v58 = vunpack.c.l.s4 %v5860_v57 }
 0x19d   :  { %605 = vrot.lane.b32.xlu1 %v582_v51, %s5858_s12 }
 0x1c1   :  { %588 = vadd.xlane.f32.xlu1 %v587_v59  ;;  %v648_v59 = vlaneseq }
 0x20d   :  { %v581_v12 = vpop.xlane.xlu0 %580 }
 0x211   :  { %v593_v61 = vpop.xlane.xlu1 %592 }
 0x215   :  { %v596_v62 = vpop.xlane.xlu1 %595 }
 0x216   :  { %v617_v63 = vmax.f32 %v593_v61, %v596_v62 }
 0x218   :  { %v618_v1 = vsub.f32 %v593_v61, %v617_v63  ;;  %v621_v2 = vsub.f32 %v596_v62, %v617_v63  ;;  %v647_v61 = vunpack.c.0.s8 %v646_v58  ;;  %v6074_v62 = vshrl.u32 %v648_v59, 7 }
 0x219   :  { %v606_v6 = vpop.permute.xlu1 %605 }
 0x21a   :  { %v619_v3 = vmul.f32 1.442695, %v618_v1  ;;  %v622_v4 = vmul.f32 1.442695, %v621_v2  ;;  %8442 = vst [vmem:[#allocation12_spill] sm:$0xff] %v6074_v62  ;;  %v650_v63 = vsub.s32 %v647_v61, %v6074_v62 }
 0x21c   :  { %5750 = vpow2.f32 %v619_v3 }
 0x21d   :  { %5752 = vpow2.f32 %v622_v4 }
 0x229   :  { %v5751_v5 = vpop.eup %5750 }
 0x22a   :  { %v5753_v7 = vpop.eup %5752  ;;  %v624_v8 = vmul.f32 %v5751_v5, %v606_v6 }
 0x22b   :  { %v631_v9 = vadd.f32 %v5753_v7, %v5751_v5  ;;  %v625_v10 = vmul.f32 %v5753_v7, %v6009_v49 }
 0x22d   :  { %627 = vrot.lane.b32.xlu1 %v625_v10, %s5858_s12 }
 0x231   :  { %642 = vperm.xlu1 %5748, %v72_v11  }
 0x24a   :  { %v589_v13 = vpop.xlane.xlu1 %588 }
 0x24b   :  { %v597_v14 = vmax.f32 %v581_v12, %v589_v13 }
 0x24d   :  { %v598_v15 = vsub.f32 %v581_v12, %v597_v14  ;;  %v601_v16 = vsub.f32 %v589_v13, %v597_v14  ;;  %v1177_v12 = vld [vmem:[%s8323_s4 + $0xb8] sm:$0xff]  ;;  %v1176_v14 = vld [vmem:[%s8323_s4 + $0xb0] sm:$0xff] }
 0x24e   :  { %v6127_v13 = vand.u32 4294901760, %v1177_v12 }
 0x24f   :  { %v599_v17 = vmul.f32 1.442695, %v598_v15  ;;  %v602_v18 = vmul.f32 1.442695, %v601_v16  ;;  %v6135_v16 = vand.u32 4294901760, %v1176_v14 }
 0x250   :  { %v6133_v15 = vsub.f32 %v1177_v12, %v6127_v13 }
 0x251   :  { %5754 = vpow2.f32 %v599_v17  ;;  %v1175_v17 = vld [vmem:[%s8323_s4 + $0xa8] sm:$0xff] }
 0x252   :  { %5756 = vpow2.f32 %v602_v18  ;;  %v1284_v18 = vand.u32 4294901760, %v6133_v15 }
 0x253   :  { %5758 = vrcp.f32 %v631_v9 }
 0x25e   :  { %v5755_v19 = vpop.eup %5754 }
 0x25f   :  { %v5757_v20 = vpop.eup %5756  ;;  %v604_v47 = vmul.f32 %v5755_v19, %v6009_v49  ;;  %v797_v49 = vsub.f32 %v6069_v55, %v796_v56 }
 0x260   :  { %v614_v21 = vadd.f32 %v5757_v20, %v5755_v19  ;;  %v608_v22 = vmul.f32 %v5757_v20, %v606_v6  ;;  %v5759_v34 = vpop.eup %5758  ;;  %v6144_v19 = vsub.f32 %v1176_v14, %v6135_v16  ;;  %v6146_v20 = vand.u32 4294901760, %v1175_v17 }
 0x261   :  { %v798_v60 = vand.u32 4294901760, %v797_v49 }
 0x262   :  { %610 = vrot.lane.b32.xlu1 %v608_v22, %s5858_s12  ;;  %5760 = vrcp.f32 %v614_v21  ;;  %v1174_v21 = vld [vmem:[%s8323_s4 + $0xa0] sm:$0xff]  ;;  %v1285_v22 = vsub.f32 %v6133_v15, %v1284_v18  ;;  %v1291_v23 = vand.u32 4294901760, %v6144_v19  ;;  %v6158_v24 = vsub.f32 %v1175_v17, %v6146_v20 }
 0x263   :  { %5154 = vmatpush3.msra.mxu1 %v798_v60  ;;  %v6160_v25 = vand.u32 4294901760, %v1174_v21 }
 0x264   :  { %5169 = vmatprep.subr.mxu1 %v8348_v0 }
 0x26f   :  { %v5761_v51 = vpop.eup %5760 }
 0x29f   :  { %v628_v29 = vpop.permute.xlu1 %627 }
 0x2a0   :  { %v630_v30 = vadd.f32 %v628_v29, %v624_v8  ;;  %v1298_v29 = vand.u32 4294901760, %v6158_v24 }
 0x2a2   :  { %v633_v35 = vmul.f32 %v5759_v34, %v630_v30  ;;  %v6172_v30 = vsub.f32 %v1174_v21, %v6160_v25  ;;  %v1299_v34 = vsub.f32 %v6158_v24, %v1298_v29 }
 0x2a4   :  { %v635_v39 = vrot.slane %v633_v35, 4  ;;  %v1305_v35 = vand.u32 4294901760, %v6172_v30 }
 0x2a6   :  { %636 = vrot.lane.b32.xlu0 %v635_v39, %s5858_s12  ;;  %v1300_v39 = vand.u32 4294901760, %v1299_v34  ;;  %v1306_v40 = vsub.f32 %v6172_v30, %v1305_v35 }
 0x2a8   :  { %v1307_v45 = vand.u32 4294901760, %v1306_v40 }
 0x2ac   :  { %v643_v46 = vpop.permute.xlu1 %642 }
 0x2ad   :  { %v651_v2 = vrot.slane %v643_v46, %v650_v63 }
 0x2d4   :  { %v611_v48 = vpop.permute.xlu1 %610 }
 0x2d5   :  { %v613_v50 = vadd.f32 %v611_v48, %v604_v47  ;;  %v6214_v48 = vand.u32 4294901760, %v1170_v44 }
 0x2d7   :  { %v616_v52 = vmul.f32 %v5761_v51, %v613_v50  ;;  %v6227_v53 = vsub.f32 %v1170_v44, %v6214_v48  ;;  %v1167_v44 = vld [vmem:[%s8323_s4 + $0x68] sm:$0xff] }
 0x2d9   :  { %v1333_v57 = vand.u32 4294901760, %v6227_v53 }
 0x2db   :  { %v1334_v59 = vsub.f32 %v6227_v53, %v1333_v57 }
 0x2dd   :  { %v1335_v49 = vand.u32 4294901760, %v1334_v59  ;;  %v1163_v59 = vld [vmem:[%s8323_s4 + $0x48] sm:$0xff] }
 0x318   :  { %v637_v1 = vpop.permute.xlu0 %636 }
 0x319   :  { %v639_v3 = vadd.f32 %v637_v1, %v616_v52 }
 0x31b   :  { %v652_v4 = vmul.f32 %v651_v2, %v639_v3 }
 0x31d   :  { %665 = vrot.lane.b32.xlu1 %v652_v4, %s5858_s12  ;;  %v4750_v4 = vld [vmem:[%s8327_s8 + $0x1] ss:$0 sm:$0xff] }
 0x38f   :  { %v666_v5 = vpop.permute.xlu1 %665 }
 0x390   :  { %v667_v6 = vsel %vm84_vm1, %v666_v5, 0 }
 0x391   :  { %v738_v7 = vand.u32 4294901760, %v667_v6 }
 0x393   :  { %v739_v8 = vsub.f32 %v667_v6, %v738_v7  ;;  %5156 = vmatmul.mubr.f32.vlgmr.msra.gmra.mxu1 %v738_v7 }
 0x394   :  { %5170 = vmatpush3.msra.mxu1 %v6028_v26  ;;  %5177 = vmatprep.mubr.msk.f32.mxu1 %vm5856_vm0, %v8348_v0 }
 0x395   :  { %v740_v9 = vand.u32 4294901760, %v739_v8  ;;  %5171 = vmatprep.subr.mxu1 %v8348_v0 }
 0x396   :  { %5172 = vmatpush3.msra.mxu1 %v6030_v27 }
 0x397   :  { %v741_v10 = vsub.f32 %v739_v8, %v740_v9  ;;  %5173 = vmatprep.subr.mxu1 %v8348_v0 }
 0x398   :  { %5174 = vmatpush3.msra.mxu1 %v6032_v28 }
 0x399   :  { %v742_v11 = vand.u32 4294901760, %v741_v10  ;;  %5175 = vmatprep.subr.mxu1 %v8348_v0 }
 0x39a   :  { %5176 = vmatpush3.msra.mxu1 %v703_v54 }
 0x39b   :  { %5178 = vmatmul.mubr.f32.vlgmr.msra.gmra.mxu1 %v740_v9  ;;  %5191 = vmatprep.subr.mxu1 %v8348_v0 }
 0x39c   :  { %5145 = vmatmul.mubr.f32.vlgmr.msra.gmra.mxu0 %v742_v11  ;;  %5192 = vmatpush3.msra.mxu1 %v6028_v26  ;;  %v1173_v26 = vld [vmem:[%s8323_s4 + $0x98] sm:$0xff] }
 0x39d   :  { %5159 = vmatpush3.msra.mxu0 %v6035_v31  ;;  %5193 = vmatprep.subr.mxu1 %v8348_v0  ;;  %v6175_v31 = vand.u32 4294901760, %v1173_v26 }
 0x39e   :  { %5160 = vmatprep.subr.mxu0 %v8348_v0  ;;  %5194 = vmatpush3.msra.mxu1 %v6030_v27  ;;  %v1286_v27 = vand.u32 4294901760, %v1285_v22 }
 0x39f   :  { %5161 = vmatpush3.msra.mxu0 %v6038_v32  ;;  %5195 = vmatprep.subr.mxu1 %v8348_v0  ;;  %v1172_v32 = vld [vmem:[%s8323_s4 + $0x90] sm:$0xff] }
 0x3a0   :  { %5162 = vmatprep.subr.mxu0 %v8348_v0  ;;  %5196 = vmatpush3.msra.mxu1 %v6032_v28  ;;  %v1292_v28 = vsub.f32 %v6144_v19, %v1291_v23 }
 0x3a1   :  { %5163 = vmatpush3.msra.mxu0 %v6041_v33  ;;  %5197 = vmatprep.subr.mxu1 %v8348_v0 }
 0x3a2   :  { %5164 = vmatprep.subr.mxu0 %v8348_v0  ;;  %5166 = vmatprep.mubr.msk.f32.mxu0 %vm5856_vm0, %v8348_v0  ;;  %v1293_v33 = vand.u32 4294901760, %v1292_v28 }
 0x3a3   :  { %5165 = vmatpush3.msra.mxu0 %v6069_v55  ;;  %5198 = vmatpush3.msra.mxu1 %v703_v54 }
 0x3a4   :  { %5199 = vmatprep.mubr.msk.f32.mxu1 %vm5856_vm0, %v8348_v0  ;;  %5167 = vmatmul.mubr.f32.vlgmr.msra.gmra.mxu0 %v739_v8 }
 0x3a5   :  { %5180 = vmatprep.subr.mxu0 %v8348_v0  ;;  %5200 = vmatmul.mubr.f32.vlgmr.msra.gmra.mxu1 %v738_v7 }
 0x3a6   :  { %5181 = vmatpush3.msra.mxu0 %v775_v36  ;;  %5188 = vmatprep.mubr.msk.f32.mxu0 %vm5856_vm0, %v8348_v0  ;;  %v6185_v36 = vand.u32 4294901760, %v1172_v32 }
 0x3a7   :  { %5182 = vmatprep.subr.mxu0 %v8348_v0  ;;  %5221 = vmatprep.subr.mxu1 %v8348_v0 }
 0x3a8   :  { %5183 = vmatpush3.msra.mxu0 %v782_v37  ;;  %5237 = vmatprep.mubr.msk.f32.mxu1 %vm5856_vm0, %v8348_v0  ;;  %v6189_v37 = vsub.f32 %v1173_v26, %v6175_v31  ;;  %v6199_v41 = vsub.f32 %v1172_v32, %v6185_v36 }
 0x3a9   :  { %5184 = vmatprep.subr.mxu0 %v8348_v0  ;;  %5222 = vmatpush3.msra.mxu1 %v1286_v27 }
 0x3aa   :  { %5185 = vmatpush3.msra.mxu0 %v789_v38  ;;  %5223 = vmatprep.subr.mxu1 %v8348_v0  ;;  %v1171_v38 = vld [vmem:[%s8323_s4 + $0x88] sm:$0xff]  ;;  %v1312_v43 = vand.u32 4294901760, %v6189_v37  ;;  %v1319_v46 = vand.u32 4294901760, %v6199_v41 }
 0x3ab   :  { %5186 = vmatprep.subr.mxu0 %v8348_v0  ;;  %5224 = vmatpush3.msra.mxu1 %v1293_v33  ;;  %v6201_v42 = vand.u32 4294901760, %v1171_v38 }
 0x3ac   :  { %5187 = vmatpush3.msra.mxu0 %v796_v56  ;;  %5225 = vmatprep.subr.mxu1 %v8348_v0  ;;  %v1313_v50 = vsub.f32 %v6189_v37, %v1312_v43  ;;  %v1320_v51 = vsub.f32 %v6199_v41, %v1319_v46 }
 0x3ad   :  { %5189 = vmatmul.mubr.f32.vlgmr.msra.gmra.mxu0 %v738_v7  ;;  %5202 = vmatprep.subr.mxu0 %v8348_v0  ;;  %v6212_v47 = vsub.f32 %v1171_v38, %v6201_v42  ;;  %v1169_v38 = vld [vmem:[%s8323_s4 + $0x78] sm:$0xff] }
 0x3ae   :  { %5218 = vmatprep.mubr.msk.f32.mxu0 %vm5856_vm0, %v8348_v0  ;;  %5203 = vmatpush3.msra.mxu0 %v6127_v13  ;;  %v1314_v54 = vand.u32 4294901760, %v1313_v50  ;;  %v1321_v55 = vand.u32 4294901760, %v1320_v51  ;;  %v6285_v40 = vand.u32 4294901760, %v1169_v38  ;;  %v6303_v50 = vand.u32 4294901760, %v1167_v44  ;;  %v1166_v51 = vld [vmem:[%s8323_s4 + $0x60] sm:$0xff] }
 0x3af   :  { %5204 = vmatprep.subr.mxu0 %v8348_v0  ;;  %5226 = vmatpush3.msra.mxu1 %v1300_v39  ;;  %v1326_v52 = vand.u32 4294901760, %v6212_v47  ;;  %v1168_v39 = vld [vmem:[%s8323_s4 + $0x70] sm:$0xff] }
 0x3b0   :  { %5205 = vmatpush3.msra.mxu0 %v6135_v16  ;;  %5227 = vmatprep.subr.mxu1 %v8348_v0 }
 0x3b1   :  { %5206 = vmatprep.subr.mxu0 %v8348_v0  ;;  %5228 = vmatpush3.msra.mxu1 %v1307_v45  ;;  %v1327_v56 = vsub.f32 %v6212_v47, %v1326_v52  ;;  %v6294_v45 = vand.u32 4294901760, %v1168_v39 }
 0x3b2   :  { %5207 = vmatpush3.msra.mxu0 %v6146_v20  ;;  %5229 = vmatprep.subr.mxu1 %v8348_v0 }
 0x3b3   :  { %5208 = vmatprep.subr.mxu0 %v8348_v0  ;;  %5230 = vmatpush3.msra.mxu1 %v1314_v54  ;;  %v1328_v58 = vand.u32 4294901760, %v1327_v56  ;;  %v1165_v54 = vld [vmem:[%s8323_s4 + $0x58] sm:$0xff] }
 0x3b4   :  { %5209 = vmatpush3.msra.mxu0 %v6160_v25  ;;  %5231 = vmatprep.subr.mxu1 %v8348_v0 }
 0x3b5   :  { %5210 = vmatprep.subr.mxu0 %v8348_v0  ;;  %5232 = vmatpush3.msra.mxu1 %v1321_v55  ;;  %v6321_v55 = vand.u32 4294901760, %v1166_v51 }
 0x3b6   :  { %5211 = vmatpush3.msra.mxu0 %v6175_v31  ;;  %5233 = vmatprep.subr.mxu1 %v8348_v0 }
 0x3b7   :  { %5212 = vmatprep.subr.mxu0 %v8348_v0  ;;  %5234 = vmatpush3.msra.mxu1 %v1328_v58  ;;  %v6329_v58 = vsub.f32 %v1167_v44, %v6303_v50 }
 0x3b8   :  { %5213 = vmatpush3.msra.mxu0 %v6185_v36  ;;  %5235 = vmatprep.subr.mxu1 %v8348_v0 }
 0x3b9   :  { %5214 = vmatprep.subr.mxu0 %v8348_v0  ;;  %5236 = vmatpush3.msra.mxu1 %v1335_v49 }
 0x3ba   :  { %5215 = vmatpush3.msra.mxu0 %v6201_v42  ;;  %5259 = vmatprep.subr.mxu1 %v8348_v0 }
 0x3bb   :  { %5216 = vmatprep.subr.mxu0 %v8348_v0 }
 0x3bc   :  { %5217 = vmatpush3.msra.mxu0 %v6214_v48 }
 0x3bd   :  { %5240 = vmatprep.subr.mxu0 %v8348_v0 }
 0x453   :  { %v835_v60 = vpop.f32.mrf.mxu1 }
 0x455   :  { %v5157_v61 = vpop.f32.mrf.mxu1 }
 0x456   :  { %v6356_v61 = vand.u32 4294901760, %v1163_v59 }
 0x45b   :  { %v992_v63 = vpop.f32.mrf.mxu1 }
 0x45c   :  { %v744_v1 = vpop.f32.mrf.mxu0 }
 0x45d   :  { %v5179_v2 = vpop.f32.mrf.mxu1  ;;  %v745_v5 = vadd.f32 %v4750_v4, %v744_v1  ;;  %v1161_v1 = vld [vmem:[%s8323_s4 + $0x38] sm:$0xff] }
 0x45e   :  { %v5146_v3 = vpop.f32.mrf.mxu0 }
 0x45f   :  { %v836_v8 = vadd.f32 %v835_v60, %v745_v5  ;;  %v6391_v3 = vsub.f32 %v1163_v59, %v6356_v61 }
 0x464   :  { %v915_v6 = vpop.f32.mrf.mxu0 }
 0x465   :  { %v1150_v7 = vpop.f32.mrf.mxu1  ;;  %v916_v11 = vadd.f32 %v915_v6, %v836_v8  ;;  %v1159_v6 = vld [vmem:[%s8323_s4 + $0x28] sm:$0xff] }
 0x466   :  { %v5168_v9 = vpop.f32.mrf.mxu0 }
 0x467   :  { %v5201_v10 = vpop.f32.mrf.mxu1  ;;  %v993_v12 = vadd.f32 %v992_v63, %v916_v11  ;;  %v1855_v9 = vand.u32 4294901760, %v6391_v3 }
 0x468   :  { %v1158_v10 = vld [vmem:[%s8323_s4 + $0x20] sm:$0xff] }
 0x46d   :  { %v1075_v14 = vpop.f32.mrf.mxu0 }
 0x46e   :  { %v1076_v17 = vadd.f32 %v1075_v14, %v993_v12  ;;  %v1157_v14 = vld [vmem:[%s8323_s4 + $0x18] sm:$0xff] }
 0x46f   :  { %v5190_v21 = vpop.f32.mrf.mxu0 }
 0x470   :  { %v1151_v22 = vadd.f32 %v1150_v7, %v1076_v17 }
 0x472   :  { %v1180_v26 = vsel %vm1178_vm4, %v1151_v22, 0 }
 0x473   :  { %v6248_v27 = vand.u32 4294901760, %v1180_v26 }
 0x475   :  { %v1256_v28 = vsub.f32 %v1180_v26, %v6248_v27  ;;  %5238 = vmatmul.mubr.f32.vlgmr.msra.gmra.mxu1 %v6248_v27  ;;  %v1156_v26 = vld [vmem:[%s8323_s4 + $0x10] sm:$0xff] }
 0x476   :  { %5260 = vmatpush3.msra.mxu1 %v6127_v13  ;;  %5275 = vmatprep.mubr.msk.f32.mxu1 %vm5856_vm0, %v8348_v0  ;;  %v6480_v44 = vand.u32 4294901760, %v1156_v26 }
 0x477   :  { %5261 = vmatprep.subr.mxu1 %v8348_v0  ;;  %v1257_v32 = vand.u32 4294901760, %v1256_v28 }
 0x478   :  { %5262 = vmatpush3.msra.mxu1 %v6135_v16 }
 0x479   :  { %5263 = vmatprep.subr.mxu1 %v8348_v0  ;;  %v1258_v33 = vsub.f32 %v1256_v28, %v1257_v32 }
 0x47a   :  { %5264 = vmatpush3.msra.mxu1 %v6146_v20 }
 0x47b   :  { %5265 = vmatprep.subr.mxu1 %v8348_v0  ;;  %v1259_v34 = vand.u32 4294901760, %v1258_v33 }
 0x47c   :  { %5266 = vmatpush3.msra.mxu1 %v6160_v25 }
 0x47d   :  { %5267 = vmatprep.subr.mxu1 %v8348_v0  ;;  %5219 = vmatmul.mubr.f32.vlgmr.msra.gmra.mxu0 %v1259_v34  ;;  %v1155_v34 = vld [vmem:[%s8323_s4 + $0x8] sm:$0xff] }
 0x47e   :  { %5241 = vmatpush3.msra.mxu0 %v6133_v15  ;;  %5268 = vmatpush3.msra.mxu1 %v6175_v31  ;;  %v6348_v15 = vsub.f32 %v1166_v51, %v6321_v55 }
 0x47f   :  { %5242 = vmatprep.subr.mxu0 %v8348_v0  ;;  %5269 = vmatprep.subr.mxu1 %v8348_v0 }
 0x480   :  { %5243 = vmatpush3.msra.mxu0 %v6144_v19  ;;  %5270 = vmatpush3.msra.mxu1 %v6185_v36  ;;  %v1162_v19 = vld [vmem:[%s8323_s4 + $0x40] sm:$0xff] }
 0x481   :  { %5244 = vmatprep.subr.mxu0 %v8348_v0  ;;  %5271 = vmatprep.subr.mxu1 %v8348_v0 }
 0x482   :  { %5245 = vmatpush3.msra.mxu0 %v6158_v24  ;;  %5272 = vmatpush3.msra.mxu1 %v6201_v42  ;;  %v1834_v24 = vand.u32 4294901760, %v6348_v15 }
 0x483   :  { %5246 = vmatprep.subr.mxu0 %v8348_v0  ;;  %5273 = vmatprep.subr.mxu1 %v8348_v0 }
 0x484   :  { %5247 = vmatpush3.msra.mxu0 %v6172_v30  ;;  %5274 = vmatpush3.msra.mxu1 %v6214_v48  ;;  %v1160_v30 = vld [vmem:[%s8323_s4 + $0x30] sm:$0xff]  ;;  %v1835_v7 = vsub.f32 %v6348_v15, %v1834_v24 }
 0x485   :  { %5248 = vmatprep.subr.mxu0 %v8348_v0  ;;  %5276 = vmatmul.mubr.f32.vlgmr.msra.gmra.mxu1 %v1257_v32 }
 0x486   :  { %5297 = vmatprep.subr.mxu1 %v8348_v0  ;;  %5249 = vmatpush3.msra.mxu0 %v6189_v37  ;;  %v1836_v17 = vand.u32 4294901760, %v1835_v7 }
 0x487   :  { %5298 = vmatpush3.msra.mxu1 %v6127_v13  ;;  %5250 = vmatprep.subr.mxu0 %v8348_v0  ;;  %v6301_v13 = vsub.f32 %v1169_v38, %v6285_v40 }
 0x488   :  { %5299 = vmatprep.subr.mxu1 %v8348_v0  ;;  %5251 = vmatpush3.msra.mxu0 %v6199_v41  ;;  %v6433_v41 = vand.u32 4294901760, %v1159_v6 }
 0x489   :  { %5300 = vmatpush3.msra.mxu1 %v6135_v16  ;;  %5252 = vmatprep.subr.mxu0 %v8348_v0  ;;  %v6313_v16 = vsub.f32 %v1168_v39, %v6294_v45  ;;  %v1813_v56 = vand.u32 4294901760, %v6301_v13 }
 0x48a   :  { %5301 = vmatprep.subr.mxu1 %v8348_v0  ;;  %5253 = vmatpush3.msra.mxu0 %v6212_v47  ;;  %v6449_v47 = vand.u32 4294901760, %v1158_v10  ;;  %v6463_v33 = vsub.f32 %v1159_v6, %v6433_v41 }
 0x48b   :  { %5302 = vmatpush3.msra.mxu1 %v6146_v20  ;;  %5254 = vmatprep.subr.mxu0 %v8348_v0  ;;  %v1164_v20 = vld [vmem:[%s8323_s4 + $0x50] sm:$0xff]  ;;  %v1820_v49 = vand.u32 4294901760, %v6313_v16 }
 0x48c   :  { %5303 = vmatprep.subr.mxu1 %v8348_v0  ;;  %5255 = vmatpush3.msra.mxu0 %v6227_v53  ;;  %v6342_v60 = vand.u32 4294901760, %v1164_v20  ;;  %v6465_v53 = vand.u32 4294901760, %v1157_v14  ;;  %v6478_v39 = vsub.f32 %v1158_v10, %v6449_v47  ;;  %v71_v10 = vld [vmem:[#allocation5] sm:$0xf] }
 0x48d   :  { %5256 = vmatprep.mubr.msk.f32.mxu0 %vm5856_vm0, %v8348_v0  ;;  %5304 = vmatpush3.msra.mxu1 %v6160_v25  ;;  %v6334_v25 = vand.u32 4294901760, %v1165_v54 }
 0x48e   :  { %5257 = vmatmul.mubr.f32.vlgmr.msra.gmra.mxu0 %v1256_v28  ;;  %5278 = vmatprep.subr.mxu0 %v8348_v0  ;;  %v6373_v63 = vsub.f32 %v1164_v20, %v6342_v60  ;;  %v1883_v20 = vand.u32 4294901760, %v6463_v33  ;;  %v6490_v59 = vsub.f32 %v1157_v14, %v6465_v53 }
 0x48f   :  { %5305 = vmatprep.subr.mxu1 %v8348_v0  ;;  %5279 = vmatpush3.msra.mxu0 %v1284_v18  ;;  %v1814_v18 = vsub.f32 %v6301_v13, %v1813_v56 }
 0x490   :  { %5306 = vmatpush3.msra.mxu1 %v6175_v31  ;;  %5280 = vmatprep.subr.mxu0 %v8348_v0  ;;  %v1827_v31 = vand.u32 4294901760, %v6329_v58  ;;  %v1848_v5 = vand.u32 4294901760, %v6373_v63  ;;  %v1884_v6 = vsub.f32 %v6463_v33, %v1883_v20  ;;  %v1897_v7 = vand.u32 4294901760, %v6490_v59 }
 0x491   :  { %5307 = vmatprep.subr.mxu1 %v8348_v0  ;;  %5281 = vmatpush3.msra.mxu0 %v1291_v23  ;;  %v6365_v23 = vsub.f32 %v1165_v54, %v6334_v25 }
 0x492   :  { %5308 = vmatpush3.msra.mxu1 %v6185_v36  ;;  %5282 = vmatprep.subr.mxu0 %v8348_v0  ;;  %v1821_v36 = vsub.f32 %v6313_v16, %v1820_v49  ;;  %v1828_v2 = vsub.f32 %v6329_v58, %v1827_v31 }
 0x493   :  { %5309 = vmatprep.subr.mxu1 %v8348_v0  ;;  %5283 = vmatpush3.msra.mxu0 %v1298_v29  ;;  %v6382_v29 = vand.u32 4294901760, %v1162_v19 }
 0x494   :  { %5310 = vmatpush3.msra.mxu1 %v6201_v42  ;;  %5284 = vmatprep.subr.mxu0 %v8348_v0  ;;  %v1815_v42 = vand.u32 4294901760, %v1814_v18  ;;  %v1822_v4 = vand.u32 4294901760, %v1821_v36  ;;  %v1829_v8 = vand.u32 4294901760, %v1828_v2  ;;  %v6492_v18 = vand.u32 4294901760, %v1155_v34 }
 0x495   :  { %5311 = vmatprep.subr.mxu1 %v8348_v0  ;;  %5285 = vmatpush3.msra.mxu0 %v1305_v35  ;;  %v1841_v35 = vand.u32 4294901760, %v6365_v23  ;;  %v6415_v37 = vsub.f32 %v1162_v19, %v6382_v29  ;;  %v1154_v19 = vld [vmem:[%s8323_s4] sm:$0xff]  ;;  %v6505_v2 = vsub.f32 %v1156_v26, %v6480_v44  ;;  %v1898_v26 = vsub.f32 %v6490_v59, %v1897_v7 }
 0x496   :  { %5312 = vmatpush3.msra.mxu1 %v6214_v48  ;;  %5313 = vmatprep.mubr.msk.f32.mxu1 %vm5856_vm0, %v8348_v0  ;;  %v6399_v48 = vand.u32 4294901760, %v1161_v1 }
 0x497   :  { %5286 = vmatprep.subr.mxu0 %v8348_v0  ;;  %5314 = vmatmul.mubr.f32.vlgmr.msra.gmra.mxu1 %v6248_v27  ;;  %v1842_v11 = vsub.f32 %v6365_v23, %v1841_v35  ;;  %v1862_v21 = vand.u32 4294901760, %v6415_v37  ;;  %v1904_v14 = vand.u32 4294901760, %v6505_v2 }
 0x498   :  { %5287 = vmatpush3.msra.mxu0 %v1312_v43  ;;  %5294 = vmatprep.mubr.msk.f32.mxu0 %vm5856_vm0, %v8348_v0  ;;  %v6417_v43 = vand.u32 4294901760, %v1160_v30  ;;  %v6431_v12 = vsub.f32 %v1161_v1, %v6399_v48 }
 0x499   :  { %5288 = vmatprep.subr.mxu0 %v8348_v0  ;;  %5351 = vmatprep.subr.mxu1 %v8348_v0  ;;  %v1843_v28 = vand.u32 4294901760, %v1842_v11 }
 0x49a   :  { %5289 = vmatpush3.msra.mxu0 %v1319_v46  ;;  %5352 = vmatpush3.msra.mxu1 %v1815_v42  ;;  %v1849_v46 = vsub.f32 %v6373_v63, %v1848_v5  ;;  %v6447_v22 = vsub.f32 %v1160_v30, %v6417_v43  ;;  %v1869_v32 = vand.u32 4294901760, %v6431_v12  ;;  %v1890_v42 = vand.u32 4294901760, %v6478_v39 }
 0x49b   :  { %5290 = vmatprep.subr.mxu0 %v8348_v0  ;;  %5353 = vmatprep.subr.mxu1 %v8348_v0  ;;  %v6509_v30 = vand.u32 4294901760, %v1154_v19 }
 0x49c   :  { %5291 = vmatpush3.msra.mxu0 %v1326_v52  ;;  %5354 = vmatpush3.msra.mxu1 %v1822_v4  ;;  %v1856_v52 = vsub.f32 %v6391_v3, %v1855_v9  ;;  %v1876_v38 = vand.u32 4294901760, %v6447_v22  ;;  %v1870_v54 = vsub.f32 %v6431_v12, %v1869_v32 }
 0x49d   :  { %5292 = vmatprep.subr.mxu0 %v8348_v0  ;;  %5355 = vmatprep.subr.mxu1 %v8348_v0 }
 0x49e   :  { %5293 = vmatpush3.msra.mxu0 %v1333_v57  ;;  %5356 = vmatpush3.msra.mxu1 %v1829_v8  ;;  %v1850_v57 = vand.u32 4294901760, %v1849_v46  ;;  %v1857_v51 = vand.u32 4294901760, %v1856_v52  ;;  %v1877_v1 = vsub.f32 %v6447_v22, %v1876_v38  ;;  %v1871_v4 = vand.u32 4294901760, %v1870_v54 }
 0x49f   :  { %5295 = vmatmul.mubr.f32.vlgmr.msra.gmra.mxu0 %v6248_v27  ;;  %5316 = vmatprep.subr.mxu0 %v8348_v0  ;;  %v1863_v27 = vsub.f32 %v6415_v37, %v1862_v21  ;;  %v6517_v8 = vsub.f32 %v1155_v34, %v6492_v18  ;;  %v1891_v46 = vsub.f32 %v6478_v39, %v1890_v42  ;;  %v1885_v52 = vand.u32 4294901760, %v1884_v6 }
 0x4a0   :  { %5317 = vmatpush3.msra.mxu0 %v6285_v40  ;;  %5357 = vmatprep.subr.mxu1 %v8348_v0  ;;  %v1878_v11 = vand.u32 4294901760, %v1877_v1  ;;  %v1899_v54 = vand.u32 4294901760, %v1898_v26 }
 0x4a1   :  { %5318 = vmatprep.subr.mxu0 %v8348_v0  ;;  %5358 = vmatpush3.msra.mxu1 %v1836_v17  ;;  %v1864_v36 = vand.u32 4294901760, %v1863_v27  ;;  %v6529_v17 = vsub.f32 %v1154_v19, %v6509_v30  ;;  %v1892_v34 = vand.u32 4294901760, %v1891_v46  ;;  %v1905_v27 = vsub.f32 %v6505_v2, %v1904_v14 }
 0x4a2   :  { %5319 = vmatpush3.msra.mxu0 %v6294_v45  ;;  %5359 = vmatprep.subr.mxu1 %v8348_v0 }
 0x4a3   :  { %5320 = vmatprep.subr.mxu0 %v8348_v0  ;;  %5360 = vmatpush3.msra.mxu1 %v1843_v28  ;;  %v1911_v28 = vand.u32 4294901760, %v6517_v8  ;;  %v1906_v1 = vand.u32 4294901760, %v1905_v27 }
 0x4a4   :  { %5321 = vmatpush3.msra.mxu0 %v6303_v50  ;;  %5361 = vmatprep.subr.mxu1 %v8348_v0 }
 0x4a5   :  { %5322 = vmatprep.subr.mxu0 %v8348_v0  ;;  %5362 = vmatpush3.msra.mxu1 %v1850_v57  ;;  %v6536_v57 = vand.u32 4294901760, %v71_v10  ;;  %v1912_v19 = vsub.f32 %v6517_v8, %v1911_v28 }
 0x4a6   :  { %5323 = vmatpush3.msra.mxu0 %v6321_v55  ;;  %5363 = vmatprep.subr.mxu1 %v8348_v0 }
 0x4a7   :  { %5324 = vmatprep.subr.mxu0 %v8348_v0  ;;  %5364 = vmatpush3.msra.mxu1 %v1857_v51  ;;  %v1918_v51 = vand.u32 4294901760, %v6529_v17  ;;  %v1913_v6 = vand.u32 4294901760, %v1912_v19 }
 0x4a8   :  { %5325 = vmatpush3.msra.mxu0 %v6334_v25  ;;  %5365 = vmatprep.subr.mxu1 %v8348_v0 }
 0x4a9   :  { %5326 = vmatprep.subr.mxu0 %v8348_v0  ;;  %5366 = vmatpush3.msra.mxu1 %v1864_v36  ;;  %v6552_v36 = vsub.f32 %v71_v10, %v6536_v57 }
 0x4aa   :  { %5327 = vmatpush3.msra.mxu0 %v6342_v60  ;;  %5367 = vmatprep.subr.mxu1 %v8348_v0 }
 0x4ab   :  { %5328 = vmatprep.subr.mxu0 %v8348_v0  ;;  %5368 = vmatpush3.msra.mxu1 %v1871_v4  ;;  %v1919_v4 = vsub.f32 %v6529_v17, %v1918_v51  ;;  %v1802_v10 = vand.u32 4294901760, %v6552_v36 }
 0x4ac   :  { %5329 = vmatpush3.msra.mxu0 %v6356_v61  ;;  %5369 = vmatprep.subr.mxu1 %v8348_v0 }
 0x4ad   :  { %5330 = vmatprep.subr.mxu0 %v8348_v0  ;;  %5370 = vmatpush3.msra.mxu1 %v1878_v11  ;;  %v1920_v11 = vand.u32 4294901760, %v1919_v4  ;;  %v1803_v46 = vsub.f32 %v6552_v36, %v1802_v10 }
 0x4ae   :  { %5331 = vmatpush3.msra.mxu0 %v6382_v29  ;;  %5371 = vmatprep.subr.mxu1 %v8348_v0 }
 0x4af   :  { %5332 = vmatprep.subr.mxu0 %v8348_v0  ;;  %5372 = vmatpush3.msra.mxu1 %v1885_v52  ;;  %v1804_v52 = vand.u32 4294901760, %v1803_v46 }
 0x4b0   :  { %5333 = vmatpush3.msra.mxu0 %v6399_v48  ;;  %5373 = vmatprep.subr.mxu1 %v8348_v0 }
 0x4b1   :  { %5334 = vmatprep.subr.mxu0 %v8348_v0  ;;  %5374 = vmatpush3.msra.mxu1 %v1892_v34  ;;  %v2400_v34 = vld [vmem:[%s8324_s5 + $0xc0] sm:$0xff] }
 0x4b2   :  { %5335 = vmatpush3.msra.mxu0 %v6417_v43  ;;  %5375 = vmatprep.subr.mxu1 %v8348_v0 }
 0x4b3   :  { %5336 = vmatprep.subr.mxu0 %v8348_v0  ;;  %5376 = vmatpush3.msra.mxu1 %v1899_v54 }
 0x4b4   :  { %5337 = vmatpush3.msra.mxu0 %v6433_v41  ;;  %5377 = vmatprep.subr.mxu1 %v8348_v0 }
 0x4b5   :  { %5338 = vmatprep.subr.mxu0 %v8348_v0  ;;  %5378 = vmatpush3.msra.mxu1 %v1906_v1 }
 0x4b6   :  { %5339 = vmatpush3.msra.mxu0 %v6449_v47  ;;  %5379 = vmatprep.subr.mxu1 %v8348_v0 }
 0x4b7   :  { %5340 = vmatprep.subr.mxu0 %v8348_v0  ;;  %5380 = vmatpush3.msra.mxu1 %v1913_v6  ;;  %v6806_v6 = vand.u32 4294901760, %v2400_v34 }
 0x4b8   :  { %5341 = vmatpush3.msra.mxu0 %v6465_v53  ;;  %5381 = vmatprep.subr.mxu1 %v8348_v0 }
 0x4b9   :  { %5342 = vmatprep.subr.mxu0 %v8348_v0  ;;  %5348 = vmatprep.mubr.msk.f32.mxu0 %vm5856_vm0, %v8348_v0 }
 0x4ba   :  { %5343 = vmatpush3.msra.mxu0 %v6480_v44  ;;  %5382 = vmatpush3.msra.mxu1 %v1920_v11 }
 0x4bb   :  { %5344 = vmatprep.subr.mxu0 %v8348_v0  ;;  %5383 = vmatprep.mubr.msk.f32.mxu1 %vm5856_vm0, %v8348_v0 }
 0x4bc   :  { %5345 = vmatpush3.msra.mxu0 %v6492_v18  ;;  %5421 = vmatprep.subr.mxu1 %v8348_v0 }
 0x4bd   :  { %5346 = vmatprep.subr.mxu0 %v8348_v0  ;;  %5384 = vmatmul.mubr.f32.vlgmr.msra.gmra.mxu1 %v6536_v57 }
 0x4be   :  { %5347 = vmatpush3.msra.mxu0 %v6509_v30  ;;  %5422 = vmatpush3.msra.mxu1 %v6285_v40 }
 0x4bf   :  { %5349 = vmatmul.mubr.f32.vlgmr.msra.gmra.mxu0 %v1804_v52  ;;  %5386 = vmatprep.subr.mxu0 %v8348_v0 }
 0x4c0   :  { %5387 = vmatpush3.msra.mxu0 %v6301_v13  ;;  %5423 = vmatprep.subr.mxu1 %v8348_v0 }
 0x4c1   :  { %5388 = vmatprep.subr.mxu0 %v8348_v0  ;;  %5424 = vmatpush3.msra.mxu1 %v6294_v45 }
 0x4c2   :  { %5389 = vmatpush3.msra.mxu0 %v6313_v16  ;;  %5425 = vmatprep.subr.mxu1 %v8348_v0 }
 0x4c3   :  { %5390 = vmatprep.subr.mxu0 %v8348_v0  ;;  %5426 = vmatpush3.msra.mxu1 %v6303_v50 }
 0x4c4   :  { %5391 = vmatpush3.msra.mxu0 %v6329_v58  ;;  %5427 = vmatprep.subr.mxu1 %v8348_v0 }
 0x4c5   :  { %5392 = vmatprep.subr.mxu0 %v8348_v0  ;;  %5428 = vmatpush3.msra.mxu1 %v6321_v55 }
 0x4c6   :  { %5393 = vmatpush3.msra.mxu0 %v6348_v15  ;;  %5429 = vmatprep.subr.mxu1 %v8348_v0 }
 0x4c7   :  { %5394 = vmatprep.subr.mxu0 %v8348_v0  ;;  %5430 = vmatpush3.msra.mxu1 %v6334_v25 }
 0x4c8   :  { %5395 = vmatpush3.msra.mxu0 %v6365_v23  ;;  %5431 = vmatprep.subr.mxu1 %v8348_v0 }
 0x4c9   :  { %5396 = vmatprep.subr.mxu0 %v8348_v0  ;;  %5432 = vmatpush3.msra.mxu1 %v6342_v60 }
 0x4ca   :  { %5397 = vmatpush3.msra.mxu0 %v6373_v63  ;;  %5433 = vmatprep.subr.mxu1 %v8348_v0 }
 0x4cb   :  { %5398 = vmatprep.subr.mxu0 %v8348_v0  ;;  %5434 = vmatpush3.msra.mxu1 %v6356_v61 }
 0x4cc   :  { %5399 = vmatpush3.msra.mxu0 %v6391_v3  ;;  %5435 = vmatprep.subr.mxu1 %v8348_v0 }
 0x4cd   :  { %5400 = vmatprep.subr.mxu0 %v8348_v0  ;;  %5436 = vmatpush3.msra.mxu1 %v6382_v29 }
 0x4ce   :  { %5401 = vmatpush3.msra.mxu0 %v6415_v37  ;;  %5437 = vmatprep.subr.mxu1 %v8348_v0 }
 0x4cf   :  { %5402 = vmatprep.subr.mxu0 %v8348_v0  ;;  %5438 = vmatpush3.msra.mxu1 %v6399_v48 }
 0x4d0   :  { %5403 = vmatpush3.msra.mxu0 %v6431_v12  ;;  %5439 = vmatprep.subr.mxu1 %v8348_v0 }
 0x4d1   :  { %5404 = vmatprep.subr.mxu0 %v8348_v0  ;;  %5440 = vmatpush3.msra.mxu1 %v6417_v43 }
 0x4d2   :  { %5405 = vmatpush3.msra.mxu0 %v6447_v22  ;;  %5441 = vmatprep.subr.mxu1 %v8348_v0 }
 0x4d3   :  { %5406 = vmatprep.subr.mxu0 %v8348_v0  ;;  %5442 = vmatpush3.msra.mxu1 %v6433_v41 }
 0x4d4   :  { %5407 = vmatpush3.msra.mxu0 %v6463_v33  ;;  %5443 = vmatprep.subr.mxu1 %v8348_v0 }
 0x4d5   :  { %5408 = vmatprep.subr.mxu0 %v8348_v0  ;;  %5444 = vmatpush3.msra.mxu1 %v6449_v47 }
 0x4d6   :  { %5409 = vmatpush3.msra.mxu0 %v6478_v39  ;;  %5445 = vmatprep.subr.mxu1 %v8348_v0 }
 0x4d7   :  { %5410 = vmatprep.subr.mxu0 %v8348_v0  ;;  %5446 = vmatpush3.msra.mxu1 %v6465_v53 }
 0x4d8   :  { %5411 = vmatpush3.msra.mxu0 %v6490_v59  ;;  %5447 = vmatprep.subr.mxu1 %v8348_v0  ;;  %v2406_v59 = vld [vmem:[%s8324_s5 + $0xf0] sm:$0xff] }
 0x4d9   :  { %5412 = vmatprep.subr.mxu0 %v8348_v0  ;;  %5448 = vmatpush3.msra.mxu1 %v6480_v44 }
 0x4da   :  { %5413 = vmatpush3.msra.mxu0 %v6505_v2  ;;  %5449 = vmatprep.subr.mxu1 %v8348_v0  ;;  %v6760_v2 = vand.u32 4294901760, %v2406_v59 }
 0x4db   :  { %5414 = vmatprep.subr.mxu0 %v8348_v0  ;;  %5450 = vmatpush3.msra.mxu1 %v6492_v18 }
 0x4dc   :  { %5415 = vmatpush3.msra.mxu0 %v6517_v8  ;;  %5451 = vmatprep.subr.mxu1 %v8348_v0  ;;  %v2403_v8 = vld [vmem:[%s8324_s5 + $0xd8] sm:$0xff] }
 0x4dd   :  { %5416 = vmatprep.subr.mxu0 %v8348_v0  ;;  %5418 = vmatprep.mubr.msk.f32.mxu0 %vm5856_vm0, %v8348_v0  ;;  %v6775_v26 = vand.u32 4294901760, %v2403_v8 }
 0x4de   :  { %5417 = vmatpush3.msra.mxu0 %v6529_v17  ;;  %5452 = vmatpush3.msra.mxu1 %v6509_v30 }
 0x4df   :  { %5419 = vmatmul.mubr.f32.vlgmr.msra.gmra.mxu0 %v6552_v36  ;;  %5453 = vmatprep.mubr.msk.f32.mxu1 %vm5856_vm0, %v8348_v0  ;;  %v6801_v1 = vsub.f32 %v2403_v8, %v6775_v26 }
 0x4e0   :  { %5456 = vmatprep.subr.mxu0 %v8348_v0  ;;  %5491 = vmatprep.subr.mxu1 %v8348_v0 }
 0x4e1   :  { %5454 = vmatmul.mubr.f32.vlgmr.msra.gmra.mxu1 %v1802_v10  ;;  %5457 = vmatpush3.msra.mxu0 %v1813_v56 }
 0x4e2   :  { %5492 = vmatpush3.msra.mxu1 %v6285_v40  ;;  %5458 = vmatprep.subr.mxu0 %v8348_v0 }
 0x4e3   :  { %5493 = vmatprep.subr.mxu1 %v8348_v0  ;;  %5459 = vmatpush3.msra.mxu0 %v1820_v49 }
 0x4e4   :  { %5494 = vmatpush3.msra.mxu1 %v6294_v45  ;;  %5460 = vmatprep.subr.mxu0 %v8348_v0 }
 0x4e5   :  { %5495 = vmatprep.subr.mxu1 %v8348_v0  ;;  %5461 = vmatpush3.msra.mxu0 %v1827_v31 }
 0x4e6   :  { %5496 = vmatpush3.msra.mxu1 %v6303_v50  ;;  %5462 = vmatprep.subr.mxu0 %v8348_v0 }
 0x4e7   :  { %5497 = vmatprep.subr.mxu1 %v8348_v0  ;;  %5463 = vmatpush3.msra.mxu0 %v1834_v24 }
 0x4e8   :  { %5498 = vmatpush3.msra.mxu1 %v6321_v55  ;;  %5464 = vmatprep.subr.mxu0 %v8348_v0 }
 0x4e9   :  { %5499 = vmatprep.subr.mxu1 %v8348_v0  ;;  %5465 = vmatpush3.msra.mxu0 %v1841_v35 }
 0x4ea   :  { %5500 = vmatpush3.msra.mxu1 %v6334_v25  ;;  %5466 = vmatprep.subr.mxu0 %v8348_v0 }
 0x4eb   :  { %5501 = vmatprep.subr.mxu1 %v8348_v0  ;;  %5467 = vmatpush3.msra.mxu0 %v1848_v5 }
 0x4ec   :  { %5502 = vmatpush3.msra.mxu1 %v6342_v60  ;;  %5468 = vmatprep.subr.mxu0 %v8348_v0 }
 0x4ed   :  { %5503 = vmatprep.subr.mxu1 %v8348_v0  ;;  %5469 = vmatpush3.msra.mxu0 %v1855_v9 }
 0x4ee   :  { %5504 = vmatpush3.msra.mxu1 %v6356_v61  ;;  %5470 = vmatprep.subr.mxu0 %v8348_v0 }
 0x4ef   :  { %5505 = vmatprep.subr.mxu1 %v8348_v0  ;;  %5471 = vmatpush3.msra.mxu0 %v1862_v21 }
 0x4f0   :  { %5506 = vmatpush3.msra.mxu1 %v6382_v29  ;;  %5472 = vmatprep.subr.mxu0 %v8348_v0 }
 0x4f1   :  { %5507 = vmatprep.subr.mxu1 %v8348_v0  ;;  %5473 = vmatpush3.msra.mxu0 %v1869_v32 }
 0x4f2   :  { %5508 = vmatpush3.msra.mxu1 %v6399_v48  ;;  %5474 = vmatprep.subr.mxu0 %v8348_v0 }
 0x4f3   :  { %5509 = vmatprep.subr.mxu1 %v8348_v0  ;;  %5475 = vmatpush3.msra.mxu0 %v1876_v38 }
 0x4f4   :  { %5510 = vmatpush3.msra.mxu1 %v6417_v43  ;;  %5476 = vmatprep.subr.mxu0 %v8348_v0 }
 0x4f5   :  { %5511 = vmatprep.subr.mxu1 %v8348_v0  ;;  %5477 = vmatpush3.msra.mxu0 %v1883_v20  ;;  %v2407_v20 = vld [vmem:[%s8324_s5 + $0xf8] sm:$0xff] }
 0x4f6   :  { %5512 = vmatpush3.msra.mxu1 %v6433_v41  ;;  %5478 = vmatprep.subr.mxu0 %v8348_v0 }
 0x4f7   :  { %5513 = vmatprep.subr.mxu1 %v8348_v0  ;;  %5479 = vmatpush3.msra.mxu0 %v1890_v42  ;;  %v6758_v42 = vand.u32 4294901760, %v2407_v20 }
 0x4f8   :  { %5514 = vmatpush3.msra.mxu1 %v6449_v47  ;;  %5480 = vmatprep.subr.mxu0 %v8348_v0 }
 0x4f9   :  { %5515 = vmatprep.subr.mxu1 %v8348_v0  ;;  %5481 = vmatpush3.msra.mxu0 %v1897_v7  ;;  %v2404_v7 = vld [vmem:[%s8324_s5 + $0xe0] sm:$0xff]  ;;  %v6786_v27 = vsub.f32 %v2407_v20, %v6758_v42 }
 0x4fa   :  { %5516 = vmatpush3.msra.mxu1 %v6465_v53  ;;  %5482 = vmatprep.subr.mxu0 %v8348_v0  ;;  %v6773_v17 = vand.u32 4294901760, %v2404_v7 }
 0x4fb   :  { %5517 = vmatprep.subr.mxu1 %v8348_v0  ;;  %5483 = vmatpush3.msra.mxu0 %v1904_v14  ;;  %v2402_v14 = vld [vmem:[%s8324_s5 + $0xd0] sm:$0xff]  ;;  %8443 = vst [vmem:[#allocation13_spill] sm:$0xff] %v6786_v27  ;;  %v8347_v10 = vand.u32 4294901760, %v6786_v27 }
 0x4fc   :  { %5518 = vmatpush3.msra.mxu1 %v6480_v44  ;;  %5484 = vmatprep.subr.mxu0 %v8348_v0  ;;  %v6798_v36 = vsub.f32 %v2404_v7, %v6773_v17 }
 0x4fd   :  { %5519 = vmatprep.subr.mxu1 %v8348_v0  ;;  %5485 = vmatpush3.msra.mxu0 %v1911_v28  ;;  %v6777_v28 = vand.u32 4294901760, %v2402_v14 }
 0x4fe   :  { %5520 = vmatpush3.msra.mxu1 %v6492_v18  ;;  %5486 = vmatprep.subr.mxu0 %v8348_v0  ;;  %v2405_v18 = vld [vmem:[%s8324_s5 + $0xe8] sm:$0xff] }
 0x4ff   :  { %5521 = vmatprep.subr.mxu1 %v8348_v0  ;;  %5487 = vmatpush3.msra.mxu0 %v1918_v51  ;;  %v6789_v51 = vsub.f32 %v2406_v59, %v6760_v2  ;;  %v6804_v4 = vsub.f32 %v2402_v14, %v6777_v28 }
 0x500   :  { %5488 = vmatprep.mubr.msk.f32.mxu0 %vm5856_vm0, %v8348_v0  ;;  %5522 = vmatpush3.msra.mxu1 %v6509_v30  ;;  %v6762_v30 = vand.u32 4294901760, %v2405_v18 }
 0x501   :  { %5523 = vmatprep.mubr.msk.f32.mxu1 %vm5856_vm0, %v8348_v0  ;;  %5489 = vmatmul.mubr.f32.vlgmr.msra.gmra.mxu0 %v6536_v57  ;;  %v8346_v11 = vand.u32 4294901760, %v6789_v51 }
 0x502   :  { %5524 = vmatmul.mubr.f32.vlgmr.msra.gmra.mxu1 %v6536_v57  ;;  %2515 = vmatprep.mubr.f32.mxu0 %v8348_v0  ;;  %v2401_v57 = vld [vmem:[%s8324_s5 + $0xc8] sm:$0xff]  ;;  %v6792_v54 = vsub.f32 %v2405_v18, %v6762_v30 }
 0x503   :  { %2751 = vmatprep.mubr.f32.mxu1 %v8348_v0  ;;  %v6794_v19 = vand.u32 4294901760, %v2401_v57  ;;  %2420 = vmatprep.subr.mxu0 %v6758_v42 }
 0x504   :  { %2422 = vmatpush1.msra.mxu0 %v6760_v2  ;;  %v8344_v46 = vand.u32 4294901760, %v6792_v54 }
 0x505   :  { %v6813_v52 = vsub.f32 %v2401_v57, %v6794_v19  ;;  %2424 = vmatprep.subr.mxu0 %v6762_v30 }
 0x506   :  { %2426 = vmatpush1.msra.mxu0 %v6773_v17 }
 0x507   :  { %2428 = vmatprep.subr.mxu0 %v6775_v26 }
 0x508   :  { %2430 = vmatpush1.msra.mxu0 %v6777_v28 }
 0x509   :  { %2432 = vmatprep.subr.mxu0 %v6794_v19 }
 0x50a   :  { %2434 = vmatpush1.msra.mxu0 %v6806_v6 }
 0x535   :  { %v1372_v40 = vpop.f32.mrf.mxu1 }
 0x537   :  { %v5239_v45 = vpop.f32.mrf.mxu1 }
 0x538   :  { %v8341_v45 = vand.u32 4294901760, %v6801_v1 }
 0x53d   :  { %v1261_v13 = vpop.f32.mrf.mxu0 }
 0x53e   :  { %v1373_v50 = vadd.f32 %v1372_v40, %v1261_v13  ;;  %v8343_v40 = vand.u32 4294901760, %v6798_v36  ;;  %v8339_v13 = vand.u32 4294901760, %v6804_v4 }
 0x53f   :  { %v5220_v16 = vpop.f32.mrf.mxu0 }
 0x540   :  { %v2530_v16 = vsub.f32 %v6786_v27, %v8347_v10 }
 0x545   :  { %v1541_v55 = vpop.f32.mrf.mxu1 }
 0x547   :  { %v5277_v56 = vpop.f32.mrf.mxu1 }
 0x548   :  { %v2542_v56 = vsub.f32 %v6792_v54, %v8344_v46 }
 0x54e   :  { %v1460_v58 = vpop.f32.mrf.mxu0 }
 0x54f   :  { %v1461_v25 = vadd.f32 %v1460_v58, %v1373_v50  ;;  %v6820_v50 = vsub.f32 %v2400_v34, %v6806_v6  ;;  %v8338_v58 = vand.u32 4294901760, %v6813_v52 }
 0x550   :  { %v5258_v49 = vpop.f32.mrf.mxu0 }
 0x551   :  { %v1542_v60 = vadd.f32 %v1541_v55, %v1461_v25  ;;  %v2536_v55 = vsub.f32 %v6789_v51, %v8346_v11  ;;  %v2548_v25 = vsub.f32 %v6798_v36, %v8343_v40  ;;  %v2554_v49 = vsub.f32 %v6801_v1, %v8341_v45 }
 0x557   :  { %v1715_v15 = vpop.f32.mrf.mxu1 }
 0x559   :  { %v5315_v31 = vpop.f32.mrf.mxu1 }
 0x55a   :  { %v2399_v31 = vld [vmem:[%s8324_s5 + $0xb8] sm:$0xff] }
 0x55f   :  { %v1636_v61 = vpop.f32.mrf.mxu0 }
 0x560   :  { %v1637_v23 = vadd.f32 %v1636_v61, %v1542_v60  ;;  %v2560_v60 = vsub.f32 %v6804_v4, %v8339_v13  ;;  %v2398_v61 = vld [vmem:[%s8324_s5 + $0xb0] sm:$0xff] }
 0x561   :  { %v5296_v63 = vpop.f32.mrf.mxu0 }
 0x562   :  { %v1716_v24 = vadd.f32 %v1715_v15, %v1637_v23  ;;  %v8336_v15 = vand.u32 4294901760, %v6820_v50  ;;  %v2397_v23 = vld [vmem:[%s8324_s5 + $0xa8] sm:$0xff]  ;;  %v2531_v63 = vand.u32 4294901760, %v2530_v16 }
 0x564   :  { %2532 = vmatprep.subr.mxu1 %v2531_v63 }
 0x57d   :  { %v1957_v29 = vpop.f32.mrf.mxu1 }
 0x57f   :  { %v1806_v3 = vpop.f32.mrf.mxu0  ;;  %v5385_v35 = vpop.f32.mrf.mxu1 }
 0x580   :  { %v1807_v12 = vadd.f32 %v1806_v3, %v1716_v24  ;;  %v2537_v24 = vand.u32 4294901760, %v2536_v55  ;;  %v2566_v3 = vsub.f32 %v6813_v52, %v8338_v58  ;;  %v2549_v35 = vand.u32 4294901760, %v2548_v25 }
 0x581   :  { %v5350_v48 = vpop.f32.mrf.mxu0 }
 0x582   :  { %v1958_v41 = vadd.f32 %v1957_v29, %v1807_v12  ;;  %v2543_v29 = vand.u32 4294901760, %v2542_v56  ;;  %v2572_v48 = vsub.f32 %v6820_v50, %v8336_v15  ;;  %2538 = vmatpush1.msra.mxu1 %v2537_v24  ;;  %v2561_v12 = vand.u32 4294901760, %v2560_v60  ;;  %v2396_v56 = vld [vmem:[%s8324_s5 + $0xa0] sm:$0xff] }
 0x583   :  { %v6901_v25 = vand.u32 4294901760, %v2396_v56 }
 0x584   :  { %2544 = vmatprep.subr.mxu1 %v2543_v29  ;;  %v2392_v29 = vld [vmem:[%s8324_s5 + $0x80] sm:$0xff] }
 0x585   :  { %2550 = vmatpush1.msra.mxu1 %v2549_v35 }
 0x59f   :  { %v2061_v5 = vpop.f32.mrf.mxu0 }
 0x5a0   :  { %v2062_v21 = vadd.f32 %v2061_v5, %v1958_v41  ;;  %v2555_v5 = vand.u32 4294901760, %v2554_v49  ;;  %v2567_v41 = vand.u32 4294901760, %v2566_v3  ;;  %v2395_v49 = vld [vmem:[%s8324_s5 + $0x98] sm:$0xff] }
 0x5a1   :  { %v2150_v37 = vpop.f32.mrf.mxu1  ;;  %v5420_v43 = vpop.f32.mrf.mxu0  ;;  %v6906_v60 = vand.u32 4294901760, %v2395_v49 }
 0x5a2   :  { %v2151_v22 = vadd.f32 %v2150_v37, %v2062_v21  ;;  %v6862_v37 = vand.u32 4294901760, %v2399_v31  ;;  %v6864_v43 = vand.u32 4294901760, %v2398_v61  ;;  %2556 = vmatprep.subr.mxu1 %v2555_v5  ;;  %v2391_v5 = vld [vmem:[%s8324_s5 + $0x78] sm:$0xff] }
 0x5a3   :  { %v5455_v9 = vpop.f32.mrf.mxu1  ;;  %2562 = vmatpush1.msra.mxu1 %v2561_v12  ;;  %v6921_v63 = vsub.f32 %v2395_v49, %v6906_v60 }
 0x5a4   :  { %v6866_v9 = vand.u32 4294901760, %v2397_v23  ;;  %v6869_v21 = vsub.f32 %v2399_v31, %v6862_v37  ;;  %2436 = vmatprep.subr.mxu0 %v6862_v37  ;;  %2568 = vmatprep.subr.mxu1 %v2567_v41  ;;  %v6912_v31 = vsub.f32 %v2396_v56, %v6901_v25  ;;  %v2388_v56 = vld [vmem:[%s8324_s5 + $0x60] sm:$0xff] }
 0x5a5   :  { %2438 = vmatpush1.msra.mxu0 %v6864_v43  ;;  %v8329_v12 = vand.u32 4294901760, %v6921_v63 }
 0x5a6   :  { %2440 = vmatprep.subr.mxu0 %v6866_v9  ;;  %v8330_v3 = vand.u32 4294901760, %v6912_v31 }
 0x5a7   :  { %2442 = vmatpush1.msra.mxu0 %v6901_v25 }
 0x5a8   :  { %2444 = vmatprep.subr.mxu0 %v6906_v60 }
 0x5c1   :  { %v2269_v47 = vpop.f32.mrf.mxu0 }
 0x5c2   :  { %v2270_v32 = vadd.f32 %v2269_v47, %v2151_v22  ;;  %v2356_v33 = vpop.f32.mrf.mxu1  ;;  %v6872_v22 = vsub.f32 %v2398_v61, %v6864_v43  ;;  %v6875_v47 = vsub.f32 %v2397_v23, %v6866_v9  ;;  %v2393_v23 = vld [vmem:[%s8324_s5 + $0x88] sm:$0xff] }
 0x5c3   :  { %v5490_v53 = vpop.f32.mrf.mxu0  ;;  %v6923_v24 = vand.u32 4294901760, %v2393_v23 }
 0x5c4   :  { %v6745_v38 = vadd.f32 %v2356_v33, %v2270_v32  ;;  %v5525_v39 = vpop.f32.mrf.mxu1  ;;  %v2573_v32 = vand.u32 4294901760, %v2572_v48  ;;  %v8335_v33 = vand.u32 4294901760, %v6869_v21  ;;  %v8333_v53 = vand.u32 4294901760, %v6872_v22 }
 0x5c5   :  { %v8332_v39 = vand.u32 4294901760, %v6875_v47  ;;  %v6933_v48 = vand.u32 4294901760, %v2392_v29  ;;  %v6941_v41 = vsub.f32 %v2393_v23, %v6923_v24 }
 0x5c6   :  { %v2361_v44 = vsel %vm2360_vm5, %v6745_v38, 0.0  ;;  %v2584_v20 = vsub.f32 %v6872_v22, %v8333_v53  ;;  %2574 = vmatpush1.msra.mxu1 %v2573_v32  ;;  %v6943_v32 = vand.u32 4294901760, %v2391_v5 }
 0x5c7   :  { %2362 = vadd.xlane.f32.xlu1 %v2361_v44  ;;  %v2578_v44 = vsub.f32 %v6869_v21, %v8335_v33  ;;  %v2590_v59 = vsub.f32 %v6875_v47, %v8332_v39 }
 0x5c8   :  { %v2585_v7 = vand.u32 4294901760, %v2584_v20  ;;  %v2596_v20 = vsub.f32 %v6912_v31, %v8330_v3 }
 0x5c9   :  { %v2579_v18 = vand.u32 4294901760, %v2578_v44  ;;  %v2591_v8 = vand.u32 4294901760, %v2590_v59  ;;  %v2390_v44 = vld [vmem:[%s8324_s5 + $0x70] sm:$0xff] }
 0x5ca   :  { %v2597_v49 = vand.u32 4294901760, %v2596_v20 }
 0x5cb   :  { %2580 = vmatprep.subr.mxu1 %v2579_v18  ;;  %v6954_v18 = vsub.f32 %v2392_v29, %v6933_v48 }
 0x5cc   :  { %2586 = vmatpush1.msra.mxu1 %v2585_v7  ;;  %v6956_v7 = vand.u32 4294901760, %v2390_v44 }
 0x5cd   :  { %2592 = vmatprep.subr.mxu1 %v2591_v8  ;;  %v2389_v8 = vld [vmem:[%s8324_s5 + $0x68] sm:$0xff]  ;;  %v8337_v23 = vand.u32 4294901760, %v6954_v18 }
 0x5ce   :  { %v6980_v29 = vsub.f32 %v2390_v44, %v6956_v7  ;;  %v2386_v44 = vld [vmem:[%s8324_s5 + $0x50] sm:$0xff]  ;;  %2598 = vmatpush1.msra.mxu1 %v2597_v49 }
 0x5d0   :  { %8444 = vst [vmem:[#allocation14_spill] sm:$0xff] %v6980_v29  ;;  %v8342_v53 = vand.u32 4294901760, %v6980_v29 }
 0x5d2   :  { %v2632_v13 = vsub.f32 %v6980_v29, %v8342_v53 }
 0x5d4   :  { %v2633_v40 = vand.u32 4294901760, %v2632_v13 }
 0x650   :  { %v2363_v14 = vpop.xlane.xlu1 %2362 }
 0x651   :  { %v2365_v57 = vmul.f32 0.0078125, %v2363_v14  ;;  %v2602_v14 = vsub.f32 %v6921_v63, %v8329_v12 }
 0x653   :  { %v6893_v34 = vsub.f32 %v6745_v38, %v2365_v57  ;;  %v2394_v38 = vld [vmem:[%s8324_s5 + $0x90] sm:$0xff]  ;;  %v8334_v57 = vand.u32 4294901760, %v6941_v41  ;;  %v2603_v12 = vand.u32 4294901760, %v2602_v14  ;;  %v2620_v14 = vsub.f32 %v6954_v18, %v8337_v23  ;;  %v2384_v23 = vld [vmem:[%s8324_s5 + $0x40] sm:$0xff] }
 0x654   :  { %v6914_v61 = vand.u32 4294901760, %v2394_v38  ;;  %v7043_v46 = vand.u32 4294901760, %v2384_v23 }
 0x655   :  { %v2367_v16 = vmul.f32 %v6893_v34, %v6893_v34  ;;  %v2614_v20 = vsub.f32 %v6941_v41, %v8334_v57  ;;  %v7001_v57 = vand.u32 4294901760, %v2388_v56  ;;  %2604 = vmatprep.subr.mxu1 %v2603_v12  ;;  %v2621_v58 = vand.u32 4294901760, %v2620_v14 }
 0x656   :  { %v6931_v35 = vsub.f32 %v2394_v38, %v6914_v61  ;;  %2446 = vmatpush1.msra.mxu0 %v6914_v61  ;;  %v7061_v0 = vsub.f32 %v2384_v23, %v7043_v46  ;;  %v2380_v23 = vld [vmem:[%s8324_s5 + $0x20] sm:$0xff] }
 0x657   :  { %v2368_v55 = vsel %vm2360_vm5, %v2367_v16, 0.0  ;;  %2448 = vmatprep.subr.mxu0 %v6923_v24  ;;  %v6967_v16 = vsub.f32 %v2391_v5, %v6943_v32  ;;  %v2387_v5 = vld [vmem:[%s8324_s5 + $0x58] sm:$0xff]  ;;  %v2615_v33 = vand.u32 4294901760, %v2614_v20  ;;  %v7019_v12 = vsub.f32 %v2388_v56, %v7001_v57  ;;  %v2382_v56 = vld [vmem:[%s8324_s5 + $0x30] sm:$0xff] }
 0x658   :  { %2369 = vadd.xlane.f32.xlu0 %v2368_v55  ;;  %v8331_v59 = vand.u32 4294901760, %v6931_v35  ;;  %2450 = vmatpush1.msra.mxu0 %v6933_v48  ;;  %v6969_v55 = vand.u32 4294901760, %v2389_v8  ;;  %v7021_v20 = vand.u32 4294901760, %v2386_v44  ;;  %8450 = vst [vmem:[#allocation20_spill] sm:$0xff] %v7061_v0 }
 0x659   :  { %2452 = vmatprep.subr.mxu0 %v6943_v32  ;;  %v8340_v3 = vand.u32 4294901760, %v6967_v16  ;;  %8446 = vst [vmem:[#allocation16_spill] sm:$0xff] %v7019_v12 }
 0x65a   :  { %v2608_v38 = vsub.f32 %v6931_v35, %v8331_v59  ;;  %2454 = vmatpush1.msra.mxu0 %v6956_v7  ;;  %v6991_v59 = vsub.f32 %v2389_v8, %v6969_v55  ;;  %v2385_v8 = vld [vmem:[%s8324_s5 + $0x48] sm:$0xff] }
 0x65b   :  { %2456 = vmatprep.subr.mxu0 %v6969_v55  ;;  %v2626_v15 = vsub.f32 %v6967_v16, %v8340_v3  ;;  %v2383_v3 = vld [vmem:[%s8324_s5 + $0x38] sm:$0xff]  ;;  %v7033_v53 = vand.u32 4294901760, %v2385_v8 }
 0x65c   :  { %8445 = vst [vmem:[#allocation15_spill] sm:$0xff] %v6991_v59  ;;  %v2609_v39 = vand.u32 4294901760, %v2608_v38  ;;  %v8345_v49 = vand.u32 4294901760, %v6991_v59  ;;  %v7010_v38 = vand.u32 4294901760, %v2387_v5  ;;  %2458 = vmatpush1.msra.mxu0 %v7001_v57  ;;  %v7053_v13 = vand.u32 4294901760, %v2383_v3 }
 0x65d   :  { %v2627_v45 = vand.u32 4294901760, %v2626_v15  ;;  %v7041_v15 = vsub.f32 %v2386_v44, %v7021_v20 }
 0x65e   :  { %2610 = vmatpush1.msra.mxu1 %v2609_v39  ;;  %v2638_v39 = vsub.f32 %v6991_v59, %v8345_v49  ;;  %v7031_v14 = vsub.f32 %v2387_v5, %v7010_v38  ;;  %2460 = vmatprep.subr.mxu0 %v7010_v38  ;;  %v2381_v5 = vld [vmem:[%s8324_s5 + $0x28] sm:$0xff] }
 0x65f   :  { %2616 = vmatprep.subr.mxu1 %v2615_v33  ;;  %v8350_v33 = vand.u32 4294901760, %v7019_v12  ;;  %8448 = vst [vmem:[#allocation18_spill] sm:$0xff] %v7041_v15  ;;  %2462 = vmatpush1.msra.mxu0 %v7021_v20 }
 0x660   :  { %8447 = vst [vmem:[#allocation17_spill] sm:$0xff] %v7031_v14  ;;  %2622 = vmatpush1.msra.mxu1 %v2621_v58  ;;  %v2639_v49 = vand.u32 4294901760, %v2638_v39  ;;  %v8353_v11 = vand.u32 4294901760, %v7031_v14  ;;  %v7051_v58 = vsub.f32 %v2385_v8, %v7033_v53  ;;  %2464 = vmatprep.subr.mxu0 %v7033_v53  ;;  %v7071_v39 = vsub.f32 %v2383_v3, %v7053_v13  ;;  %v2379_v3 = vld [vmem:[%s8324_s5 + $0x18] sm:$0xff] }
 0x661   :  { %2628 = vmatprep.subr.mxu1 %v2627_v45  ;;  %v2644_v44 = vsub.f32 %v7019_v12, %v8350_v33  ;;  %v7063_v45 = vand.u32 4294901760, %v2382_v56  ;;  %2466 = vmatpush1.msra.mxu0 %v7043_v46  ;;  %v7073_v33 = vand.u32 4294901760, %v2381_v5 }
 0x662   :  { %8449 = vst [vmem:[#allocation19_spill] sm:$0xff] %v7051_v58  ;;  %2634 = vmatpush1.msra.mxu1 %v2633_v40  ;;  %v2650_v8 = vsub.f32 %v7031_v14, %v8353_v11  ;;  %8452 = vst [vmem:[#allocation22_spill] sm:$0xff] %v7071_v39  ;;  %2468 = vmatprep.subr.mxu0 %v7053_v13  ;;  %v8456_v12 = vand.u32 4294901760, %v7051_v58 }
 0x663   :  { %8451 = vst [vmem:[#allocation21_spill] sm:$0xff] %v7063_v45  ;;  %2640 = vmatprep.subr.mxu1 %v2639_v49  ;;  %8453 = vst [vmem:[#allocation23_spill] sm:$0xff] %v7073_v33  ;;  %v2645_v10 = vand.u32 4294901760, %v2644_v44  ;;  %v8454_v49 = vand.u32 4294901760, %v7041_v15  ;;  %v7084_v40 = vsub.f32 %v2382_v56, %v7063_v45  ;;  %2470 = vmatpush1.msra.mxu0 %v7063_v45  ;;  %v2378_v56 = vld [vmem:[%s8324_s5 + $0x10] sm:$0xff] }
 0x664   :  { %v2651_v14 = vand.u32 4294901760, %v2650_v8  ;;  %v2662_v44 = vsub.f32 %v7051_v58, %v8456_v12  ;;  %2472 = vmatprep.subr.mxu0 %v7073_v33  ;;  %v7105_v12 = vand.u32 4294901760, %v2380_v23  ;;  %v8458_v58 = vand.u32 4294901760, %v7071_v39 }
 0x665   :  { %v2656_v62 = vsub.f32 %v7041_v15, %v8454_v49  ;;  %8455 = vst [vmem:[#allocation24_spill] sm:$0xff] %v7084_v40  ;;  %v7095_v49 = vsub.f32 %v2381_v5, %v7073_v33  ;;  %2646 = vmatpush1.msra.mxu1 %v2645_v10  ;;  %v8457_v15 = vand.u32 4294901760, %v7061_v0  ;;  %v2377_v5 = vld [vmem:[%s8324_s5 + $0x8] sm:$0xff]  ;;  %v7114_v10 = vand.u32 4294901760, %v2379_v3 }
 0x666   :  { %2652 = vmatprep.subr.mxu1 %v2651_v14  ;;  %v2663_v59 = vand.u32 4294901760, %v2662_v44  ;;  %v2674_v33 = vsub.f32 %v7071_v39, %v8458_v58  ;;  %v7123_v14 = vsub.f32 %v2380_v23, %v7105_v12  ;;  %v7125_v44 = vand.u32 4294901760, %v2378_v56  ;;  %2474 = vmatpush1.msra.mxu0 %v7105_v12 }
 0x667   :  { %v2657_v11 = vand.u32 4294901760, %v2656_v62  ;;  %v2668_v8 = vsub.f32 %v7061_v0, %v8457_v15  ;;  %v8376_v62 = vand.u32 4294901760, %v7095_v49  ;;  %v2376_v15 = vld [vmem:[%s8324_s5] sm:$0xff]  ;;  %v8459_v0 = vand.u32 4294901760, %v7084_v40  ;;  %2476 = vmatprep.subr.mxu0 %v7114_v10  ;;  %s5828_s5 = scalar_lea.vmem %s4740_s24, 32 }
 0x668   :  { %8460 = vst [vmem:[#allocation25_spill] sm:$0xff] %v7123_v14  ;;  %v2675_v58 = vand.u32 4294901760, %v2674_v33  ;;  %v8377_v23 = vand.u32 4294901760, %v7123_v14  ;;  %2478 = vmatpush1.msra.mxu0 %v7125_v44  ;;  %p5830_p3 = scmp.lt.s32.totalorder %s5828_s5, %s5824_s0 }
 0x669   :  { %2658 = vmatpush1.msra.mxu1 %v2657_v11  ;;  %v2669_v45 = vand.u32 4294901760, %v2668_v8  ;;  %v2680_v29 = vsub.f32 %v7084_v40, %v8459_v0  ;;  %v2686_v39 = vsub.f32 %v7095_v49, %v8376_v62  ;;  %v7132_v11 = vsub.f32 %v2379_v3, %v7114_v10 }
 0x66a   :  { %2664 = vmatprep.subr.mxu1 %v2663_v59  ;;  %v7134_v8 = vand.u32 4294901760, %v2377_v5  ;;  %v7139_v40 = vsub.f32 %v2378_v56, %v7125_v44  ;;  %v7141_v59 = vand.u32 4294901760, %v2376_v15  ;;  %p5831_p4 = por %p5830_p3, %p5829_p2 }
 0x66b   :  { %8461 = vst [vmem:[#allocation26_spill] sm:$0xff] %v7132_v11  ;;  %2670 = vmatpush1.msra.mxu1 %v2669_v45  ;;  %v2681_v0 = vand.u32 4294901760, %v2680_v29  ;;  %v2687_v33 = vand.u32 4294901760, %v2686_v39  ;;  %v8380_v3 = vand.u32 4294901760, %v7132_v11  ;;  %v2692_v29 = vsub.f32 %v7123_v14, %v8377_v23 }
 0x66c   :  { %8462 = vst [vmem:[#allocation27_spill] sm:$0xff] %v7139_v40  ;;  %2676 = vmatprep.subr.mxu1 %v2675_v58  ;;  %v7146_v62 = vsub.f32 %v2377_v5, %v7134_v8  ;;  %2480 = vmatprep.subr.mxu0 %v7134_v8  ;;  %v8382_v45 = vand.u32 4294901760, %v7139_v40  ;;  %v7154_v56 = vsub.f32 %v2376_v15, %v7141_v59  ;;  %p5832_p5 = pnand %p5831_p4, %p5825_p1 }
 0x66d   :  { %2682 = vmatpush1.msra.mxu1 %v2681_v0  ;;  %2482 = vmatpush1.msra.mxu0 %v7141_v59  ;;  %v2698_v39 = vsub.f32 %v7132_v11, %v8380_v3  ;;  %v2693_v58 = vand.u32 4294901760, %v2692_v29 }
 0x66e   :  { %2688 = vmatprep.subr.mxu1 %v2687_v33  ;;  %v8387_v5 = vand.u32 4294901760, %v7146_v62  ;;  %2761 = vmatprep.subr.mxu0 %v6786_v27  ;;  %v2704_v0 = vsub.f32 %v7139_v40, %v8382_v45  ;;  %v8388_v23 = vand.u32 4294901760, %v7154_v56 }
 0x66f   :  { %v2699_v15 = vand.u32 4294901760, %v2698_v39  ;;  %2694 = vmatpush1.msra.mxu1 %v2693_v58 }
 0x670   :  { %v2710_v33 = vsub.f32 %v7146_v62, %v8387_v5  ;;  %v2705_v14 = vand.u32 4294901760, %v2704_v0  ;;  %v2716_v3 = vsub.f32 %v7154_v56, %v8388_v23  ;;  %v8475_v23 = vld [vmem:[#allocation24_spill] sm:$0xff] }
 0x671   :  { %2700 = vmatprep.subr.mxu1 %v2699_v15  ;;  %v8468_v15 = vld [vmem:[#allocation23_spill] sm:$0xff] }
 0x672   :  { %v2711_v27 = vand.u32 4294901760, %v2710_v33  ;;  %2706 = vmatpush1.msra.mxu1 %v2705_v14  ;;  %v2717_v29 = vand.u32 4294901760, %v2716_v3  ;;  %v8466_v3 = vld [vmem:[#allocation21_spill] sm:$0xff]  ;;  %v8469_v33 = vld [vmem:[#allocation16_spill] sm:$0xff] }
 0x674   :  { %2712 = vmatprep.subr.mxu1 %v2711_v27  ;;  %v8464_v27 = vmov 0.0  }
 0x675   :  { %2718 = vmatpush1.msra.mxu1 %v2717_v29  ;;  %v8470_v29 = vld [vmem:[#allocation17_spill] sm:$0xff] }
 0x676   :  { %2897 = vmatprep.subr.mxu1 %v6758_v42 }
 0x6e1   :  { %v2370_v45 = vpop.xlane.xlu0 %2369 }
 0x6e2   :  { %v2371_v39 = vmul.f32 0.0078125, %v2370_v45  ;;  %v8467_v45 = vld [vmem:[#allocation15_spill] sm:$0xff] }
 0x6e4   :  { %v2372_v40 = vadd.f32 1e-05, %v2371_v39  ;;  %v8471_v39 = vld [vmem:[#allocation18_spill] sm:$0xff] }
 0x6e6   :  { %5762 = vrsqrt.f32 %v2372_v40 }
 0x6f3   :  { %v5763_v11 = vpop.eup %5762 }
 0x6f4   :  { %v2374_v58 = vmul.f32 %v5763_v11, %v6893_v34  ;;  %v8465_v11 = vld [vmem:[#allocation14_spill] sm:$0xff] }
 0x6f6   :  { %v7174_v0 = vand.u32 4294901760, %v2374_v58 }
 0x6f8   :  { %8463 = vst [vmem:[#allocation28_spill] sm:$0xff] %v7174_v0  ;;  %v7177_v5 = vsub.f32 %v2374_v58, %v7174_v0  ;;  %2753 = vmatmul.mubr.f32.vlgmr.msra.gmra.mxu1 %v7174_v0  ;;  %v8472_v58 = vld [vmem:[#allocation19_spill] sm:$0xff]  ;;  %v8476_v0 = vld [vmem:[#allocation25_spill] sm:$0xff] }
 0x6f9   :  { %2899 = vmatpush1.msra.mxu1 %v6760_v2  ;;  %2992 = vmatprep.mubr.f32.mxu1 %v8464_v27 }
 0x6fa   :  { %2901 = vmatprep.subr.mxu1 %v6762_v30  ;;  %v2518_v14 = vand.u32 4294901760, %v7177_v5 }
 0x6fb   :  { %2903 = vmatpush1.msra.mxu1 %v6773_v17 }
 0x6fc   :  { %2905 = vmatprep.subr.mxu1 %v6775_v26  ;;  %v2519_v34 = vsub.f32 %v7177_v5, %v2518_v14 }
 0x6fd   :  { %2907 = vmatpush1.msra.mxu1 %v6777_v28 }
 0x6fe   :  { %2909 = vmatprep.subr.mxu1 %v6794_v19  ;;  %v2520_v40 = vand.u32 4294901760, %v2519_v34  ;;  %v8473_v34 = vld [vmem:[#allocation20_spill] sm:$0xff] }
 0x6ff   :  { %2911 = vmatpush1.msra.mxu1 %v6806_v6 }
 0x700   :  { %2913 = vmatprep.subr.mxu1 %v6862_v37  ;;  %2521 = vmatmul.mubr.f32.vlgmr.msra.gmra.mxu0 %v2520_v40  ;;  %v8474_v40 = vld [vmem:[#allocation22_spill] sm:$0xff] }
 0x701   :  { %2764 = vmatpush1.msra.mxu0 %v6789_v51  ;;  %2915 = vmatpush1.msra.mxu1 %v6864_v43 }
 0x702   :  { %2767 = vmatprep.subr.mxu0 %v6792_v54  ;;  %2917 = vmatprep.subr.mxu1 %v6866_v9 }
 0x703   :  { %2770 = vmatpush1.msra.mxu0 %v6798_v36  ;;  %2919 = vmatpush1.msra.mxu1 %v6901_v25 }
 0x704   :  { %2773 = vmatprep.subr.mxu0 %v6801_v1  ;;  %2921 = vmatprep.subr.mxu1 %v6906_v60 }
 0x705   :  { %2776 = vmatpush1.msra.mxu0 %v6804_v4  ;;  %2923 = vmatpush1.msra.mxu1 %v6914_v61 }
 0x706   :  { %2779 = vmatprep.subr.mxu0 %v6813_v52  ;;  %2925 = vmatprep.subr.mxu1 %v6923_v24 }
 0x707   :  { %2782 = vmatpush1.msra.mxu0 %v6820_v50  ;;  %2927 = vmatpush1.msra.mxu1 %v6933_v48 }
 0x708   :  { %2785 = vmatprep.subr.mxu0 %v6869_v21  ;;  %2929 = vmatprep.subr.mxu1 %v6943_v32 }
 0x709   :  { %2788 = vmatpush1.msra.mxu0 %v6872_v22  ;;  %2931 = vmatpush1.msra.mxu1 %v6956_v7 }
 0x70a   :  { %2791 = vmatprep.subr.mxu0 %v6875_v47  ;;  %2933 = vmatprep.subr.mxu1 %v6969_v55 }
 0x70b   :  { %2794 = vmatpush1.msra.mxu0 %v6912_v31  ;;  %2935 = vmatpush1.msra.mxu1 %v7001_v57 }
 0x70c   :  { %2797 = vmatprep.subr.mxu0 %v6921_v63  ;;  %2937 = vmatprep.subr.mxu1 %v7010_v38 }
 0x70d   :  { %2800 = vmatpush1.msra.mxu0 %v6931_v35  ;;  %2939 = vmatpush1.msra.mxu1 %v7021_v20 }
 0x70e   :  { %2803 = vmatprep.subr.mxu0 %v6941_v41  ;;  %2941 = vmatprep.subr.mxu1 %v7033_v53 }
 0x70f   :  { %2806 = vmatpush1.msra.mxu0 %v6954_v18  ;;  %2943 = vmatpush1.msra.mxu1 %v7043_v46 }
 0x710   :  { %2809 = vmatprep.subr.mxu0 %v6967_v16  ;;  %2945 = vmatprep.subr.mxu1 %v7053_v13 }
 0x711   :  { %2812 = vmatpush1.msra.mxu0 %v8465_v11  ;;  %2947 = vmatpush1.msra.mxu1 %v8466_v3 }
 0x712   :  { %2815 = vmatprep.subr.mxu0 %v8467_v45  ;;  %2949 = vmatprep.subr.mxu1 %v8468_v15 }
 0x713   :  { %2818 = vmatpush1.msra.mxu0 %v8469_v33  ;;  %2951 = vmatpush1.msra.mxu1 %v7105_v12 }
 0x714   :  { %2821 = vmatprep.subr.mxu0 %v8470_v29  ;;  %2953 = vmatprep.subr.mxu1 %v7114_v10 }
 0x715   :  { %2824 = vmatpush1.msra.mxu0 %v8471_v39  ;;  %2955 = vmatpush1.msra.mxu1 %v7125_v44 }
 0x716   :  { %2827 = vmatprep.subr.mxu0 %v8472_v58  ;;  %2957 = vmatprep.subr.mxu1 %v7134_v8 }
 0x717   :  { %2830 = vmatpush1.msra.mxu0 %v8473_v34  ;;  %2959 = vmatpush1.msra.mxu1 %v7141_v59  ;;  %v8477_v34 = vld [vmem:[#allocation26_spill] sm:$0xff] }
 0x718   :  { %2833 = vmatprep.subr.mxu0 %v8474_v40  ;;  %2996 = vmatmul.mubr.f32.vlgmr.msra.gmra.mxu1 %v2518_v14  ;;  %v8478_v40 = vld [vmem:[#allocation27_spill] sm:$0xff] }
 0x719   :  { %3171 = vmatprep.subr.mxu1 %v6758_v42  ;;  %2836 = vmatpush1.msra.mxu0 %v8475_v23  ;;  %v8479_v42 = vld [vmem:[#allocation13_spill] sm:$0xff] }
 0x71a   :  { %3173 = vmatpush1.msra.mxu1 %v6760_v2  ;;  %2839 = vmatprep.subr.mxu0 %v7095_v49  ;;  %v8480_v2 = vand.u32 4294901760, %v8479_v42 }
 0x71b   :  { %3175 = vmatprep.subr.mxu1 %v6762_v30  ;;  %2842 = vmatpush1.msra.mxu0 %v8476_v0  ;;  %v8481_v30 = vand.u32 4294901760, %v6789_v51  ;;  %v8485_v51 = vand.u32 4294901760, %v6804_v4  ;;  %v8490_v4 = vand.u32 4294901760, %v6875_v47  ;;  %v8499_v47 = vand.u32 4294901760, %v8469_v33 }
 0x71c   :  { %3177 = vmatpush1.msra.mxu1 %v6773_v17  ;;  %2845 = vmatprep.subr.mxu0 %v8477_v34  ;;  %v8482_v17 = vand.u32 4294901760, %v6792_v54  ;;  %v8486_v54 = vand.u32 4294901760, %v6813_v52  ;;  %v8492_v52 = vand.u32 4294901760, %v6921_v63 }
 0x71d   :  { %3179 = vmatprep.subr.mxu1 %v6775_v26  ;;  %2848 = vmatpush1.msra.mxu0 %v8478_v40  ;;  %v8483_v26 = vand.u32 4294901760, %v6798_v36  ;;  %v8488_v36 = vand.u32 4294901760, %v6869_v21  ;;  %v8497_v21 = vand.u32 4294901760, %v8465_v11 }
 0x71e   :  { %3181 = vmatpush1.msra.mxu1 %v6777_v28  ;;  %2851 = vmatprep.subr.mxu0 %v7146_v62  ;;  %v8484_v28 = vand.u32 4294901760, %v6801_v1  ;;  %v8489_v1 = vand.u32 4294901760, %v6872_v22  ;;  %v8498_v22 = vand.u32 4294901760, %v8467_v45 }
 0x71f   :  { %3183 = vmatprep.subr.mxu1 %v6794_v19  ;;  %2854 = vmatpush1.msra.mxu0 %v7154_v56  ;;  %v8487_v19 = vand.u32 4294901760, %v6820_v50  ;;  %v8493_v50 = vand.u32 4294901760, %v6931_v35  ;;  %v8508_v35 = vand.u32 4294901760, %v8475_v23 }
 0x720   :  { %2887 = vmatprep.mubr.f32.mxu0 %v8464_v27  ;;  %3185 = vmatpush1.msra.mxu1 %v6806_v6  ;;  %v8491_v6 = vand.u32 4294901760, %v6912_v31 }
 0x721   :  { %2890 = vmatmul.mubr.f32.vlgmr.msra.gmra.mxu0 %v7177_v5  ;;  %3005 = vmatprep.subr.mxu0 %v8480_v2  ;;  %v3286_v5 = vld [vmem:[%s8325_s6 + $0x58] sm:$0xff] }
 0x722   :  { %3187 = vmatprep.subr.mxu1 %v6862_v37  ;;  %3009 = vmatpush1.msra.mxu0 %v8481_v30  ;;  %v8494_v37 = vand.u32 4294901760, %v6941_v41  ;;  %v8510_v41 = vand.u32 4294901760, %v8476_v0  ;;  %v7400_v45 = vand.u32 4294901760, %v3286_v5 }
 0x723   :  { %3189 = vmatpush1.msra.mxu1 %v6864_v43  ;;  %3013 = vmatprep.subr.mxu0 %v8482_v17  ;;  %v8495_v43 = vand.u32 4294901760, %v6954_v18  ;;  %v8512_v18 = vand.u32 4294901760, %v8478_v40  ;;  %v3284_v40 = vld [vmem:[%s8325_s6 + $0x48] sm:$0xff] }
 0x724   :  { %3191 = vmatprep.subr.mxu1 %v6866_v9  ;;  %3017 = vmatpush1.msra.mxu0 %v8483_v26  ;;  %v8496_v9 = vand.u32 4294901760, %v6967_v16  ;;  %v3290_v16 = vld [vmem:[%s8325_s6 + $0x78] sm:$0xff]  ;;  %v7426_v17 = vand.u32 4294901760, %v3284_v40 }
 0x725   :  { %3193 = vmatpush1.msra.mxu1 %v6901_v25  ;;  %3021 = vmatprep.subr.mxu0 %v8484_v28  ;;  %v8502_v25 = vand.u32 4294901760, %v8472_v58  ;;  %v3283_v28 = vld [vmem:[%s8325_s6 + $0x40] sm:$0xff] }
 0x726   :  { %3195 = vmatprep.subr.mxu1 %v6906_v60  ;;  %3025 = vmatpush1.msra.mxu0 %v8485_v51  ;;  %v8503_v60 = vld [vmem:[#allocation20_spill] sm:$0xff] }
 0x727   :  { %3197 = vmatpush1.msra.mxu1 %v6914_v61  ;;  %3029 = vmatprep.subr.mxu0 %v8486_v54  ;;  %v8504_v31 = vand.u32 4294901760, %v8503_v60  ;;  %v8505_v61 = vld [vmem:[#allocation22_spill] sm:$0xff]  ;;  %v3278_v60 = vld [vmem:[%s8325_s6 + $0x18] sm:$0xff] }
 0x728   :  { %3199 = vmatprep.subr.mxu1 %v6923_v24  ;;  %3033 = vmatpush1.msra.mxu0 %v8487_v19  ;;  %v8506_v63 = vand.u32 4294901760, %v8505_v61  ;;  %v8507_v24 = vld [vmem:[#allocation28_spill] sm:$0xff]  ;;  %v7437_v19 = vsub.f32 %v3284_v40, %v7426_v17 }
 0x729   :  { %3201 = vmatpush1.msra.mxu1 %v6933_v48  ;;  %3037 = vmatprep.subr.mxu0 %v8488_v36  ;;  %v8509_v48 = vand.u32 4294901760, %v7095_v49  ;;  %v3288_v49 = vld [vmem:[%s8325_s6 + $0x68] sm:$0xff]  ;;  %v7439_v36 = vand.u32 4294901760, %v3283_v28 }
 0x72a   :  { %3203 = vmatprep.subr.mxu1 %v6943_v32  ;;  %3041 = vmatpush1.msra.mxu0 %v8489_v1  ;;  %v8511_v32 = vand.u32 4294901760, %v8477_v34  ;;  %v7414_v34 = vsub.f32 %v3286_v5, %v7400_v45 }
 0x72b   :  { %3205 = vmatpush1.msra.mxu1 %v6956_v7  ;;  %3045 = vmatprep.subr.mxu0 %v8490_v4  ;;  %v8513_v7 = vand.u32 4294901760, %v7146_v62  ;;  %v3282_v4 = vld [vmem:[%s8325_s6 + $0x38] sm:$0xff] }
 0x72c   :  { %3207 = vmatprep.subr.mxu1 %v6969_v55  ;;  %3049 = vmatpush1.msra.mxu0 %v8491_v6  ;;  %v7352_v55 = vand.u32 4294901760, %v3290_v16  ;;  %v8410_v26 = vand.u32 4294901760, %v7414_v34 }
 0x72d   :  { %3209 = vmatpush1.msra.mxu1 %v7001_v57  ;;  %3053 = vmatprep.subr.mxu0 %v8492_v52  ;;  %v8514_v57 = vand.u32 4294901760, %v7154_v56  ;;  %v8405_v52 = vand.u32 4294901760, %v7437_v19 }
 0x72e   :  { %3211 = vmatprep.subr.mxu1 %v7010_v38  ;;  %3057 = vmatpush1.msra.mxu0 %v8493_v50  ;;  %v3289_v38 = vld [vmem:[%s8325_s6 + $0x70] sm:$0xff]  ;;  %v3444_v1 = vsub.f32 %v7414_v34, %v8410_v26  ;;  %v7455_v50 = vsub.f32 %v3283_v28, %v7439_v36 }
 0x72f   :  { %3213 = vmatpush1.msra.mxu1 %v7021_v20  ;;  %3061 = vmatprep.subr.mxu0 %v8494_v37  ;;  %v7358_v20 = vsub.f32 %v3290_v16, %v7352_v55  ;;  %v7457_v37 = vand.u32 4294901760, %v3282_v4 }
 0x730   :  { %3215 = vmatprep.subr.mxu1 %v7033_v53  ;;  %3065 = vmatpush1.msra.mxu0 %v8495_v43  ;;  %v8501_v53 = vand.u32 4294901760, %v8471_v39  ;;  %v3445_v43 = vand.u32 4294901760, %v3444_v1 }
 0x731   :  { %3217 = vmatpush1.msra.mxu1 %v7043_v46  ;;  %3069 = vmatprep.subr.mxu0 %v8496_v9  ;;  %v8500_v46 = vand.u32 4294901760, %v8470_v29  ;;  %v3281_v9 = vld [vmem:[%s8325_s6 + $0x30] sm:$0xff] }
 0x732   :  { %3219 = vmatprep.subr.mxu1 %v7053_v13  ;;  %3073 = vmatpush1.msra.mxu0 %v8497_v21  ;;  %v7360_v13 = vand.u32 4294901760, %v3289_v38  ;;  %v3280_v21 = vld [vmem:[%s8325_s6 + $0x28] sm:$0xff]  ;;  %v7485_v61 = vand.u32 4294901760, %v3281_v9 }
 0x733   :  { %3221 = vmatpush1.msra.mxu1 %v8466_v3  ;;  %3077 = vmatprep.subr.mxu0 %v8498_v22  ;;  %v3279_v22 = vld [vmem:[%s8325_s6 + $0x20] sm:$0xff] }
 0x734   :  { %3223 = vmatprep.subr.mxu1 %v8468_v15  ;;  %3081 = vmatpush1.msra.mxu0 %v8499_v47  ;;  %v7369_v62 = vsub.f32 %v3289_v38, %v7360_v13  ;;  %v3285_v15 = vld [vmem:[%s8325_s6 + $0x50] sm:$0xff] }
 0x735   :  { %3225 = vmatpush1.msra.mxu1 %v7105_v12  ;;  %3085 = vmatprep.subr.mxu0 %v8500_v46  ;;  %v8414_v12 = vand.u32 4294901760, %v7358_v20  ;;  %v7410_v58 = vand.u32 4294901760, %v3285_v15  ;;  %v3458_v46 = vsub.f32 %v7437_v19, %v8405_v52 }
 0x736   :  { %3227 = vmatprep.subr.mxu1 %v7114_v10  ;;  %3089 = vmatpush1.msra.mxu0 %v8501_v53  ;;  %v7371_v10 = vand.u32 4294901760, %v3288_v49  ;;  %v8413_v23 = vand.u32 4294901760, %v7369_v62  ;;  %v8403_v53 = vand.u32 4294901760, %v7455_v50 }
 0x737   :  { %3229 = vmatpush1.msra.mxu1 %v7125_v44  ;;  %3093 = vmatprep.subr.mxu0 %v8502_v25  ;;  %v3287_v44 = vld [vmem:[%s8325_s6 + $0x60] sm:$0xff]  ;;  %v7424_v30 = vsub.f32 %v3285_v15, %v7410_v58  ;;  %v7476_v25 = vsub.f32 %v3282_v4, %v7457_v37 }
 0x738   :  { %3231 = vmatprep.subr.mxu1 %v7134_v8  ;;  %3097 = vmatpush1.msra.mxu0 %v8504_v31  ;;  %v3416_v8 = vsub.f32 %v7358_v20, %v8414_v12  ;;  %v7385_v56 = vand.u32 4294901760, %v3287_v44  ;;  %v3423_v14 = vsub.f32 %v7369_v62, %v8413_v23  ;;  %v3277_v31 = vld [vmem:[%s8325_s6 + $0x10] sm:$0xff] }
 0x739   :  { %3233 = vmatpush1.msra.mxu1 %v7141_v59  ;;  %3266 = vmatprep.mubr.f32.mxu1 %v8464_v27  ;;  %v7383_v59 = vsub.f32 %v3288_v49, %v7371_v10  ;;  %v8409_v54 = vand.u32 4294901760, %v7424_v30 }
 0x73a   :  { %3101 = vmatprep.subr.mxu0 %v8506_v63  ;;  %3268 = vmatmul.mubr.f32.vlgmr.msra.gmra.mxu1 %v8507_v24  ;;  %v3417_v0 = vand.u32 4294901760, %v3416_v8  ;;  %v7397_v3 = vsub.f32 %v3287_v44, %v7385_v56  ;;  %v3424_v33 = vand.u32 4294901760, %v3423_v14  ;;  %v7487_v63 = vand.u32 4294901760, %v3280_v21 }
 0x73b   :  { %3105 = vmatpush1.msra.mxu0 %v8508_v35  ;;  %3162 = vmatprep.mubr.f32.mxu0 %v8464_v27  ;;  %v8412_v11 = vand.u32 4294901760, %v7383_v59  ;;  %v3451_v6 = vsub.f32 %v7424_v30, %v8409_v54  ;;  %v7492_v35 = vand.u32 4294901760, %v3278_v60 }
 0x73c   :  { %3109 = vmatprep.subr.mxu0 %v8509_v48  ;;  %3412 = vmatprep.subr.mxu1 %v8464_v27  ;;  %v8411_v39 = vand.u32 4294901760, %v7397_v3  ;;  %v3276_v48 = vld [vmem:[%s8325_s6 + $0x8] sm:$0xff]  ;;  %v7509_v16 = vsub.f32 %v3280_v21, %v7487_v63 }
 0x73d   :  { %3113 = vmatpush1.msra.mxu0 %v8510_v41  ;;  %3418 = vmatpush1.msra.mxu1 %v3417_v0  ;;  %v3430_v29 = vsub.f32 %v7383_v59, %v8412_v11  ;;  %v3452_v47 = vand.u32 4294901760, %v3451_v6  ;;  %v3459_v41 = vand.u32 4294901760, %v3458_v46  ;;  %v7515_v49 = vsub.f32 %v3278_v60, %v7492_v35 }
 0x73e   :  { %3117 = vmatprep.subr.mxu0 %v8511_v32  ;;  %3419 = vmatprep.subr.mxu1 %v8464_v27  ;;  %v3437_v2 = vsub.f32 %v7397_v3, %v8411_v39  ;;  %v3465_v32 = vsub.f32 %v7455_v50, %v8403_v53  ;;  %v7525_v0 = vand.u32 4294901760, %v3276_v48  ;;  %v8399_v15 = vand.u32 4294901760, %v7509_v16 }
 0x73f   :  { %3121 = vmatpush1.msra.mxu0 %v8512_v18  ;;  %3425 = vmatpush1.msra.mxu1 %v3424_v33  ;;  %v3431_v42 = vand.u32 4294901760, %v3430_v29  ;;  %v8401_v18 = vand.u32 4294901760, %v7476_v25  ;;  %v8396_v29 = vand.u32 4294901760, %v7515_v49 }
 0x740   :  { %3125 = vmatprep.subr.mxu0 %v8513_v7  ;;  %3426 = vmatprep.subr.mxu1 %v8464_v27  ;;  %v3438_v51 = vand.u32 4294901760, %v3437_v2  ;;  %v7503_v7 = vand.u32 4294901760, %v3277_v31  ;;  %v3466_v44 = vand.u32 4294901760, %v3465_v32  ;;  %v3486_v28 = vsub.f32 %v7509_v16, %v8399_v15 }
 0x741   :  { %3129 = vmatpush1.msra.mxu0 %v8514_v57  ;;  %3432 = vmatpush1.msra.mxu1 %v3431_v42  ;;  %v7506_v57 = vsub.f32 %v3281_v9, %v7485_v61  ;;  %v3472_v8 = vsub.f32 %v7476_v25, %v8401_v18  ;;  %v7535_v42 = vsub.f32 %v3276_v48, %v7525_v0  ;;  %v3298_v48 = vld [vmem:[%s8325_s6 + $0xb8] sm:$0xff] }
 0x742   :  { %3164 = vmatmul.mubr.f32.vlgmr.msra.gmra.mxu0 %v8507_v24  ;;  %3308 = vmatprep.subr.mxu0 %v8464_v27  ;;  %v7489_v24 = vand.u32 4294901760, %v3279_v22  ;;  %v7523_v5 = vsub.f32 %v3277_v31, %v7503_v7  ;;  %v3487_v6 = vand.u32 4294901760, %v3486_v28  ;;  %v7578_v32 = vand.u32 4294901760, %v3298_v48 }
 0x743   :  { %3310 = vmatpush1.msra.mxu0 %v7352_v55  ;;  %3433 = vmatprep.subr.mxu1 %v8464_v27  ;;  %v8400_v14 = vand.u32 4294901760, %v7506_v57  ;;  %v3473_v40 = vand.u32 4294901760, %v3472_v8  ;;  %v8393_v9 = vand.u32 4294901760, %v7535_v42  ;;  %v3297_v8 = vld [vmem:[%s8325_s6 + $0xb0] sm:$0xff] }
 0x744   :  { %3311 = vmatprep.subr.mxu0 %v8464_v27  ;;  %3439 = vmatpush1.msra.mxu1 %v3438_v51  ;;  %v7512_v38 = vsub.f32 %v3279_v22, %v7489_v24  ;;  %v8394_v1 = vand.u32 4294901760, %v7523_v5  ;;  %v7590_v28 = vand.u32 4294901760, %v3297_v8 }
 0x745   :  { %3313 = vmatpush1.msra.mxu0 %v7360_v13  ;;  %3440 = vmatprep.subr.mxu1 %v8464_v27  ;;  %v3479_v2 = vsub.f32 %v7506_v57, %v8400_v14  ;;  %v3514_v31 = vsub.f32 %v7535_v42, %v8393_v9  ;;  %v3291_v14 = vld [vmem:[%s8325_s6 + $0x80] sm:$0xff] }
 0x746   :  { %3314 = vmatprep.subr.mxu0 %v8464_v27  ;;  %3446 = vmatpush1.msra.mxu1 %v3445_v43  ;;  %v8397_v33 = vand.u32 4294901760, %v7512_v38  ;;  %v3500_v43 = vsub.f32 %v7515_v49, %v8396_v29  ;;  %v3507_v22 = vsub.f32 %v7523_v5, %v8394_v1  ;;  %v3293_v1 = vld [vmem:[%s8325_s6 + $0x90] sm:$0xff]  ;;  %v7680_v18 = vand.u32 4294901760, %v3291_v14 }
 0x747   :  { %3316 = vmatpush1.msra.mxu0 %v7371_v10  ;;  %3447 = vmatprep.subr.mxu1 %v8464_v27  ;;  %v3480_v4 = vand.u32 4294901760, %v3479_v2  ;;  %v7588_v2 = vsub.f32 %v3298_v48, %v7578_v32 }
 0x748   :  { %3317 = vmatprep.subr.mxu0 %v8464_v27  ;;  %3453 = vmatpush1.msra.mxu1 %v3452_v47  ;;  %v3493_v51 = vsub.f32 %v7512_v38, %v8397_v33  ;;  %v3275_v47 = vld [vmem:[%s8325_s6] sm:$0xff]  ;;  %v3501_v60 = vand.u32 4294901760, %v3500_v43  ;;  %v3292_v33 = vld [vmem:[%s8325_s6 + $0x88] sm:$0xff]  ;;  %8523 = vst [vmem:[#allocation24_spill] sm:$0xff] %v7680_v18 }
 0x749   :  { %3319 = vmatpush1.msra.mxu0 %v7385_v56  ;;  %3454 = vmatprep.subr.mxu1 %v8464_v27  ;;  %v7564_v46 = vand.u32 4294901760, %v3275_v47  ;;  %v8392_v43 = vand.u32 4294901760, %v7588_v2  ;;  %v7662_v15 = vand.u32 4294901760, %v3292_v33 }
 0x74a   :  { %3320 = vmatprep.subr.mxu0 %v8464_v27  ;;  %3460 = vmatpush1.msra.mxu1 %v3459_v41  ;;  %v3494_v21 = vand.u32 4294901760, %v3493_v51  ;;  %v3515_v51 = vand.u32 4294901760, %v3514_v31 }
 0x74b   :  { %3322 = vmatpush1.msra.mxu0 %v7400_v45  ;;  %3461 = vmatprep.subr.mxu1 %v8464_v27  ;;  %v7576_v41 = vsub.f32 %v3275_v47, %v7564_v46  ;;  %v3295_v47 = vld [vmem:[%s8325_s6 + $0xa0] sm:$0xff]  ;;  %v3544_v31 = vsub.f32 %v7588_v2, %v8392_v43  ;;  %8521 = vst [vmem:[#allocation18_spill] sm:$0xff] %v7662_v15 }
 0x74c   :  { %3323 = vmatprep.subr.mxu0 %v8464_v27  ;;  %3467 = vmatpush1.msra.mxu1 %v3466_v44  ;;  %v3508_v44 = vand.u32 4294901760, %v3507_v22 }
 0x74d   :  { %3325 = vmatpush1.msra.mxu0 %v7410_v58  ;;  %3468 = vmatprep.subr.mxu1 %v8464_v27 }
 0x74e   :  { %3326 = vmatprep.subr.mxu0 %v8464_v27  ;;  %3474 = vmatpush1.msra.mxu1 %v3473_v40  ;;  %v8391_v40 = vand.u32 4294901760, %v7576_v41 }
 0x74f   :  { %3328 = vmatpush1.msra.mxu0 %v7426_v17  ;;  %3475 = vmatprep.subr.mxu1 %v8464_v27 }
 0x750   :  { %3329 = vmatprep.subr.mxu0 %v8464_v27  ;;  %3481 = vmatpush1.msra.mxu1 %v3480_v4  ;;  %v3296_v4 = vld [vmem:[%s8325_s6 + $0xa8] sm:$0xff] }
 0x751   :  { %3331 = vmatpush1.msra.mxu0 %v7439_v36  ;;  %3482 = vmatprep.subr.mxu1 %v8464_v27  ;;  %v7605_v22 = vand.u32 4294901760, %v3296_v4 }
 0x752   :  { %3332 = vmatprep.subr.mxu0 %v8464_v27  ;;  %3488 = vmatpush1.msra.mxu1 %v3487_v6  ;;  %v3521_v6 = vsub.f32 %v7576_v41, %v8391_v40  ;;  %v3294_v40 = vld [vmem:[%s8325_s6 + $0x98] sm:$0xff] }
 0x753   :  { %3334 = vmatpush1.msra.mxu0 %v7457_v37  ;;  %3489 = vmatprep.subr.mxu1 %v8464_v27  ;;  %v7632_v9 = vand.u32 4294901760, %v3294_v40 }
 0x754   :  { %3335 = vmatprep.subr.mxu0 %v8464_v27  ;;  %3495 = vmatpush1.msra.mxu1 %v3494_v21  ;;  %v7603_v21 = vsub.f32 %v3297_v8, %v7590_v28  ;;  %v7618_v8 = vsub.f32 %v3296_v4, %v7605_v22 }
 0x755   :  { %3337 = vmatpush1.msra.mxu0 %v7485_v61  ;;  %3496 = vmatprep.subr.mxu1 %v8464_v27  ;;  %v7647_v29 = vsub.f32 %v3294_v40, %v7632_v9 }
 0x756   :  { %3338 = vmatprep.subr.mxu0 %v8464_v27  ;;  %3502 = vmatpush1.msra.mxu1 %v3501_v60  ;;  %8515 = vst [vmem:[#allocation14_spill] sm:$0xff] %v7603_v21  ;;  %v3522_v60 = vand.u32 4294901760, %v3521_v6  ;;  %v8395_v48 = vand.u32 4294901760, %v7603_v21  ;;  %8516 = vst [vmem:[#allocation21_spill] sm:$0xff] %v7618_v8  ;;  %v3545_v6 = vand.u32 4294901760, %v3544_v31  ;;  %v8398_v4 = vand.u32 4294901760, %v7618_v8 }
 0x757   :  { %3340 = vmatpush1.msra.mxu0 %v7487_v63  ;;  %3503 = vmatprep.subr.mxu1 %v8464_v27  ;;  %8518 = vst [vmem:[#allocation23_spill] sm:$0xff] %v7647_v29 }
 0x758   :  { %3341 = vmatprep.subr.mxu0 %v8464_v27  ;;  %3509 = vmatpush1.msra.mxu1 %v3508_v44  ;;  %v7621_v44 = vand.u32 4294901760, %v3295_v47  ;;  %v3551_v43 = vsub.f32 %v7603_v21, %v8395_v48  ;;  %v3558_v48 = vsub.f32 %v7618_v8, %v8398_v4  ;;  %v8404_v4 = vand.u32 4294901760, %v7647_v29 }
 0x759   :  { %3343 = vmatpush1.msra.mxu0 %v7489_v24  ;;  %3510 = vmatprep.subr.mxu1 %v8464_v27 }
 0x75a   :  { %3344 = vmatprep.subr.mxu0 %v8464_v27  ;;  %3516 = vmatpush1.msra.mxu1 %v3515_v51  ;;  %v7636_v51 = vsub.f32 %v3295_v47, %v7621_v44  ;;  %v3552_v31 = vand.u32 4294901760, %v3551_v43  ;;  %v3559_v43 = vand.u32 4294901760, %v3558_v48 }
 0x75b   :  { %3346 = vmatpush1.msra.mxu0 %v7492_v35  ;;  %3517 = vmatprep.subr.mxu1 %v8464_v27 }
 0x75c   :  { %3347 = vmatprep.subr.mxu0 %v8464_v27  ;;  %3523 = vmatpush1.msra.mxu1 %v3522_v60  ;;  %8517 = vst [vmem:[#allocation15_spill] sm:$0xff] %v7636_v51  ;;  %v7649_v60 = vand.u32 4294901760, %v3293_v1  ;;  %v8402_v47 = vand.u32 4294901760, %v7636_v51 }
 0x75d   :  { %3349 = vmatpush1.msra.mxu0 %v7503_v7  ;;  %3540 = vmatprep.subr.mxu1 %v8464_v27 }
 0x75e   :  { %3350 = vmatprep.subr.mxu0 %v8464_v27  ;;  %8519 = vst [vmem:[#allocation16_spill] sm:$0xff] %v7649_v60  ;;  %3546 = vmatpush2.msra.mxu1 %v3545_v6  ;;  %v7660_v40 = vsub.f32 %v3293_v1, %v7649_v60  ;;  %v3565_v6 = vsub.f32 %v7636_v51, %v8402_v47 }
 0x75f   :  { %3352 = vmatpush1.msra.mxu0 %v7525_v0  ;;  %3547 = vmatprep.subr.mxu1 %v8464_v27  ;;  %v3572_v1 = vsub.f32 %v7647_v29, %v8404_v4 }
 0x760   :  { %3353 = vmatprep.subr.mxu0 %v8464_v27  ;;  %8520 = vst [vmem:[#allocation17_spill] sm:$0xff] %v7660_v40  ;;  %3553 = vmatpush2.msra.mxu1 %v3552_v31  ;;  %v8408_v48 = vand.u32 4294901760, %v7660_v40  ;;  %v7678_v31 = vsub.f32 %v3292_v33, %v7662_v15  ;;  %v3566_v47 = vand.u32 4294901760, %v3565_v6  ;;  %v7690_v33 = vsub.f32 %v3291_v14, %v7680_v18 }
 0x761   :  { %3355 = vmatpush1.msra.mxu0 %v7564_v46  ;;  %3554 = vmatprep.subr.mxu1 %v8464_v27  ;;  %v3573_v53 = vand.u32 4294901760, %v3572_v1 }
 0x762   :  { %3372 = vmatprep.subr.mxu0 %v8464_v27  ;;  %8522 = vst [vmem:[#allocation19_spill] sm:$0xff] %v7678_v31  ;;  %3560 = vmatpush2.msra.mxu1 %v3559_v43  ;;  %v3579_v4 = vsub.f32 %v7660_v40, %v8408_v48  ;;  %v8406_v52 = vand.u32 4294901760, %v7678_v31  ;;  %8524 = vst [vmem:[#allocation25_spill] sm:$0xff] %v7690_v33  ;;  %v8407_v1 = vand.u32 4294901760, %v7690_v33 }
 0x763   :  { %3374 = vmatpush2.msra.mxu0 %v7578_v32  ;;  %3561 = vmatprep.subr.mxu1 %v8464_v27 }
 0x764   :  { %3375 = vmatprep.subr.mxu0 %v8464_v27  ;;  %3567 = vmatpush2.msra.mxu1 %v3566_v47  ;;  %v3580_v43 = vand.u32 4294901760, %v3579_v4  ;;  %v3586_v6 = vsub.f32 %v7678_v31, %v8406_v52  ;;  %v3593_v47 = vsub.f32 %v7690_v33, %v8407_v1 }
 0x765   :  { %3377 = vmatpush2.msra.mxu0 %v7590_v28  ;;  %3568 = vmatprep.subr.mxu1 %v8464_v27 }
 0x766   :  { %3378 = vmatprep.subr.mxu0 %v8464_v27  ;;  %3574 = vmatpush2.msra.mxu1 %v3573_v53  ;;  %v3587_v14 = vand.u32 4294901760, %v3586_v6  ;;  %v3594_v4 = vand.u32 4294901760, %v3593_v47  ;;  %v8525_v53 = vld [vmem:[#allocation12_spill] sm:$0xff]  ;;  %v2375_v6 = vld [vmem:[%s8327_s8 + $0x2] sm:$0x3] }
 0x767   :  { %3380 = vmatpush2.msra.mxu0 %v7605_v22  ;;  %3575 = vmatprep.subr.mxu1 %v8464_v27  ;;  %v2411_v52 = vsub.s32 0, %v8525_v53  ;;  %v2415_v1 = vsub.s32 1, %v8525_v53 }
 0x768   :  { %3381 = vmatprep.subr.mxu0 %v8464_v27  ;;  %3581 = vmatpush2.msra.mxu1 %v3580_v43 }
 0x769   :  { %3383 = vmatpush2.msra.mxu0 %v7621_v44  ;;  %3582 = vmatprep.subr.mxu1 %v8464_v27  ;;  %v2412_v54 = vrot.slane %v2375_v6, %v2411_v52  ;;  %v2416_v43 = vrot.slane %v2375_v6, %v2415_v1 }
 0x76a   :  { %3384 = vmatprep.subr.mxu0 %v8464_v27  ;;  %3588 = vmatpush2.msra.mxu1 %v3587_v14 }
 0x76b   :  { %3386 = vmatpush2.msra.mxu0 %v7632_v9  ;;  %3589 = vmatprep.subr.mxu1 %v8464_v27 }
 0x76c   :  { %3387 = vmatprep.subr.mxu0 %v8464_v27  ;;  %3595 = vmatpush2.msra.mxu1 %v3594_v4 }
 0x76d   :  { %3389 = vmatpush2.msra.mxu0 %v7649_v60  ;;  %3726 = vmatprep.subr.mxu1 %v8464_v27 }
 0x76e   :  { %3390 = vmatprep.subr.mxu0 %v8464_v27 }
 0x76f   :  { %3392 = vmatpush2.msra.mxu0 %v7662_v15 }
 0x770   :  { %3393 = vmatprep.subr.mxu0 %v8464_v27 }
 0x771   :  { %3395 = vmatpush2.msra.mxu0 %v7680_v18 }
 0x772   :  { %3604 = vmatprep.subr.mxu0 %v8464_v27 }
 0x7b8   :  { %v2754_v26 = vpop.f32.mrf.mxu1 }
 0x7ba   :  { %v2756_v23 = vpop.f32.mrf.mxu1 }
 0x7c0   :  { %v2522_v48 = vpop.f32.mrf.mxu0 }
 0x7c1   :  { %v2523_v47 = vadd.f32 %v2522_v48, %v2412_v54 }
 0x7c2   :  { %v2524_v39 = vpop.f32.mrf.mxu0 }
 0x7c3   :  { %v2525_v11 = vadd.f32 %v2524_v39, %v2416_v43  ;;  %v2755_v4 = vadd.f32 %v2754_v26, %v2523_v47  ;;  %v8531_v43 = vld [vmem:[#allocation24_spill] sm:$0xff]  ;;  %v8532_v47 = vld [vmem:[#allocation23_spill] sm:$0xff] }
 0x7c5   :  { %v2757_v40 = vadd.f32 %v2756_v23, %v2525_v11 }
 0x7d8   :  { %v2997_v12 = vpop.f32.mrf.mxu1 }
 0x7da   :  { %v2999_v18 = vpop.f32.mrf.mxu1 }
 0x7e1   :  { %v2891_v14 = vpop.f32.mrf.mxu0 }
 0x7e2   :  { %v2892_v31 = vadd.f32 %v2891_v14, %v2755_v4  ;;  %v8533_v14 = vld [vmem:[#allocation17_spill] sm:$0xff]  ;;  %v8534_v4 = vld [vmem:[#allocation19_spill] sm:$0xff] }
 0x7e3   :  { %v2893_v33 = vpop.f32.mrf.mxu0 }
 0x7e4   :  { %v2894_v29 = vadd.f32 %v2893_v33, %v2757_v40  ;;  %v2998_v51 = vadd.f32 %v2997_v12, %v2892_v31  ;;  %v8528_v40 = vld [vmem:[#allocation21_spill] sm:$0xff]  ;;  %v8529_v31 = vld [vmem:[#allocation18_spill] sm:$0xff]  ;;  %v8530_v33 = vld [vmem:[#allocation15_spill] sm:$0xff] }
 0x7e6   :  { %v3000_v60 = vadd.f32 %v2999_v18, %v2894_v29 }
 0x7fa   :  { %v3269_v15 = vpop.f32.mrf.mxu1 }
 0x7fc   :  { %v3271_v21 = vpop.f32.mrf.mxu1 }
 0x802   :  { %v3165_v8 = vpop.f32.mrf.mxu0 }
 0x803   :  { %v3166_v53 = vadd.f32 %v3165_v8, %v2998_v51  ;;  %v8526_v51 = vld [vmem:[#allocation14_spill] sm:$0xff] }
 0x804   :  { %v3167_v52 = vpop.f32.mrf.mxu0 }
 0x805   :  { %v3270_v1 = vadd.f32 %v3269_v15, %v3166_v53  ;;  %v3168_v6 = vadd.f32 %v3167_v52, %v3000_v60  ;;  %v8527_v60 = vld [vmem:[#allocation16_spill] sm:$0xff] }
 0x807   :  { %v7714_v54 = vand.u32 4294901760, %v3270_v1  ;;  %v3272_v39 = vadd.f32 %v3271_v21, %v3168_v6 }
 0x809   :  { %v7717_v26 = vsub.f32 %v3270_v1, %v7714_v54  ;;  %v3306_v48 = vsel %vm1178_vm4, %v3272_v39, 0  ;;  %v4086_v1 = vld [vmem:[#allocation7 + $0x58] sm:$0xff] }
 0x80a   :  { %v7720_v23 = vand.u32 4294901760, %v3306_v48 }
 0x80b   :  { %v3404_v12 = vand.u32 4294901760, %v7717_v26 }
 0x80c   :  { %v3397_v11 = vsub.f32 %v3306_v48, %v7720_v23  ;;  %3597 = vmatprep.mubr.f32.mxu1 %v7720_v23  ;;  %v4085_v48 = vld [vmem:[#allocation7 + $0x50] sm:$0xff] }
 0x80d   :  { %3599 = vmatmul.mubr.f32.vlgmr.msra.gmra.mxu1 %v7714_v54  ;;  %v3405_v15 = vsub.f32 %v7717_v26, %v3404_v12 }
 0x80e   :  { %3728 = vmatpush1.msra.mxu1 %v7352_v55  ;;  %v3398_v18 = vand.u32 4294901760, %v3397_v11 }
 0x80f   :  { %3729 = vmatprep.subr.mxu1 %v8464_v27  ;;  %v3406_v8 = vand.u32 4294901760, %v3405_v15  ;;  %v8004_v15 = vand.u32 4294901760, %v4085_v48 }
 0x810   :  { %3731 = vmatpush1.msra.mxu1 %v7360_v13  ;;  %3817 = vmatprep.mubr.f32.mxu1 %v3398_v18  ;;  %v3399_v29 = vsub.f32 %v3397_v11, %v3398_v18 }
 0x811   :  { %3732 = vmatprep.subr.mxu1 %v8464_v27 }
 0x812   :  { %3734 = vmatpush1.msra.mxu1 %v7371_v10  ;;  %v3400_v21 = vand.u32 4294901760, %v3399_v29  ;;  %v4084_v29 = vld [vmem:[#allocation7 + $0x48] sm:$0xff] }
 0x813   :  { %3735 = vmatprep.subr.mxu1 %v8464_v27 }
 0x814   :  { %3737 = vmatpush1.msra.mxu1 %v7385_v56  ;;  %3401 = vmatprep.mubr.f32.mxu0 %v3400_v21 }
 0x815   :  { %3738 = vmatprep.subr.mxu1 %v8464_v27  ;;  %3407 = vmatmul.mubr.f32.vlgmr.msra.gmra.mxu0 %v3406_v8 }
 0x816   :  { %3607 = vmatpush1.msra.mxu0 %v7358_v20  ;;  %3740 = vmatpush1.msra.mxu1 %v7400_v45 }
 0x817   :  { %3608 = vmatprep.subr.mxu0 %v8464_v27  ;;  %3718 = vmatprep.mubr.f32.mxu0 %v3397_v11 }
 0x818   :  { %3741 = vmatprep.subr.mxu1 %v8464_v27  ;;  %3611 = vmatpush1.msra.mxu0 %v7369_v62 }
 0x819   :  { %3743 = vmatpush1.msra.mxu1 %v7410_v58  ;;  %3612 = vmatprep.subr.mxu0 %v8464_v27 }
 0x81a   :  { %3744 = vmatprep.subr.mxu1 %v8464_v27  ;;  %3615 = vmatpush1.msra.mxu0 %v7383_v59 }
 0x81b   :  { %3746 = vmatpush1.msra.mxu1 %v7426_v17  ;;  %3616 = vmatprep.subr.mxu0 %v8464_v27 }
 0x81c   :  { %3747 = vmatprep.subr.mxu1 %v8464_v27  ;;  %3619 = vmatpush1.msra.mxu0 %v7397_v3 }
 0x81d   :  { %3749 = vmatpush1.msra.mxu1 %v7439_v36  ;;  %3620 = vmatprep.subr.mxu0 %v8464_v27 }
 0x81e   :  { %3750 = vmatprep.subr.mxu1 %v8464_v27  ;;  %3623 = vmatpush1.msra.mxu0 %v7414_v34 }
 0x81f   :  { %3752 = vmatpush1.msra.mxu1 %v7457_v37  ;;  %3624 = vmatprep.subr.mxu0 %v8464_v27 }
 0x820   :  { %3753 = vmatprep.subr.mxu1 %v8464_v27  ;;  %3627 = vmatpush1.msra.mxu0 %v7424_v30 }
 0x821   :  { %3755 = vmatpush1.msra.mxu1 %v7485_v61  ;;  %3628 = vmatprep.subr.mxu0 %v8464_v27 }
 0x822   :  { %3756 = vmatprep.subr.mxu1 %v8464_v27  ;;  %3631 = vmatpush1.msra.mxu0 %v7437_v19 }
 0x823   :  { %3758 = vmatpush1.msra.mxu1 %v7487_v63  ;;  %3632 = vmatprep.subr.mxu0 %v8464_v27 }
 0x824   :  { %3759 = vmatprep.subr.mxu1 %v8464_v27  ;;  %3635 = vmatpush1.msra.mxu0 %v7455_v50 }
 0x825   :  { %3761 = vmatpush1.msra.mxu1 %v7489_v24  ;;  %3636 = vmatprep.subr.mxu0 %v8464_v27 }
 0x826   :  { %3762 = vmatprep.subr.mxu1 %v8464_v27  ;;  %3639 = vmatpush1.msra.mxu0 %v7476_v25 }
 0x827   :  { %3764 = vmatpush1.msra.mxu1 %v7492_v35  ;;  %3640 = vmatprep.subr.mxu0 %v8464_v27 }
 0x828   :  { %3765 = vmatprep.subr.mxu1 %v8464_v27  ;;  %3643 = vmatpush1.msra.mxu0 %v7506_v57 }
 0x829   :  { %3767 = vmatpush1.msra.mxu1 %v7503_v7  ;;  %3644 = vmatprep.subr.mxu0 %v8464_v27 }
 0x82a   :  { %3768 = vmatprep.subr.mxu1 %v8464_v27  ;;  %3647 = vmatpush1.msra.mxu0 %v7509_v16 }
 0x82b   :  { %3770 = vmatpush1.msra.mxu1 %v7525_v0  ;;  %3648 = vmatprep.subr.mxu0 %v8464_v27 }
 0x82c   :  { %3771 = vmatprep.subr.mxu1 %v8464_v27  ;;  %3651 = vmatpush1.msra.mxu0 %v7512_v38 }
 0x82d   :  { %3773 = vmatpush1.msra.mxu1 %v7564_v46  ;;  %3652 = vmatprep.subr.mxu0 %v8464_v27 }
 0x82e   :  { %3790 = vmatprep.subr.mxu1 %v8464_v27  ;;  %3655 = vmatpush1.msra.mxu0 %v7515_v49 }
 0x82f   :  { %3792 = vmatpush2.msra.mxu1 %v7578_v32  ;;  %3656 = vmatprep.subr.mxu0 %v8464_v27 }
 0x830   :  { %3793 = vmatprep.subr.mxu1 %v8464_v27  ;;  %3659 = vmatpush1.msra.mxu0 %v7523_v5 }
 0x831   :  { %3795 = vmatpush2.msra.mxu1 %v7590_v28  ;;  %3660 = vmatprep.subr.mxu0 %v8464_v27 }
 0x832   :  { %3796 = vmatprep.subr.mxu1 %v8464_v27  ;;  %3663 = vmatpush1.msra.mxu0 %v7535_v42 }
 0x833   :  { %3798 = vmatpush2.msra.mxu1 %v7605_v22  ;;  %3664 = vmatprep.subr.mxu0 %v8464_v27 }
 0x834   :  { %3799 = vmatprep.subr.mxu1 %v8464_v27  ;;  %3667 = vmatpush1.msra.mxu0 %v7576_v41 }
 0x835   :  { %3801 = vmatpush2.msra.mxu1 %v7621_v44  ;;  %3684 = vmatprep.subr.mxu0 %v8464_v27 }
 0x836   :  { %3802 = vmatprep.subr.mxu1 %v8464_v27  ;;  %3687 = vmatpush2.msra.mxu0 %v7588_v2 }
 0x837   :  { %3804 = vmatpush2.msra.mxu1 %v7632_v9  ;;  %3688 = vmatprep.subr.mxu0 %v8464_v27 }
 0x838   :  { %3805 = vmatprep.subr.mxu1 %v8464_v27  ;;  %3691 = vmatpush2.msra.mxu0 %v8526_v51 }
 0x839   :  { %3807 = vmatpush2.msra.mxu1 %v8527_v60  ;;  %3692 = vmatprep.subr.mxu0 %v8464_v27 }
 0x83a   :  { %3808 = vmatprep.subr.mxu1 %v8464_v27  ;;  %3695 = vmatpush2.msra.mxu0 %v8528_v40 }
 0x83b   :  { %3810 = vmatpush2.msra.mxu1 %v8529_v31  ;;  %3696 = vmatprep.subr.mxu0 %v8464_v27 }
 0x83c   :  { %3811 = vmatprep.subr.mxu1 %v8464_v27  ;;  %3699 = vmatpush2.msra.mxu0 %v8530_v33 }
 0x83d   :  { %3813 = vmatpush2.msra.mxu1 %v8531_v43  ;;  %3700 = vmatprep.subr.mxu0 %v8464_v27 }
 0x83e   :  { %3821 = vmatmul.mubr.f32.vlgmr.msra.gmra.mxu1 %v3404_v12  ;;  %3970 = vmatprep.subr.mxu1 %v8464_v27 }
 0x83f   :  { %3703 = vmatpush2.msra.mxu0 %v8532_v47  ;;  %3972 = vmatpush1.msra.mxu1 %v7352_v55  ;;  %v8535_v55 = vld [vmem:[#allocation25_spill] sm:$0xff] }
 0x840   :  { %4059 = vmatprep.mubr.f32.mxu1 %v7720_v23  ;;  %3704 = vmatprep.subr.mxu0 %v8464_v27 }
 0x841   :  { %3973 = vmatprep.subr.mxu1 %v8464_v27  ;;  %3707 = vmatpush2.msra.mxu0 %v8533_v14 }
 0x842   :  { %3975 = vmatpush1.msra.mxu1 %v7360_v13  ;;  %3708 = vmatprep.subr.mxu0 %v8464_v27  ;;  %v8536_v13 = vand.u32 4294901760, %v7358_v20  ;;  %v8538_v20 = vand.u32 4294901760, %v7383_v59  ;;  %v8541_v59 = vand.u32 4294901760, %v7424_v30  ;;  %v8546_v30 = vand.u32 4294901760, %v7509_v16 }
 0x843   :  { %3976 = vmatprep.subr.mxu1 %v8464_v27  ;;  %3711 = vmatpush2.msra.mxu0 %v8534_v4  ;;  %v8559_v16 = vand.u32 4294901760, %v8535_v55 }
 0x844   :  { %3978 = vmatpush1.msra.mxu1 %v7371_v10  ;;  %3712 = vmatprep.subr.mxu0 %v8464_v27  ;;  %v8537_v10 = vand.u32 4294901760, %v7369_v62  ;;  %v8540_v62 = vand.u32 4294901760, %v7414_v34  ;;  %v8545_v34 = vand.u32 4294901760, %v7506_v57  ;;  %v8558_v57 = vand.u32 4294901760, %v8534_v4 }
 0x845   :  { %3979 = vmatprep.subr.mxu1 %v8464_v27  ;;  %3715 = vmatpush2.msra.mxu0 %v8535_v55  ;;  %v4082_v55 = vld [vmem:[#allocation7 + $0x38] sm:$0xff] }
 0x846   :  { %3981 = vmatpush1.msra.mxu1 %v7385_v56  ;;  %3721 = vmatmul.mubr.f32.vlgmr.msra.gmra.mxu0 %v7717_v26  ;;  %v8539_v56 = vand.u32 4294901760, %v7397_v3  ;;  %v8542_v3 = vand.u32 4294901760, %v7437_v19  ;;  %v8548_v19 = vand.u32 4294901760, %v7515_v49  ;;  %v7992_v26 = vand.u32 4294901760, %v4086_v1 }
 0x847   :  { %3826 = vmatprep.subr.mxu0 %v8464_v27  ;;  %3982 = vmatprep.subr.mxu1 %v8464_v27 }
 0x848   :  { %3830 = vmatpush1.msra.mxu0 %v8536_v13  ;;  %3963 = vmatprep.mubr.f32.mxu0 %v7720_v23  ;;  %v8001_v18 = vsub.f32 %v4086_v1, %v7992_v26 }
 0x849   :  { %3984 = vmatpush1.msra.mxu1 %v7400_v45  ;;  %3831 = vmatprep.subr.mxu0 %v8464_v27  ;;  %v8543_v45 = vand.u32 4294901760, %v7455_v50  ;;  %v8550_v50 = vand.u32 4294901760, %v7535_v42 }
 0x84a   :  { %3985 = vmatprep.subr.mxu1 %v8464_v27  ;;  %3835 = vmatpush1.msra.mxu0 %v8537_v10 }
 0x84b   :  { %3987 = vmatpush1.msra.mxu1 %v7410_v58  ;;  %3836 = vmatprep.subr.mxu0 %v8464_v27  ;;  %v8544_v58 = vand.u32 4294901760, %v7476_v25  ;;  %v8552_v25 = vand.u32 4294901760, %v7588_v2 }
 0x84c   :  { %3988 = vmatprep.subr.mxu1 %v8464_v27  ;;  %3840 = vmatpush1.msra.mxu0 %v8538_v20 }
 0x84d   :  { %3990 = vmatpush1.msra.mxu1 %v7426_v17  ;;  %3841 = vmatprep.subr.mxu0 %v8464_v27  ;;  %v8547_v17 = vand.u32 4294901760, %v7512_v38  ;;  %v4090_v38 = vld [vmem:[#allocation7 + $0x78] sm:$0xff] }
 0x84e   :  { %3991 = vmatprep.subr.mxu1 %v8464_v27  ;;  %3845 = vmatpush1.msra.mxu0 %v8539_v56  ;;  %v7956_v49 = vand.u32 4294901760, %v4090_v38  ;;  %v8034_v56 = vand.u32 4294901760, %v4082_v55 }
 0x84f   :  { %3993 = vmatpush1.msra.mxu1 %v7439_v36  ;;  %3846 = vmatprep.subr.mxu0 %v8464_v27  ;;  %v8549_v36 = vand.u32 4294901760, %v7523_v5 }
 0x850   :  { %3994 = vmatprep.subr.mxu1 %v8464_v27  ;;  %3850 = vmatpush1.msra.mxu0 %v8540_v62  ;;  %v7959_v5 = vsub.f32 %v4090_v38, %v7956_v49 }
 0x851   :  { %3996 = vmatpush1.msra.mxu1 %v7457_v37  ;;  %3851 = vmatprep.subr.mxu0 %v8464_v27  ;;  %v8551_v37 = vand.u32 4294901760, %v7576_v41 }
 0x852   :  { %3997 = vmatprep.subr.mxu1 %v8464_v27  ;;  %3855 = vmatpush1.msra.mxu0 %v8541_v59  ;;  %v4081_v59 = vld [vmem:[#allocation7 + $0x30] sm:$0xff] }
 0x853   :  { %3999 = vmatpush1.msra.mxu1 %v7485_v61  ;;  %3856 = vmatprep.subr.mxu0 %v8464_v27  ;;  %v8553_v61 = vand.u32 4294901760, %v8526_v51  ;;  %v4213_v51 = vand.u32 4294901760, %v8001_v18 }
 0x854   :  { %4000 = vmatprep.subr.mxu1 %v8464_v27  ;;  %3860 = vmatpush1.msra.mxu0 %v8542_v3 }
 0x855   :  { %4002 = vmatpush1.msra.mxu1 %v7487_v63  ;;  %3861 = vmatprep.subr.mxu0 %v8464_v27  ;;  %v8554_v63 = vand.u32 4294901760, %v8528_v40  ;;  %v8015_v40 = vsub.f32 %v4085_v48, %v8004_v15 }
 0x856   :  { %4003 = vmatprep.subr.mxu1 %v8464_v27  ;;  %3865 = vmatpush1.msra.mxu0 %v8543_v45 }
 0x857   :  { %4005 = vmatpush1.msra.mxu1 %v7489_v24  ;;  %3866 = vmatprep.subr.mxu0 %v8464_v27  ;;  %v8555_v24 = vand.u32 4294901760, %v8530_v33  ;;  %v4220_v4 = vand.u32 4294901760, %v8015_v40 }
 0x858   :  { %4006 = vmatprep.subr.mxu1 %v8464_v27  ;;  %3870 = vmatpush1.msra.mxu0 %v8544_v58  ;;  %v8047_v58 = vsub.f32 %v4082_v55, %v8034_v56  ;;  %v4075_v55 = vld [vmem:[#allocation7] sm:$0xff] }
 0x859   :  { %4008 = vmatpush1.msra.mxu1 %v7492_v35  ;;  %3871 = vmatprep.subr.mxu0 %v8464_v27  ;;  %v8556_v35 = vand.u32 4294901760, %v8532_v47  ;;  %v4221_v62 = vsub.f32 %v8015_v40, %v4220_v4 }
 0x85a   :  { %4009 = vmatprep.subr.mxu1 %v8464_v27  ;;  %3875 = vmatpush1.msra.mxu0 %v8545_v34  ;;  %v8049_v34 = vand.u32 4294901760, %v4081_v59 }
 0x85b   :  { %4011 = vmatpush1.msra.mxu1 %v7503_v7  ;;  %3876 = vmatprep.subr.mxu0 %v8464_v27  ;;  %v8557_v7 = vand.u32 4294901760, %v8533_v14 }
 0x85c   :  { %4012 = vmatprep.subr.mxu1 %v8464_v27  ;;  %3880 = vmatpush1.msra.mxu0 %v8546_v30  ;;  %v4222_v30 = vand.u32 4294901760, %v4221_v62 }
 0x85d   :  { %4014 = vmatpush1.msra.mxu1 %v7525_v0  ;;  %3881 = vmatprep.subr.mxu0 %v8464_v27  ;;  %v4185_v0 = vand.u32 4294901760, %v7959_v5 }
 0x85e   :  { %4015 = vmatprep.subr.mxu1 %v8464_v27  ;;  %3885 = vmatpush1.msra.mxu0 %v8547_v17  ;;  %v4080_v17 = vld [vmem:[#allocation7 + $0x28] sm:$0xff] }
 0x85f   :  { %4017 = vmatpush1.msra.mxu1 %v7564_v46  ;;  %3886 = vmatprep.subr.mxu0 %v8464_v27  ;;  %v4186_v42 = vsub.f32 %v7959_v5, %v4185_v0  ;;  %v4089_v46 = vld [vmem:[#allocation7 + $0x70] sm:$0xff] }
 0x860   :  { %4034 = vmatprep.subr.mxu1 %v8464_v27  ;;  %3890 = vmatpush1.msra.mxu0 %v8548_v19  ;;  %v7968_v41 = vand.u32 4294901760, %v4089_v46 }
 0x861   :  { %4036 = vmatpush2.msra.mxu1 %v7578_v32  ;;  %3891 = vmatprep.subr.mxu0 %v8464_v27  ;;  %v4088_v32 = vld [vmem:[#allocation7 + $0x68] sm:$0xff] }
 0x862   :  { %4037 = vmatprep.subr.mxu1 %v8464_v27  ;;  %3895 = vmatpush1.msra.mxu0 %v8549_v36  ;;  %v7971_v2 = vsub.f32 %v4089_v46, %v7968_v41 }
 0x863   :  { %4039 = vmatpush2.msra.mxu1 %v7590_v28  ;;  %3896 = vmatprep.subr.mxu0 %v8464_v27  ;;  %v7973_v28 = vand.u32 4294901760, %v4088_v32 }
 0x864   :  { %4040 = vmatprep.subr.mxu1 %v8464_v27  ;;  %3900 = vmatpush1.msra.mxu0 %v8550_v50  ;;  %v4241_v50 = vand.u32 4294901760, %v8047_v58 }
 0x865   :  { %4042 = vmatpush2.msra.mxu1 %v7605_v22  ;;  %3901 = vmatprep.subr.mxu0 %v8464_v27  ;;  %v4087_v22 = vld [vmem:[#allocation7 + $0x60] sm:$0xff]  ;;  %v7979_v53 = vsub.f32 %v4088_v32, %v7973_v28 }
 0x866   :  { %4043 = vmatprep.subr.mxu1 %v8464_v27  ;;  %3905 = vmatpush1.msra.mxu0 %v8551_v37  ;;  %v7981_v52 = vand.u32 4294901760, %v4087_v22  ;;  %v8059_v37 = vsub.f32 %v4081_v59, %v8049_v34 }
 0x867   :  { %4045 = vmatpush2.msra.mxu1 %v7621_v44  ;;  %3922 = vmatprep.subr.mxu0 %v8464_v27  ;;  %v4192_v44 = vand.u32 4294901760, %v7971_v2 }
 0x868   :  { %4046 = vmatprep.subr.mxu1 %v8464_v27  ;;  %3926 = vmatpush2.msra.mxu0 %v8552_v25  ;;  %v7990_v39 = vsub.f32 %v4087_v22, %v7981_v52  ;;  %v8062_v25 = vand.u32 4294901760, %v4080_v17  ;;  %v4077_v22 = vld [vmem:[#allocation7 + $0x10] sm:$0xff] }
 0x869   :  { %4048 = vmatpush2.msra.mxu1 %v7632_v9  ;;  %3927 = vmatprep.subr.mxu0 %v8464_v27  ;;  %v4187_v9 = vand.u32 4294901760, %v4186_v42  ;;  %v4193_v6 = vsub.f32 %v7971_v2, %v4192_v44 }
 0x86a   :  { %4049 = vmatprep.subr.mxu1 %v8464_v27  ;;  %3931 = vmatpush2.msra.mxu0 %v8553_v61  ;;  %v4206_v11 = vand.u32 4294901760, %v7990_v39  ;;  %v4079_v61 = vld [vmem:[#allocation7 + $0x20] sm:$0xff] }
 0x86b   :  { %4051 = vmatpush2.msra.mxu1 %v8527_v60  ;;  %3932 = vmatprep.subr.mxu0 %v8464_v27  ;;  %v4194_v23 = vand.u32 4294901760, %v4193_v6  ;;  %v8011_v60 = vand.u32 4294901760, %v4084_v29 }
 0x86c   :  { %4052 = vmatprep.subr.mxu1 %v8464_v27  ;;  %3936 = vmatpush2.msra.mxu0 %v8554_v63  ;;  %v4207_v8 = vsub.f32 %v7990_v39, %v4206_v11 }
 0x86d   :  { %4054 = vmatpush2.msra.mxu1 %v8529_v31  ;;  %3937 = vmatprep.subr.mxu0 %v8464_v27  ;;  %v4083_v31 = vld [vmem:[#allocation7 + $0x40] sm:$0xff]  ;;  %v8022_v47 = vsub.f32 %v4084_v29, %v8011_v60  ;;  %v4076_v29 = vld [vmem:[#allocation7 + $0x8] sm:$0xff] }
 0x86e   :  { %4055 = vmatprep.subr.mxu1 %v8464_v27  ;;  %3941 = vmatpush2.msra.mxu0 %v8555_v24  ;;  %v4208_v33 = vand.u32 4294901760, %v4207_v8  ;;  %v8024_v14 = vand.u32 4294901760, %v4083_v31  ;;  %v4242_v24 = vsub.f32 %v8047_v58, %v4241_v50 }
 0x86f   :  { %4057 = vmatpush2.msra.mxu1 %v8531_v43  ;;  %3942 = vmatprep.subr.mxu0 %v8464_v27  ;;  %v4214_v43 = vsub.f32 %v8001_v18, %v4213_v51  ;;  %v4227_v10 = vand.u32 4294901760, %v8022_v47 }
 0x870   :  { %4061 = vmatmul.mubr.f32.vlgmr.msra.gmra.mxu1 %v7714_v54  ;;  %3946 = vmatpush2.msra.mxu0 %v8556_v35  ;;  %v8032_v20 = vsub.f32 %v4083_v31, %v8024_v14  ;;  %v8441_v35 = vand.u32 4294901760, %v8059_v37  ;;  %v4243_v38 = vand.u32 4294901760, %v4242_v24 }
 0x871   :  { %3947 = vmatprep.subr.mxu0 %v8464_v27  ;;  %5561 = vmatprep.subr.mxu1 %v8464_v27  ;;  %v4215_v13 = vand.u32 4294901760, %v4214_v43  ;;  %v4228_v3 = vsub.f32 %v8022_v47, %v4227_v10 }
 0x872   :  { %3951 = vmatpush2.msra.mxu0 %v8557_v7  ;;  %5593 = vmatprep.mubr.msk.f32.mxu1 %vm5856_vm0, %v8464_v27  ;;  %v4234_v45 = vand.u32 4294901760, %v8032_v20  ;;  %v8070_v7 = vand.u32 4294901760, %v4079_v61  ;;  %v4249_v42 = vsub.f32 %v8059_v37, %v8441_v35 }
 0x873   :  { %3952 = vmatprep.subr.mxu0 %v8464_v27  ;;  %5562 = vmatpush3.msra.mxu1 %v4187_v9  ;;  %v4229_v19 = vand.u32 4294901760, %v4228_v3 }
 0x874   :  { %3956 = vmatpush2.msra.mxu0 %v8558_v57  ;;  %5563 = vmatprep.subr.mxu1 %v8464_v27  ;;  %v4235_v36 = vsub.f32 %v8032_v20, %v4234_v45  ;;  %v8074_v57 = vsub.f32 %v4080_v17, %v8062_v25  ;;  %v8082_v9 = vsub.f32 %v4079_v61, %v8070_v7  ;;  %v4250_v1 = vand.u32 4294901760, %v4249_v42 }
 0x875   :  { %3957 = vmatprep.subr.mxu0 %v8464_v27  ;;  %5564 = vmatpush3.msra.mxu1 %v4194_v23  ;;  %v8094_v23 = vand.u32 4294901760, %v4077_v22 }
 0x876   :  { %3961 = vmatpush2.msra.mxu0 %v8559_v16  ;;  %5565 = vmatprep.subr.mxu1 %v8464_v27  ;;  %v4236_v63 = vand.u32 4294901760, %v4235_v36  ;;  %v4078_v16 = vld [vmem:[#allocation7 + $0x18] sm:$0xff]  ;;  %v8440_v32 = vand.u32 4294901760, %v8074_v57  ;;  %v8439_v6 = vand.u32 4294901760, %v8082_v9 }
 0x877   :  { %3965 = vmatmul.mubr.f32.vlgmr.msra.gmra.mxu0 %v7714_v54  ;;  %5526 = vmatprep.subr.mxu0 %v8464_v27  ;;  %v4199_v54 = vand.u32 4294901760, %v7979_v53  ;;  %v8084_v46 = vand.u32 4294901760, %v4078_v16  ;;  %v8107_v31 = vsub.f32 %v4077_v22, %v8094_v23 }
 0x878   :  { %5558 = vmatprep.mubr.msk.f32.mxu0 %vm5856_vm0, %v8464_v27  ;;  %5527 = vmatpush3.msra.mxu0 %v7956_v49 }
 0x879   :  { %5528 = vmatprep.subr.mxu0 %v8464_v27  ;;  %v4200_v12 = vsub.f32 %v7979_v53, %v4199_v54  ;;  %v8092_v48 = vsub.f32 %v4078_v16, %v8084_v46  ;;  %v8437_v59 = vand.u32 4294901760, %v8107_v31 }
 0x87a   :  { %5529 = vmatpush3.msra.mxu0 %v7968_v41 }
 0x87b   :  { %5530 = vmatprep.subr.mxu0 %v8464_v27  ;;  %v4201_v21 = vand.u32 4294901760, %v4200_v12  ;;  %v4256_v12 = vsub.f32 %v8074_v57, %v8440_v32  ;;  %v8438_v8 = vand.u32 4294901760, %v8092_v48 }
 0x87c   :  { %5531 = vmatpush3.msra.mxu0 %v7973_v28 }
 0x87d   :  { %5532 = vmatprep.subr.mxu0 %v8464_v27  ;;  %5566 = vmatpush3.msra.mxu1 %v4201_v21  ;;  %v4263_v21 = vsub.f32 %v8082_v9, %v8439_v6  ;;  %v4257_v43 = vand.u32 4294901760, %v4256_v12  ;;  %v4270_v62 = vsub.f32 %v8092_v48, %v8438_v8 }
 0x87e   :  { %5533 = vmatpush3.msra.mxu0 %v7981_v52  ;;  %5567 = vmatprep.subr.mxu1 %v8464_v27 }
 0x87f   :  { %5534 = vmatprep.subr.mxu0 %v8464_v27  ;;  %5568 = vmatpush3.msra.mxu1 %v4208_v33  ;;  %v8109_v33 = vand.u32 4294901760, %v4076_v29  ;;  %v4271_v17 = vand.u32 4294901760, %v4270_v62 }
 0x880   :  { %5535 = vmatpush3.msra.mxu0 %v7992_v26  ;;  %5569 = vmatprep.subr.mxu1 %v8464_v27 }
 0x881   :  { %5536 = vmatprep.subr.mxu0 %v8464_v27  ;;  %5570 = vmatpush3.msra.mxu1 %v4215_v13  ;;  %v4264_v13 = vand.u32 4294901760, %v4263_v21  ;;  %v8119_v3 = vsub.f32 %v4076_v29, %v8109_v33  ;;  %v4751_v29 = vld [vmem:[%s8327_s8 + $0x4] ss:$0 sm:$0xff] }
 0x882   :  { %5537 = vmatpush3.msra.mxu0 %v8004_v15  ;;  %5571 = vmatprep.subr.mxu1 %v8464_v27 }
 0x883   :  { %5538 = vmatprep.subr.mxu0 %v8464_v27  ;;  %5572 = vmatpush3.msra.mxu1 %v4222_v30  ;;  %v8122_v30 = vand.u32 4294901760, %v4075_v55  ;;  %v8436_v36 = vand.u32 4294901760, %v8119_v3 }
 0x884   :  { %5539 = vmatpush3.msra.mxu0 %v8011_v60  ;;  %5573 = vmatprep.subr.mxu1 %v8464_v27 }
 0x885   :  { %5540 = vmatprep.subr.mxu0 %v8464_v27  ;;  %5574 = vmatpush3.msra.mxu1 %v4229_v19  ;;  %v4277_v19 = vsub.f32 %v8107_v31, %v8437_v59  ;;  %v8132_v61 = vsub.f32 %v4075_v55, %v8122_v30  ;;  %v4284_v24 = vsub.f32 %v8119_v3, %v8436_v36 }
 0x886   :  { %5541 = vmatpush3.msra.mxu0 %v8024_v14  ;;  %5575 = vmatprep.subr.mxu1 %v8464_v27 }
 0x887   :  { %5542 = vmatprep.subr.mxu0 %v8464_v27  ;;  %5576 = vmatpush3.msra.mxu1 %v4236_v63  ;;  %v4278_v63 = vand.u32 4294901760, %v4277_v19  ;;  %v8435_v16 = vand.u32 4294901760, %v8132_v61 }
 0x888   :  { %5543 = vmatpush3.msra.mxu0 %v8034_v56  ;;  %5577 = vmatprep.subr.mxu1 %v8464_v27 }
 0x889   :  { %5544 = vmatprep.subr.mxu0 %v8464_v27  ;;  %5578 = vmatpush3.msra.mxu1 %v4243_v38  ;;  %v4285_v38 = vand.u32 4294901760, %v4284_v24  ;;  %v4291_v42 = vsub.f32 %v8132_v61, %v8435_v16 }
 0x88a   :  { %5545 = vmatpush3.msra.mxu0 %v8049_v34  ;;  %5579 = vmatprep.subr.mxu1 %v8464_v27 }
 0x88b   :  { %5546 = vmatprep.subr.mxu0 %v8464_v27  ;;  %5580 = vmatpush3.msra.mxu1 %v4250_v1  ;;  %v4292_v22 = vand.u32 4294901760, %v4291_v42 }
 0x88c   :  { %5547 = vmatpush3.msra.mxu0 %v8062_v25  ;;  %5581 = vmatprep.subr.mxu1 %v8464_v27 }
 0x88d   :  { %5548 = vmatprep.subr.mxu0 %v8464_v27  ;;  %5582 = vmatpush3.msra.mxu1 %v4257_v43 }
 0x88e   :  { %5549 = vmatpush3.msra.mxu0 %v8070_v7  ;;  %5583 = vmatprep.subr.mxu1 %v8464_v27 }
 0x88f   :  { %5550 = vmatprep.subr.mxu0 %v8464_v27  ;;  %5584 = vmatpush3.msra.mxu1 %v4264_v13 }
 0x890   :  { %5551 = vmatpush3.msra.mxu0 %v8084_v46  ;;  %5585 = vmatprep.subr.mxu1 %v8464_v27 }
 0x891   :  { %5552 = vmatprep.subr.mxu0 %v8464_v27  ;;  %5586 = vmatpush3.msra.mxu1 %v4271_v17 }
 0x892   :  { %5553 = vmatpush3.msra.mxu0 %v8094_v23  ;;  %5587 = vmatprep.subr.mxu1 %v8464_v27 }
 0x893   :  { %5554 = vmatprep.subr.mxu0 %v8464_v27  ;;  %5588 = vmatpush3.msra.mxu1 %v4278_v63 }
 0x894   :  { %5555 = vmatpush3.msra.mxu0 %v8109_v33  ;;  %5589 = vmatprep.subr.mxu1 %v8464_v27 }
 0x895   :  { %5556 = vmatprep.subr.mxu0 %v8464_v27  ;;  %5590 = vmatpush3.msra.mxu1 %v4285_v38 }
 0x896   :  { %5557 = vmatpush3.msra.mxu0 %v8122_v30  ;;  %5591 = vmatprep.subr.mxu1 %v8464_v27 }
 0x897   :  { %5596 = vmatprep.subr.mxu0 %v8464_v27  ;;  %5592 = vmatpush3.msra.mxu1 %v4292_v22 }
 0x898   :  { %5631 = vmatprep.subr.mxu1 %v8464_v27 }
 0x8cd   :  { %v3600_v1 = vpop.f32.mrf.mxu1 }
 0x8cf   :  { %v3602_v12 = vpop.f32.mrf.mxu1 }
 0x8d5   :  { %v3408_v21 = vpop.f32.mrf.mxu0 }
 0x8d6   :  { %v3409_v43 = vadd.f32 %v4751_v29, %v3408_v21 }
 0x8d7   :  { %v3410_v55 = vpop.f32.mrf.mxu0 }
 0x8d8   :  { %v3601_v13 = vadd.f32 %v3600_v1, %v3409_v43 }
 0x8fe   :  { %v3822_v62 = vpop.f32.mrf.mxu1 }
 0x900   :  { %v3824_v17 = vpop.f32.mrf.mxu1 }
 0x906   :  { %v3722_v19 = vpop.f32.mrf.mxu0 }
 0x907   :  { %v3723_v38 = vadd.f32 %v3722_v19, %v3601_v13 }
 0x908   :  { %v3724_v63 = vpop.f32.mrf.mxu0 }
 0x909   :  { %v3823_v16 = vadd.f32 %v3822_v62, %v3723_v38 }
 0x930   :  { %v4062_v24 = vpop.f32.mrf.mxu1 }
 0x932   :  { %v4064_v42 = vpop.f32.mrf.mxu1 }
 0x937   :  { %v3966_v22 = vpop.f32.mrf.mxu0 }
 0x938   :  { %v3967_v36 = vadd.f32 %v3966_v22, %v3823_v16 }
 0x939   :  { %v3968_v59 = vpop.f32.mrf.mxu0 }
 0x93a   :  { %v4063_v12 = vadd.f32 %v4062_v24, %v3967_v36 }
 0x93c   :  { %v4066_v8 = vmax.f32 %v4063_v12, 0.0 }
 0x93e   :  { %v4067_v6 = vsel %vm2360_vm5, %v4066_v8, 0.0 }
 0x93f   :  { %v4068_v32 = vrot.slane %v4067_v6, 4 }
 0x941   :  { %v4069_v35 = vadd.f32 %v4068_v32, %v4067_v6 }
 0x943   :  { %v4070_v29 = vrot.slane %v4069_v35, 2 }
 0x945   :  { %v4071_v21 = vadd.f32 %v4070_v29, %v4069_v35 }
 0x947   :  { %v4072_v1 = vrot.slane %v4071_v21, 1 }
 0x949   :  { %v4073_v43 = vadd.f32 %v4072_v1, %v4071_v21 }
 0x94b   :  { %v8152_v55 = vand.u32 4294901760, %v4073_v43 }
 0x94d   :  { %v8155_v17 = vsub.f32 %v4073_v43, %v8152_v55  ;;  %5594 = vmatmul.mubr.f32.vlgmr.msra.gmra.mxu1 %v8152_v55 }
 0x94e   :  { %5632 = vmatpush3.msra.mxu1 %v7956_v49  ;;  %5663 = vmatprep.mubr.msk.f32.mxu1 %vm5856_vm0, %v8464_v27 }
 0x94f   :  { %5633 = vmatprep.subr.mxu1 %v8464_v27  ;;  %v4174_v32 = vand.u32 4294901760, %v8155_v17 }
 0x950   :  { %5634 = vmatpush3.msra.mxu1 %v7968_v41 }
 0x951   :  { %5635 = vmatprep.subr.mxu1 %v8464_v27  ;;  %v4175_v35 = vsub.f32 %v8155_v17, %v4174_v32 }
 0x952   :  { %5636 = vmatpush3.msra.mxu1 %v7973_v28 }
 0x953   :  { %5637 = vmatprep.subr.mxu1 %v8464_v27  ;;  %v4176_v6 = vand.u32 4294901760, %v4175_v35 }
 0x954   :  { %5638 = vmatpush3.msra.mxu1 %v7981_v52 }
 0x955   :  { %5639 = vmatprep.subr.mxu1 %v8464_v27  ;;  %5559 = vmatmul.mubr.f32.vlgmr.msra.gmra.mxu0 %v4176_v6 }
 0x956   :  { %5597 = vmatpush3.msra.mxu0 %v7959_v5  ;;  %5640 = vmatpush3.msra.mxu1 %v7992_v26  ;;  %v8561_v5 = vand.u32 4294901760, %v8074_v57 }
 0x957   :  { %5598 = vmatprep.subr.mxu0 %v8464_v27  ;;  %5641 = vmatprep.subr.mxu1 %v8464_v27 }
 0x958   :  { %5599 = vmatpush3.msra.mxu0 %v7971_v2  ;;  %5642 = vmatpush3.msra.mxu1 %v8004_v15  ;;  %v8564_v2 = vand.u32 4294901760, %v8107_v31 }
 0x959   :  { %5600 = vmatprep.subr.mxu0 %v8464_v27  ;;  %5643 = vmatprep.subr.mxu1 %v8464_v27 }
 0x95a   :  { %5601 = vmatpush3.msra.mxu0 %v7979_v53  ;;  %5644 = vmatpush3.msra.mxu1 %v8011_v60 }
 0x95b   :  { %5602 = vmatprep.subr.mxu0 %v8464_v27  ;;  %5645 = vmatprep.subr.mxu1 %v8464_v27 }
 0x95c   :  { %5603 = vmatpush3.msra.mxu0 %v7990_v39  ;;  %5646 = vmatpush3.msra.mxu1 %v8024_v14 }
 0x95d   :  { %5604 = vmatprep.subr.mxu0 %v8464_v27  ;;  %5647 = vmatprep.subr.mxu1 %v8464_v27 }
 0x95e   :  { %5605 = vmatpush3.msra.mxu0 %v8001_v18  ;;  %5648 = vmatpush3.msra.mxu1 %v8034_v56 }
 0x95f   :  { %5606 = vmatprep.subr.mxu0 %v8464_v27  ;;  %5649 = vmatprep.subr.mxu1 %v8464_v27 }
 0x960   :  { %5607 = vmatpush3.msra.mxu0 %v8015_v40  ;;  %5650 = vmatpush3.msra.mxu1 %v8049_v34 }
 0x961   :  { %5608 = vmatprep.subr.mxu0 %v8464_v27  ;;  %5651 = vmatprep.subr.mxu1 %v8464_v27 }
 0x962   :  { %5609 = vmatpush3.msra.mxu0 %v8022_v47  ;;  %5652 = vmatpush3.msra.mxu1 %v8062_v25 }
 0x963   :  { %5610 = vmatprep.subr.mxu0 %v8464_v27  ;;  %5653 = vmatprep.subr.mxu1 %v8464_v27 }
 0x964   :  { %5611 = vmatpush3.msra.mxu0 %v8032_v20  ;;  %5654 = vmatpush3.msra.mxu1 %v8070_v7 }
 0x965   :  { %5612 = vmatprep.subr.mxu0 %v8464_v27  ;;  %5655 = vmatprep.subr.mxu1 %v8464_v27 }
 0x966   :  { %5613 = vmatpush3.msra.mxu0 %v8047_v58  ;;  %5656 = vmatpush3.msra.mxu1 %v8084_v46 }
 0x967   :  { %5614 = vmatprep.subr.mxu0 %v8464_v27  ;;  %5657 = vmatprep.subr.mxu1 %v8464_v27 }
 0x968   :  { %5615 = vmatpush3.msra.mxu0 %v8059_v37  ;;  %5658 = vmatpush3.msra.mxu1 %v8094_v23 }
 0x969   :  { %5616 = vmatprep.subr.mxu0 %v8464_v27  ;;  %5659 = vmatprep.subr.mxu1 %v8464_v27 }
 0x96a   :  { %5617 = vmatpush3.msra.mxu0 %v8074_v57  ;;  %5660 = vmatpush3.msra.mxu1 %v8109_v33 }
 0x96b   :  { %5618 = vmatprep.subr.mxu0 %v8464_v27  ;;  %5661 = vmatprep.subr.mxu1 %v8464_v27 }
 0x96c   :  { %5619 = vmatpush3.msra.mxu0 %v8082_v9  ;;  %5662 = vmatpush3.msra.mxu1 %v8122_v30 }
 0x96d   :  { %5620 = vmatprep.subr.mxu0 %v8464_v27  ;;  %5664 = vmatmul.mubr.f32.vlgmr.msra.gmra.mxu1 %v4174_v32 }
 0x96e   :  { %5701 = vmatprep.subr.mxu1 %v8464_v27  ;;  %5621 = vmatpush3.msra.mxu0 %v8092_v48 }
 0x96f   :  { %5702 = vmatpush3.msra.mxu1 %v7956_v49  ;;  %5622 = vmatprep.subr.mxu0 %v8464_v27  ;;  %v8560_v49 = vand.u32 4294901760, %v8059_v37 }
 0x970   :  { %5703 = vmatprep.subr.mxu1 %v8464_v27  ;;  %5623 = vmatpush3.msra.mxu0 %v8107_v31 }
 0x971   :  { %5704 = vmatpush3.msra.mxu1 %v7968_v41  ;;  %5624 = vmatprep.subr.mxu0 %v8464_v27  ;;  %v8563_v41 = vand.u32 4294901760, %v8092_v48 }
 0x972   :  { %5705 = vmatprep.subr.mxu1 %v8464_v27  ;;  %5625 = vmatpush3.msra.mxu0 %v8119_v3 }
 0x973   :  { %5706 = vmatpush3.msra.mxu1 %v7973_v28  ;;  %5626 = vmatprep.subr.mxu0 %v8464_v27  ;;  %v8565_v28 = vand.u32 4294901760, %v8119_v3 }
 0x974   :  { %5707 = vmatprep.subr.mxu1 %v8464_v27  ;;  %5627 = vmatpush3.msra.mxu0 %v8132_v61 }
 0x975   :  { %5628 = vmatprep.mubr.msk.f32.mxu0 %vm5856_vm0, %v8464_v27  ;;  %5708 = vmatpush3.msra.mxu1 %v7981_v52 }
 0x976   :  { %5629 = vmatmul.mubr.f32.vlgmr.msra.gmra.mxu0 %v8155_v17  ;;  %5666 = vmatprep.subr.mxu0 %v8464_v27 }
 0x977   :  { %5709 = vmatprep.subr.mxu1 %v8464_v27  ;;  %5667 = vmatpush3.msra.mxu0 %v4185_v0  ;;  %v8562_v0 = vand.u32 4294901760, %v8082_v9 }
 0x978   :  { %5710 = vmatpush3.msra.mxu1 %v7992_v26  ;;  %5668 = vmatprep.subr.mxu0 %v8464_v27 }
 0x979   :  { %5711 = vmatprep.subr.mxu1 %v8464_v27  ;;  %5669 = vmatpush3.msra.mxu0 %v4192_v44  ;;  %v8566_v44 = vand.u32 4294901760, %v8132_v61 }
 0x97a   :  { %5712 = vmatpush3.msra.mxu1 %v8004_v15  ;;  %5670 = vmatprep.subr.mxu0 %v8464_v27 }
 0x97b   :  { %5713 = vmatprep.subr.mxu1 %v8464_v27  ;;  %5671 = vmatpush3.msra.mxu0 %v4199_v54 }
 0x97c   :  { %5714 = vmatpush3.msra.mxu1 %v8011_v60  ;;  %5672 = vmatprep.subr.mxu0 %v8464_v27 }
 0x97d   :  { %5715 = vmatprep.subr.mxu1 %v8464_v27  ;;  %5673 = vmatpush3.msra.mxu0 %v4206_v11 }
 0x97e   :  { %5716 = vmatpush3.msra.mxu1 %v8024_v14  ;;  %5674 = vmatprep.subr.mxu0 %v8464_v27 }
 0x97f   :  { %5717 = vmatprep.subr.mxu1 %v8464_v27  ;;  %5675 = vmatpush3.msra.mxu0 %v4213_v51  ;;  %v4074_v51 = vld [vmem:[%s8327_s8 + $0x5] sm:$0x1] }
 0x980   :  { %5718 = vmatpush3.msra.mxu1 %v8034_v56  ;;  %5676 = vmatprep.subr.mxu0 %v8464_v27 }
 0x981   :  { %5719 = vmatprep.subr.mxu1 %v8464_v27  ;;  %5677 = vmatpush3.msra.mxu0 %v4220_v4 }
 0x982   :  { %5720 = vmatpush3.msra.mxu1 %v8049_v34  ;;  %5678 = vmatprep.subr.mxu0 %v8464_v27 }
 0x983   :  { %5721 = vmatprep.subr.mxu1 %v8464_v27  ;;  %5679 = vmatpush3.msra.mxu0 %v4227_v10 }
 0x984   :  { %5722 = vmatpush3.msra.mxu1 %v8062_v25  ;;  %5680 = vmatprep.subr.mxu0 %v8464_v27 }
 0x985   :  { %5723 = vmatprep.subr.mxu1 %v8464_v27  ;;  %5681 = vmatpush3.msra.mxu0 %v4234_v45 }
 0x986   :  { %5724 = vmatpush3.msra.mxu1 %v8070_v7  ;;  %5682 = vmatprep.subr.mxu0 %v8464_v27 }
 0x987   :  { %5725 = vmatprep.subr.mxu1 %v8464_v27  ;;  %5683 = vmatpush3.msra.mxu0 %v4241_v50 }
 0x988   :  { %5726 = vmatpush3.msra.mxu1 %v8084_v46  ;;  %5684 = vmatprep.subr.mxu0 %v8464_v27 }
 0x989   :  { %5727 = vmatprep.subr.mxu1 %v8464_v27  ;;  %5685 = vmatpush3.msra.mxu0 %v8560_v49 }
 0x98a   :  { %5728 = vmatpush3.msra.mxu1 %v8094_v23  ;;  %5686 = vmatprep.subr.mxu0 %v8464_v27 }
 0x98b   :  { %5729 = vmatprep.subr.mxu1 %v8464_v27  ;;  %5687 = vmatpush3.msra.mxu0 %v8561_v5 }
 0x98c   :  { %5730 = vmatpush3.msra.mxu1 %v8109_v33  ;;  %5688 = vmatprep.subr.mxu0 %v8464_v27 }
 0x98d   :  { %5731 = vmatprep.subr.mxu1 %v8464_v27  ;;  %5689 = vmatpush3.msra.mxu0 %v8562_v0 }
 0x98e   :  { %5732 = vmatpush3.msra.mxu1 %v8122_v30  ;;  %5733 = vmatprep.mubr.msk.f32.mxu1 %vm5856_vm0, %v8464_v27 }
 0x98f   :  { %5690 = vmatprep.subr.mxu0 %v8464_v27  ;;  %5734 = vmatmul.mubr.f32.vlgmr.msra.gmra.mxu1 %v8152_v55 }
 0x990   :  { %5691 = vmatpush3.msra.mxu0 %v8563_v41  ;;  %5698 = vmatprep.mubr.msk.f32.mxu0 %vm5856_vm0, %v8464_v27 }
 0x991   :  { %5692 = vmatprep.subr.mxu0 %v8464_v27 }
 0x992   :  { %5693 = vmatpush3.msra.mxu0 %v8564_v2 }
 0x993   :  { %5694 = vmatprep.subr.mxu0 %v8464_v27 }
 0x994   :  { %5695 = vmatpush3.msra.mxu0 %v8565_v28 }
 0x995   :  { %5696 = vmatprep.subr.mxu0 %v8464_v27 }
 0x996   :  { %5697 = vmatpush3.msra.mxu0 %v8566_v44 }
 0x997   :  { %5699 = vmatmul.mubr.f32.vlgmr.msra.gmra.mxu0 %v8152_v55 }
 0xa0d   :  { %v4329_v53 = vpop.f32.mrf.mxu1 }
 0xa0f   :  { %v5595_v52 = vpop.f32.mrf.mxu1 }
 0xa15   :  { %v4178_v54 = vpop.f32.mrf.mxu0 }
 0xa16   :  { %v4179_v60 = vadd.f32 %v4178_v54, %v4074_v51 }
 0xa17   :  { %v5560_v39 = vpop.f32.mrf.mxu0 }
 0xa18   :  { %v4330_v27 = vadd.f32 %v4329_v53, %v4179_v60 }
 0xa2d   :  { %v4522_v26 = vpop.f32.mrf.mxu1 }
 0xa2f   :  { %v5665_v11 = vpop.f32.mrf.mxu1 }
 0xa36   :  { %v4433_v18 = vpop.f32.mrf.mxu0 }
 0xa37   :  { %v4434_v14 = vadd.f32 %v4433_v18, %v4330_v27 }
 0xa38   :  { %v5630_v15 = vpop.f32.mrf.mxu0 }
 0xa39   :  { %v4523_v4 = vadd.f32 %v4522_v26, %v4434_v14 }
 0xa4f   :  { %v4728_v40 = vpop.f32.mrf.mxu1 }
 0xa51   :  { %v5735_v47 = vpop.f32.mrf.mxu1 }
 0xa57   :  { %v4641_v10 = vpop.f32.mrf.mxu0 }
 0xa58   :  { %v4642_v20 = vadd.f32 %v4641_v10, %v4523_v4 }
 0xa59   :  { %v5700_v56 = vpop.f32.mrf.mxu0 }
 0xa5a   :  { %v4729_v45 = vadd.f32 %v4728_v40, %v4642_v20 }
 0xa5c   :  { %4732 = vst [vmem:[#allocation8] sm:$0x1] %v4729_v45 }
 0xa5d   :  { %5835 = shalt.err (!%p5832_p5)
}
 0xa5e   :  { %4742 = dma.vmem_to_hbm [thread:$0]  %s4740_s24, 16, %s8328_s9, [#allocation4]  }
 0xa5f   :  { %5848 = dma.done.wait [#allocation4], 16  }
 0xa60   :  { %5849 = vsyncadd [#allocation4], 4294967280 }
 0xa61   :  { %4746 = vsyncpa [#allocation3], 1 }
 0xa62   :  { %4747 = vsyncpa [#allocation6], 1 }
 0xa63   :  { %4748 = vsyncpa [#allocation4], 1 }

</bundles_post_ra>
